<compile_context>
chip_gen: v7x
topology: tpu7x:2x2x1
jax: 0.10.0
libtpu: 0.0.40
codegen_flags: <defaults>
</compile_context>

<pallas_src>
import jax
import jax.numpy as jnp
from jax.experimental import pallas as pl
from jax.experimental.pallas import tpu as pltpu  # noqa: F401  (kept for TPU-specific tuning hooks)

# ----------------------------- configuration (small, test-sized) ------------
IMG_SIZE = 16
PATCH = 4
IN_CH = 3
D_MODEL = 32
N_HEADS = 4
N_LAYERS = 2
D_FF = 4 * D_MODEL
NUM_CLASSES = 10
HEAD_DIM = D_MODEL // N_HEADS
NUM_PATCHES = (IMG_SIZE // PATCH) ** 2      # 16
SEQ = NUM_PATCHES + 1                       # 17 (cls token + patches)
PATCH_DIM = IN_CH * PATCH * PATCH           # 48
LN_EPS = 1e-5
ATTN_SCALE = 1.0 / (HEAD_DIM ** 0.5)
NEG_INF = -1e30                             # additive mask for cross-batch attn


# ----------------------------- in-kernel helpers ------------------------------
def _layernorm(x, g, b):
    mean = jnp.mean(x, axis=-1, keepdims=True)
    var = jnp.mean((x - mean) ** 2, axis=-1, keepdims=True)
    return (x - mean) * jax.lax.rsqrt(var + LN_EPS) * g + b


# ----------------------------- fused whole-model kernel -----------------------
def _vit_fused_kernel(patches_ref, pemb_w_ref, seq_bias_ref, mask_ref,
                      ln1_g_ref, ln1_b_ref, qkv_w_ref, qkv_b_ref,
                      proj_w_ref, proj_b_ref, ln2_g_ref, ln2_b_ref,
                      fc1_w_ref, fc1_b_ref, fc2_w_ref, fc2_b_ref,
                      head_w_ref, head_b_ref, o_ref):
    """Patch embed + all encoder layers + classifier head, fully in VMEM.

    Row layout of the resident activation x (attention is order-invariant;
    the cross-batch mask + per-row seq_bias keep the math identical to the
    per-image [cls, patches] ordering):
        rows [0, B*NP)        : patch tokens (batch-major, row-major patches)
        rows [B*NP, B*NP + B) : cls token of batch 0 .. B-1
    """
    n_rows = patches_ref.shape[0]           # B*NUM_PATCHES + B  (static)
    batch = n_rows // SEQ

    # ---- patch embedding --------------------------------------------------
    # The B trailing rows of `patches` are zeros, so those rows come out as
    # pure seq_bias = cls_token + pos[0]; patch rows get conv_bias + pos[1:].
    x = jnp.dot(patches_ref[...].astype(jnp.bfloat16), pemb_w_ref[...],
                preferred_element_type=jnp.float32) + seq_bias_ref[...]

    mask = mask_ref[...]                     # (N, N) f32, 0 / -1e30

    # ---- encoder layers (static unroll; weights stacked on a leading axis) --
    for l in range(N_LAYERS):
        # multi-head self-attention (pre-LN)
        h = _layernorm(x, ln1_g_ref[l], ln1_b_ref[l]).astype(jnp.bfloat16)
        qkv = jnp.dot(h, qkv_w_ref[l],
                      preferred_element_type=jnp.float32) + qkv_b_ref[l]
        proj_w_l = proj_w_ref[l]             # (H, HEAD_DIM, D) bf16

        attn = None
        for hh in range(N_HEADS):            # static unroll
            lo = hh * HEAD_DIM
            q = qkv[:, lo:lo + HEAD_DIM].astype(jnp.bfloat16)           # scale pre-folded
            k = qkv[:, D_MODEL + lo:D_MODEL + lo + HEAD_DIM].astype(jnp.bfloat16)
            v = qkv[:, 2 * D_MODEL + lo:2 * D_MODEL + lo + HEAD_DIM].astype(jnp.bfloat16)

            # contract last axes (no explicit k.T); mask kills cross-batch pairs
            s = jax.lax.dot_general(q, k, (((1,), (1,)), ((), ())),
                                    preferred_element_type=jnp.float32) + mask
            s = s - jnp.max(s, axis=-1, keepdims=True)
            p = jnp.exp(s)
            inv = pl.reciprocal(jnp.sum(p, axis=-1, keepdims=True))     # exact
            ho = jnp.dot(p.astype(jnp.bfloat16), v,
                         preferred_element_type=jnp.float32)
            ho = (ho * inv).astype(jnp.bfloat16)                        # normalize after PV
            # fold head re-assembly into the output projection (no concat)
            contrib = jnp.dot(ho, proj_w_l[hh],
                              preferred_element_type=jnp.float32)
            attn = contrib if attn is None else attn + contrib
        x = x + attn + proj_b_ref[l]

        # MLP (pre-LN)
        h2 = _layernorm(x, ln2_g_ref[l], ln2_b_ref[l]).astype(jnp.bfloat16)
        m = jnp.dot(h2, fc1_w_ref[l],
                    preferred_element_type=jnp.float32) + fc1_b_ref[l]
        # TODO(synk): PyTorch nn.GELU defaults to exact erf GELU; tanh approx
        # used here for robust Mosaic lowering.
        m = jax.nn.gelu(m, approximate=True).astype(jnp.bfloat16)
        m = jnp.dot(m, fc2_w_ref[l],
                    preferred_element_type=jnp.float32) + fc2_b_ref[l]
        x = x + m

    # ---- classification head (cls rows are the last B rows) -----------------
    cls = x[batch * NUM_PATCHES:, :]                                    # (B, D)
    o_ref[...] = jnp.dot(cls, head_w_ref[...],
                         preferred_element_type=jnp.float32) + head_b_ref[...]


# ----------------------------- parameter prep (run once, outside forward) -----
def prepare_params(params, batch_size):
    """Cast weights to bf16 once, stack per-layer tensors, fold the attention
    scale into Q, pre-split the output projection per head, and precompute the
    seq_bias row table + cross-batch attention mask for the fused kernel."""
    L = N_LAYERS
    layers = params["layers"]
    bf = jnp.bfloat16

    pos = params["pos_embedding"].reshape(SEQ, D_MODEL)
    cls = params["cls_token"].reshape(1, D_MODEL)
    conv_b = params["proj_b"].reshape(1, D_MODEL)

    # seq_bias rows: patch rows get conv bias + pos[1:]; cls rows get cls + pos[0]
    seq_bias = jnp.concatenate(
        [jnp.tile(pos[1:], (batch_size, 1)) + conv_b,
         jnp.tile(cls + pos[0:1], (batch_size, 1))], axis=0).astype(jnp.float32)

    # additive mask: 0 within a batch's own tokens, -1e30 across batches
    bid = jnp.concatenate([jnp.repeat(jnp.arange(batch_size), NUM_PATCHES),
                           jnp.arange(batch_size)])
    mask = jnp.where(bid[:, None] == bid[None, :], 0.0, NEG_INF).astype(jnp.float32)

    def stack(name):
        return jnp.stack([lp[name] for lp in layers])

    # fold ATTN_SCALE into the Q third of the QKV projection (exact, in f32)
    scale = jnp.concatenate([jnp.full((D_MODEL,), ATTN_SCALE, jnp.float32),
                             jnp.ones((2 * D_MODEL,), jnp.float32)])
    qkv_w = (stack("qkv_w") * scale[None, None, :]).astype(bf)          # (L, D, 3D)
    qkv_b = (stack("qkv_b") * scale[None, :]).reshape(L, 1, 3 * D_MODEL)

    return dict(
        pemb_w=params["proj_w"].astype(bf),                             # (48, D)
        seq_bias=seq_bias,                                              # (B*SEQ, D)
        mask=mask,                                                      # (B*SEQ, B*SEQ)
        ln1_g=stack("ln1_g").reshape(L, 1, D_MODEL),
        ln1_b=stack("ln1_b").reshape(L, 1, D_MODEL),
        qkv_w=qkv_w,
        qkv_b=qkv_b,
        proj_w=stack("proj_w").reshape(L, N_HEADS, HEAD_DIM, D_MODEL).astype(bf),
        proj_b=stack("proj_b").reshape(L, 1, D_MODEL),
        ln2_g=stack("ln2_g").reshape(L, 1, D_MODEL),
        ln2_b=stack("ln2_b").reshape(L, 1, D_MODEL),
        fc1_w=stack("fc1_w").astype(bf),                                # (L, D, 4D)
        fc1_b=stack("fc1_b").reshape(L, 1, D_FF),
        fc2_w=stack("fc2_w").astype(bf),                                # (L, 4D, D)
        fc2_b=stack("fc2_b").reshape(L, 1, D_MODEL),
        head_w=params["head_w"].astype(jnp.float32),                    # (D, 10)
        head_b=params["head_b"].reshape(1, NUM_CLASSES).astype(jnp.float32),
    )


# ----------------------------- model forward -----------------------------------
def vit_forward(x, prepped):
    """x: (B, C, H, W) NCHW float32 -> logits (B, NUM_CLASSES).
    One fused pallas_call for the whole network (everything fits VMEM)."""
    B, C, H, W = x.shape
    Hp, Wp = H // PATCH, W // PATCH

    # Strided Conv2d == patchify + matmul; (c, kh, kw) flatten order matches
    # PyTorch Conv2d weight flattening. Cheap XLA reshape/transpose.
    patches = x.reshape(B, C, Hp, PATCH, Wp, PATCH)
    patches = jnp.transpose(patches, (0, 2, 4, 1, 3, 5))
    patches = patches.reshape(B * Hp * Wp, PATCH_DIM)
    # B zero rows at the end become the cls positions (0 @ W + seq_bias).
    patches = jnp.concatenate(
        [patches, jnp.zeros((B, PATCH_DIM), patches.dtype)], axis=0)

    return pl.pallas_call(
        _vit_fused_kernel,
        out_shape=jax.ShapeDtypeStruct((B, NUM_CLASSES), jnp.float32),
        # No grid / BlockSpecs: whole arrays (a few tens of KB total) land in
        # VMEM, single invocation, weights resident for all layers.
    )(patches, prepped["pemb_w"], prepped["seq_bias"], prepped["mask"],
      prepped["ln1_g"], prepped["ln1_b"], prepped["qkv_w"], prepped["qkv_b"],
      prepped["proj_w"], prepped["proj_b"], prepped["ln2_g"], prepped["ln2_b"],
      prepped["fc1_w"], prepped["fc1_b"], prepped["fc2_w"], prepped["fc2_b"],
      prepped["head_w"], prepped["head_b"])


# ----------------------------- parameter init ---------------------------------
def init_params(key):
    def nrm(k, shape, scale=0.02):
        return (scale * jax.random.normal(k, shape)).astype(jnp.float32)

    n_keys = 3 + N_LAYERS * 4 + 1
    keys = iter(jax.random.split(key, n_keys))

    params = {
        "proj_w": nrm(next(keys), (PATCH_DIM, D_MODEL)),
        "proj_b": jnp.zeros((D_MODEL,), jnp.float32),
        "cls_token": jnp.zeros((1, 1, D_MODEL), jnp.float32),
        "pos_embedding": jax.random.normal(
            next(keys), (1, SEQ, D_MODEL)).astype(jnp.float32),
        "head_w": nrm(next(keys), (D_MODEL, NUM_CLASSES)),
        "head_b": jnp.zeros((NUM_CLASSES,), jnp.float32),
        "layers": [],
    }
    for _ in range(N_LAYERS):
        layer = {
            "ln1_g": jnp.ones((D_MODEL,), jnp.float32),
            "ln1_b": jnp.zeros((D_MODEL,), jnp.float32),
            "qkv_w": nrm(next(keys), (D_MODEL, 3 * D_MODEL)),
            "qkv_b": jnp.zeros((3 * D_MODEL,), jnp.float32),
            "proj_w": nrm(next(keys), (D_MODEL, D_MODEL)),
            "proj_b": jnp.zeros((D_MODEL,), jnp.float32),
            "ln2_g": jnp.ones((D_MODEL,), jnp.float32),
            "ln2_b": jnp.zeros((D_MODEL,), jnp.float32),
            "fc1_w": nrm(next(keys), (D_MODEL, D_FF)),
            "fc1_b": jnp.zeros((D_FF,), jnp.float32),
            "fc2_w": nrm(next(keys), (D_FF, D_MODEL)),
            "fc2_b": jnp.zeros((D_MODEL,), jnp.float32),
        }
        params["layers"].append(layer)
    return params


# ----------------------------- main --------------------------------------------
if __name__ == "__main__":
    key = jax.random.PRNGKey(0)
    k_params, k_x = jax.random.split(key)
    params = init_params(k_params)
    x = jax.random.normal(k_x, (2, IN_CH, IMG_SIZE, IMG_SIZE)).astype(jnp.float32)

    # one-time parameter prep (bf16 cast, stacking, scale folding) outside jit
    prepped = prepare_params(params, batch_size=x.shape[0])

    logits = jax.jit(vit_forward)(x, prepped)
    logits = jax.block_until_ready(logits)
    assert logits.shape == (2, NUM_CLASSES)
    assert bool(jnp.all(jnp.isfinite(logits)))
    print("KERNEL_OK")
</pallas_src>

<mosaic_0001>
module attributes {stable_mosaic.version = 11 : i64} {
  func.func @_vit_fused_kernel(%arg0: memref<34x48xf32, #tpu.memory_space<vmem>>, %arg1: memref<48x32xbf16, #tpu.memory_space<vmem>>, %arg2: memref<34x32xf32, #tpu.memory_space<vmem>>, %arg3: memref<34x34xf32, #tpu.memory_space<vmem>>, %arg4: memref<2x1x32xf32, #tpu.memory_space<vmem>>, %arg5: memref<2x1x32xf32, #tpu.memory_space<vmem>>, %arg6: memref<2x32x96xbf16, #tpu.memory_space<vmem>>, %arg7: memref<2x1x96xf32, #tpu.memory_space<vmem>>, %arg8: memref<2x4x8x32xbf16, #tpu.memory_space<vmem>>, %arg9: memref<2x1x32xf32, #tpu.memory_space<vmem>>, %arg10: memref<2x1x32xf32, #tpu.memory_space<vmem>>, %arg11: memref<2x1x32xf32, #tpu.memory_space<vmem>>, %arg12: memref<2x32x128xbf16, #tpu.memory_space<vmem>>, %arg13: memref<2x1x128xf32, #tpu.memory_space<vmem>>, %arg14: memref<2x128x32xbf16, #tpu.memory_space<vmem>>, %arg15: memref<2x1x32xf32, #tpu.memory_space<vmem>>, %arg16: memref<32x10xf32, #tpu.memory_space<vmem>>, %arg17: memref<1x10xf32, #tpu.memory_space<vmem>>, %arg18: memref<2x10xf32, #tpu.memory_space<vmem>>) attributes {dimension_semantics = [], scalar_prefetch = 0 : i64, scratch_operands = 0 : i64, tpu.core_type = #tpu.core_type<tc>} {
    %c0 = arith.constant 0 : index
    %c0_0 = arith.constant 0 : index
    %0 = vector.load %arg0[%c0, %c0_0] : memref<34x48xf32, #tpu.memory_space<vmem>>, vector<34x48xf32>
    %1 = arith.truncf %0 : vector<34x48xf32> to vector<34x48xbf16>
    %c0_1 = arith.constant 0 : index
    %c0_2 = arith.constant 0 : index
    %2 = vector.load %arg1[%c0_1, %c0_2] : memref<48x32xbf16, #tpu.memory_space<vmem>>, vector<48x32xbf16>
    %cst = arith.constant dense<0.000000e+00> : vector<34x32xf32>
    %3 = tpu.matmul %1, %2, %cst {dimension_numbers = #tpu.dot_dimension_numbers<[1], [0], [0], [1], [0, 0, 1, 1], [], []>} : vector<34x48xbf16>, vector<48x32xbf16>, vector<34x32xf32> -> vector<34x32xf32>
    %c0_3 = arith.constant 0 : index
    %c0_4 = arith.constant 0 : index
    %4 = vector.load %arg2[%c0_3, %c0_4] : memref<34x32xf32, #tpu.memory_space<vmem>>, vector<34x32xf32>
    %5 = arith.addf %3, %4 : vector<34x32xf32>
    %c0_5 = arith.constant 0 : index
    %c0_6 = arith.constant 0 : index
    %6 = vector.load %arg3[%c0_5, %c0_6] : memref<34x34xf32, #tpu.memory_space<vmem>>, vector<34x34xf32>
    %c0_7 = arith.constant 0 : index
    %c0_8 = arith.constant 0 : index
    %c0_9 = arith.constant 0 : index
    %7 = vector.load %arg4[%c0_7, %c0_8, %c0_9] : memref<2x1x32xf32, #tpu.memory_space<vmem>>, vector<1x1x32xf32>
    %8 = vector.shape_cast %7 : vector<1x1x32xf32> to vector<1x32xf32>
    %c0_10 = arith.constant 0 : index
    %c0_11 = arith.constant 0 : index
    %c0_12 = arith.constant 0 : index
    %9 = vector.load %arg5[%c0_10, %c0_11, %c0_12] : memref<2x1x32xf32, #tpu.memory_space<vmem>>, vector<1x1x32xf32>
    %10 = vector.shape_cast %9 : vector<1x1x32xf32> to vector<1x32xf32>
    %cst_13 = arith.constant dense<0.000000e+00> : vector<34xf32>
    %11 = vector.multi_reduction <add>, %5, %cst_13 [1] : vector<34x32xf32> to vector<34xf32>
    %12 = vector.shape_cast %11 : vector<34xf32> to vector<34x1xf32>
    %cst_14 = arith.constant 3.200000e+01 : f32
    %13 = vector.broadcast %cst_14 : f32 to vector<34x1xf32>
    %14 = arith.divf %12, %13 : vector<34x1xf32>
    %15 = vector.broadcast %14 : vector<34x1xf32> to vector<34x32xf32>
    %16 = arith.subf %5, %15 : vector<34x32xf32>
    %17 = arith.mulf %16, %16 : vector<34x32xf32>
    %cst_15 = arith.constant dense<0.000000e+00> : vector<34xf32>
    %18 = vector.multi_reduction <add>, %17, %cst_15 [1] : vector<34x32xf32> to vector<34xf32>
    %19 = vector.shape_cast %18 : vector<34xf32> to vector<34x1xf32>
    %cst_16 = arith.constant 3.200000e+01 : f32
    %20 = vector.broadcast %cst_16 : f32 to vector<34x1xf32>
    %21 = arith.divf %19, %20 : vector<34x1xf32>
    %22 = vector.broadcast %14 : vector<34x1xf32> to vector<34x32xf32>
    %23 = arith.subf %5, %22 : vector<34x32xf32>
    %cst_17 = arith.constant 9.99999974E-6 : f32
    %24 = vector.broadcast %cst_17 : f32 to vector<34x1xf32>
    %25 = arith.addf %21, %24 : vector<34x1xf32>
    %26 = math.rsqrt %25 : vector<34x1xf32>
    %27 = vector.broadcast %26 : vector<34x1xf32> to vector<34x32xf32>
    %28 = arith.mulf %23, %27 : vector<34x32xf32>
    %29 = vector.broadcast %8 : vector<1x32xf32> to vector<34x32xf32>
    %30 = arith.mulf %28, %29 : vector<34x32xf32>
    %31 = vector.broadcast %10 : vector<1x32xf32> to vector<34x32xf32>
    %32 = arith.addf %30, %31 : vector<34x32xf32>
    %33 = arith.truncf %32 : vector<34x32xf32> to vector<34x32xbf16>
    %c0_18 = arith.constant 0 : index
    %c0_19 = arith.constant 0 : index
    %c0_20 = arith.constant 0 : index
    %34 = vector.load %arg6[%c0_18, %c0_19, %c0_20] : memref<2x32x96xbf16, #tpu.memory_space<vmem>>, vector<1x32x96xbf16>
    %35 = vector.shape_cast %34 : vector<1x32x96xbf16> to vector<32x96xbf16>
    %cst_21 = arith.constant dense<0.000000e+00> : vector<34x96xf32>
    %36 = tpu.matmul %33, %35, %cst_21 {dimension_numbers = #tpu.dot_dimension_numbers<[1], [0], [0], [1], [0, 0, 1, 1], [], []>} : vector<34x32xbf16>, vector<32x96xbf16>, vector<34x96xf32> -> vector<34x96xf32>
    %c0_22 = arith.constant 0 : index
    %c0_23 = arith.constant 0 : index
    %c0_24 = arith.constant 0 : index
    %37 = vector.load %arg7[%c0_22, %c0_23, %c0_24] : memref<2x1x96xf32, #tpu.memory_space<vmem>>, vector<1x1x96xf32>
    %38 = vector.shape_cast %37 : vector<1x1x96xf32> to vector<1x96xf32>
    %39 = vector.broadcast %38 : vector<1x96xf32> to vector<34x96xf32>
    %40 = arith.addf %36, %39 : vector<34x96xf32>
    %c0_25 = arith.constant 0 : index
    %c0_26 = arith.constant 0 : index
    %c0_27 = arith.constant 0 : index
    %c0_28 = arith.constant 0 : index
    %41 = vector.load %arg8[%c0_25, %c0_26, %c0_27, %c0_28] : memref<2x4x8x32xbf16, #tpu.memory_space<vmem>>, vector<1x4x8x32xbf16>
    %42 = vector.shape_cast %41 : vector<1x4x8x32xbf16> to vector<4x8x32xbf16>
    %43 = vector.extract_strided_slice %40 {offsets = [0, 0], sizes = [34, 8], strides = [1, 1]} : vector<34x96xf32> to vector<34x8xf32>
    %44 = arith.truncf %43 : vector<34x8xf32> to vector<34x8xbf16>
    %45 = vector.extract_strided_slice %40 {offsets = [0, 32], sizes = [34, 8], strides = [1, 1]} : vector<34x96xf32> to vector<34x8xf32>
    %46 = arith.truncf %45 : vector<34x8xf32> to vector<34x8xbf16>
    %47 = vector.extract_strided_slice %40 {offsets = [0, 64], sizes = [34, 8], strides = [1, 1]} : vector<34x96xf32> to vector<34x8xf32>
    %48 = arith.truncf %47 : vector<34x8xf32> to vector<34x8xbf16>
    %cst_29 = arith.constant dense<0.000000e+00> : vector<34x34xf32>
    %49 = tpu.matmul %44, %46, %cst_29 {dimension_numbers = #tpu.dot_dimension_numbers<[1], [1], [0], [0], [0, 0, 1, 0], [], []>} : vector<34x8xbf16>, vector<34x8xbf16>, vector<34x34xf32> -> vector<34x34xf32>
    %50 = arith.addf %49, %6 : vector<34x34xf32>
    %cst_30 = arith.constant dense<0xFF800000> : vector<34xf32>
    %51 = vector.multi_reduction <maximumf>, %50, %cst_30 [1] : vector<34x34xf32> to vector<34xf32>
    %52 = vector.shape_cast %51 : vector<34xf32> to vector<34x1xf32>
    %53 = vector.broadcast %52 : vector<34x1xf32> to vector<34x34xf32>
    %54 = arith.subf %50, %53 : vector<34x34xf32>
    %55 = math.exp %54 : vector<34x34xf32>
    %cst_31 = arith.constant dense<0.000000e+00> : vector<34xf32>
    %56 = vector.multi_reduction <add>, %55, %cst_31 [1] : vector<34x34xf32> to vector<34xf32>
    %57 = vector.shape_cast %56 : vector<34xf32> to vector<34x1xf32>
    %58 = tpu.reciprocal %57 : vector<34x1xf32> -> vector<34x1xf32>
    %59 = arith.truncf %55 : vector<34x34xf32> to vector<34x34xbf16>
    %cst_32 = arith.constant dense<0.000000e+00> : vector<34x8xf32>
    %60 = tpu.matmul %59, %48, %cst_32 {dimension_numbers = #tpu.dot_dimension_numbers<[1], [0], [0], [1], [0, 0, 1, 1], [], []>} : vector<34x34xbf16>, vector<34x8xbf16>, vector<34x8xf32> -> vector<34x8xf32>
    %61 = vector.broadcast %58 : vector<34x1xf32> to vector<34x8xf32>
    %62 = arith.mulf %60, %61 : vector<34x8xf32>
    %63 = arith.truncf %62 : vector<34x8xf32> to vector<34x8xbf16>
    %64 = vector.extract_strided_slice %42 {offsets = [0, 0, 0], sizes = [1, 8, 32], strides = [1, 1, 1]} : vector<4x8x32xbf16> to vector<1x8x32xbf16>
    %65 = vector.shape_cast %64 : vector<1x8x32xbf16> to vector<8x32xbf16>
    %cst_33 = arith.constant dense<0.000000e+00> : vector<34x32xf32>
    %66 = tpu.matmul %63, %65, %cst_33 {dimension_numbers = #tpu.dot_dimension_numbers<[1], [0], [0], [1], [0, 0, 1, 1], [], []>} : vector<34x8xbf16>, vector<8x32xbf16>, vector<34x32xf32> -> vector<34x32xf32>
    %67 = vector.extract_strided_slice %40 {offsets = [0, 8], sizes = [34, 8], strides = [1, 1]} : vector<34x96xf32> to vector<34x8xf32>
    %68 = arith.truncf %67 : vector<34x8xf32> to vector<34x8xbf16>
    %69 = vector.extract_strided_slice %40 {offsets = [0, 40], sizes = [34, 8], strides = [1, 1]} : vector<34x96xf32> to vector<34x8xf32>
    %70 = arith.truncf %69 : vector<34x8xf32> to vector<34x8xbf16>
    %71 = vector.extract_strided_slice %40 {offsets = [0, 72], sizes = [34, 8], strides = [1, 1]} : vector<34x96xf32> to vector<34x8xf32>
    %72 = arith.truncf %71 : vector<34x8xf32> to vector<34x8xbf16>
    %cst_34 = arith.constant dense<0.000000e+00> : vector<34x34xf32>
    %73 = tpu.matmul %68, %70, %cst_34 {dimension_numbers = #tpu.dot_dimension_numbers<[1], [1], [0], [0], [0, 0, 1, 0], [], []>} : vector<34x8xbf16>, vector<34x8xbf16>, vector<34x34xf32> -> vector<34x34xf32>
    %74 = arith.addf %73, %6 : vector<34x34xf32>
    %cst_35 = arith.constant dense<0xFF800000> : vector<34xf32>
    %75 = vector.multi_reduction <maximumf>, %74, %cst_35 [1] : vector<34x34xf32> to vector<34xf32>
    %76 = vector.shape_cast %75 : vector<34xf32> to vector<34x1xf32>
    %77 = vector.broadcast %76 : vector<34x1xf32> to vector<34x34xf32>
    %78 = arith.subf %74, %77 : vector<34x34xf32>
    %79 = math.exp %78 : vector<34x34xf32>
    %cst_36 = arith.constant dense<0.000000e+00> : vector<34xf32>
    %80 = vector.multi_reduction <add>, %79, %cst_36 [1] : vector<34x34xf32> to vector<34xf32>
    %81 = vector.shape_cast %80 : vector<34xf32> to vector<34x1xf32>
    %82 = tpu.reciprocal %81 : vector<34x1xf32> -> vector<34x1xf32>
    %83 = arith.truncf %79 : vector<34x34xf32> to vector<34x34xbf16>
    %cst_37 = arith.constant dense<0.000000e+00> : vector<34x8xf32>
    %84 = tpu.matmul %83, %72, %cst_37 {dimension_numbers = #tpu.dot_dimension_numbers<[1], [0], [0], [1], [0, 0, 1, 1], [], []>} : vector<34x34xbf16>, vector<34x8xbf16>, vector<34x8xf32> -> vector<34x8xf32>
    %85 = vector.broadcast %82 : vector<34x1xf32> to vector<34x8xf32>
    %86 = arith.mulf %84, %85 : vector<34x8xf32>
    %87 = arith.truncf %86 : vector<34x8xf32> to vector<34x8xbf16>
    %88 = vector.extract_strided_slice %42 {offsets = [1, 0, 0], sizes = [1, 8, 32], strides = [1, 1, 1]} : vector<4x8x32xbf16> to vector<1x8x32xbf16>
    %89 = vector.shape_cast %88 : vector<1x8x32xbf16> to vector<8x32xbf16>
    %cst_38 = arith.constant dense<0.000000e+00> : vector<34x32xf32>
    %90 = tpu.matmul %87, %89, %cst_38 {dimension_numbers = #tpu.dot_dimension_numbers<[1], [0], [0], [1], [0, 0, 1, 1], [], []>} : vector<34x8xbf16>, vector<8x32xbf16>, vector<34x32xf32> -> vector<34x32xf32>
    %91 = arith.addf %66, %90 : vector<34x32xf32>
    %92 = vector.extract_strided_slice %40 {offsets = [0, 16], sizes = [34, 8], strides = [1, 1]} : vector<34x96xf32> to vector<34x8xf32>
    %93 = arith.truncf %92 : vector<34x8xf32> to vector<34x8xbf16>
    %94 = vector.extract_strided_slice %40 {offsets = [0, 48], sizes = [34, 8], strides = [1, 1]} : vector<34x96xf32> to vector<34x8xf32>
    %95 = arith.truncf %94 : vector<34x8xf32> to vector<34x8xbf16>
    %96 = vector.extract_strided_slice %40 {offsets = [0, 80], sizes = [34, 8], strides = [1, 1]} : vector<34x96xf32> to vector<34x8xf32>
    %97 = arith.truncf %96 : vector<34x8xf32> to vector<34x8xbf16>
    %cst_39 = arith.constant dense<0.000000e+00> : vector<34x34xf32>
    %98 = tpu.matmul %93, %95, %cst_39 {dimension_numbers = #tpu.dot_dimension_numbers<[1], [1], [0], [0], [0, 0, 1, 0], [], []>} : vector<34x8xbf16>, vector<34x8xbf16>, vector<34x34xf32> -> vector<34x34xf32>
    %99 = arith.addf %98, %6 : vector<34x34xf32>
    %cst_40 = arith.constant dense<0xFF800000> : vector<34xf32>
    %100 = vector.multi_reduction <maximumf>, %99, %cst_40 [1] : vector<34x34xf32> to vector<34xf32>
    %101 = vector.shape_cast %100 : vector<34xf32> to vector<34x1xf32>
    %102 = vector.broadcast %101 : vector<34x1xf32> to vector<34x34xf32>
    %103 = arith.subf %99, %102 : vector<34x34xf32>
    %104 = math.exp %103 : vector<34x34xf32>
    %cst_41 = arith.constant dense<0.000000e+00> : vector<34xf32>
    %105 = vector.multi_reduction <add>, %104, %cst_41 [1] : vector<34x34xf32> to vector<34xf32>
    %106 = vector.shape_cast %105 : vector<34xf32> to vector<34x1xf32>
    %107 = tpu.reciprocal %106 : vector<34x1xf32> -> vector<34x1xf32>
    %108 = arith.truncf %104 : vector<34x34xf32> to vector<34x34xbf16>
    %cst_42 = arith.constant dense<0.000000e+00> : vector<34x8xf32>
    %109 = tpu.matmul %108, %97, %cst_42 {dimension_numbers = #tpu.dot_dimension_numbers<[1], [0], [0], [1], [0, 0, 1, 1], [], []>} : vector<34x34xbf16>, vector<34x8xbf16>, vector<34x8xf32> -> vector<34x8xf32>
    %110 = vector.broadcast %107 : vector<34x1xf32> to vector<34x8xf32>
    %111 = arith.mulf %109, %110 : vector<34x8xf32>
    %112 = arith.truncf %111 : vector<34x8xf32> to vector<34x8xbf16>
    %113 = vector.extract_strided_slice %42 {offsets = [2, 0, 0], sizes = [1, 8, 32], strides = [1, 1, 1]} : vector<4x8x32xbf16> to vector<1x8x32xbf16>
    %114 = vector.shape_cast %113 : vector<1x8x32xbf16> to vector<8x32xbf16>
    %cst_43 = arith.constant dense<0.000000e+00> : vector<34x32xf32>
    %115 = tpu.matmul %112, %114, %cst_43 {dimension_numbers = #tpu.dot_dimension_numbers<[1], [0], [0], [1], [0, 0, 1, 1], [], []>} : vector<34x8xbf16>, vector<8x32xbf16>, vector<34x32xf32> -> vector<34x32xf32>
    %116 = arith.addf %91, %115 : vector<34x32xf32>
    %117 = vector.extract_strided_slice %40 {offsets = [0, 24], sizes = [34, 8], strides = [1, 1]} : vector<34x96xf32> to vector<34x8xf32>
    %118 = arith.truncf %117 : vector<34x8xf32> to vector<34x8xbf16>
    %119 = vector.extract_strided_slice %40 {offsets = [0, 56], sizes = [34, 8], strides = [1, 1]} : vector<34x96xf32> to vector<34x8xf32>
    %120 = arith.truncf %119 : vector<34x8xf32> to vector<34x8xbf16>
    %121 = vector.extract_strided_slice %40 {offsets = [0, 88], sizes = [34, 8], strides = [1, 1]} : vector<34x96xf32> to vector<34x8xf32>
    %122 = arith.truncf %121 : vector<34x8xf32> to vector<34x8xbf16>
    %cst_44 = arith.constant dense<0.000000e+00> : vector<34x34xf32>
    %123 = tpu.matmul %118, %120, %cst_44 {dimension_numbers = #tpu.dot_dimension_numbers<[1], [1], [0], [0], [0, 0, 1, 0], [], []>} : vector<34x8xbf16>, vector<34x8xbf16>, vector<34x34xf32> -> vector<34x34xf32>
    %124 = arith.addf %123, %6 : vector<34x34xf32>
    %cst_45 = arith.constant dense<0xFF800000> : vector<34xf32>
    %125 = vector.multi_reduction <maximumf>, %124, %cst_45 [1] : vector<34x34xf32> to vector<34xf32>
    %126 = vector.shape_cast %125 : vector<34xf32> to vector<34x1xf32>
    %127 = vector.broadcast %126 : vector<34x1xf32> to vector<34x34xf32>
    %128 = arith.subf %124, %127 : vector<34x34xf32>
    %129 = math.exp %128 : vector<34x34xf32>
    %cst_46 = arith.constant dense<0.000000e+00> : vector<34xf32>
    %130 = vector.multi_reduction <add>, %129, %cst_46 [1] : vector<34x34xf32> to vector<34xf32>
    %131 = vector.shape_cast %130 : vector<34xf32> to vector<34x1xf32>
    %132 = tpu.reciprocal %131 : vector<34x1xf32> -> vector<34x1xf32>
    %133 = arith.truncf %129 : vector<34x34xf32> to vector<34x34xbf16>
    %cst_47 = arith.constant dense<0.000000e+00> : vector<34x8xf32>
    %134 = tpu.matmul %133, %122, %cst_47 {dimension_numbers = #tpu.dot_dimension_numbers<[1], [0], [0], [1], [0, 0, 1, 1], [], []>} : vector<34x34xbf16>, vector<34x8xbf16>, vector<34x8xf32> -> vector<34x8xf32>
    %135 = vector.broadcast %132 : vector<34x1xf32> to vector<34x8xf32>
    %136 = arith.mulf %134, %135 : vector<34x8xf32>
    %137 = arith.truncf %136 : vector<34x8xf32> to vector<34x8xbf16>
    %138 = vector.extract_strided_slice %42 {offsets = [3, 0, 0], sizes = [1, 8, 32], strides = [1, 1, 1]} : vector<4x8x32xbf16> to vector<1x8x32xbf16>
    %139 = vector.shape_cast %138 : vector<1x8x32xbf16> to vector<8x32xbf16>
    %cst_48 = arith.constant dense<0.000000e+00> : vector<34x32xf32>
    %140 = tpu.matmul %137, %139, %cst_48 {dimension_numbers = #tpu.dot_dimension_numbers<[1], [0], [0], [1], [0, 0, 1, 1], [], []>} : vector<34x8xbf16>, vector<8x32xbf16>, vector<34x32xf32> -> vector<34x32xf32>
    %141 = arith.addf %116, %140 : vector<34x32xf32>
    %142 = arith.addf %5, %141 : vector<34x32xf32>
    %c0_49 = arith.constant 0 : index
    %c0_50 = arith.constant 0 : index
    %c0_51 = arith.constant 0 : index
    %143 = vector.load %arg9[%c0_49, %c0_50, %c0_51] : memref<2x1x32xf32, #tpu.memory_space<vmem>>, vector<1x1x32xf32>
    %144 = vector.shape_cast %143 : vector<1x1x32xf32> to vector<1x32xf32>
    %145 = vector.broadcast %144 : vector<1x32xf32> to vector<34x32xf32>
    %146 = arith.addf %142, %145 : vector<34x32xf32>
    %c0_52 = arith.constant 0 : index
    %c0_53 = arith.constant 0 : index
    %c0_54 = arith.constant 0 : index
    %147 = vector.load %arg10[%c0_52, %c0_53, %c0_54] : memref<2x1x32xf32, #tpu.memory_space<vmem>>, vector<1x1x32xf32>
    %148 = vector.shape_cast %147 : vector<1x1x32xf32> to vector<1x32xf32>
    %c0_55 = arith.constant 0 : index
    %c0_56 = arith.constant 0 : index
    %c0_57 = arith.constant 0 : index
    %149 = vector.load %arg11[%c0_55, %c0_56, %c0_57] : memref<2x1x32xf32, #tpu.memory_space<vmem>>, vector<1x1x32xf32>
    %150 = vector.shape_cast %149 : vector<1x1x32xf32> to vector<1x32xf32>
    %cst_58 = arith.constant dense<0.000000e+00> : vector<34xf32>
    %151 = vector.multi_reduction <add>, %146, %cst_58 [1] : vector<34x32xf32> to vector<34xf32>
    %152 = vector.shape_cast %151 : vector<34xf32> to vector<34x1xf32>
    %cst_59 = arith.constant 3.200000e+01 : f32
    %153 = vector.broadcast %cst_59 : f32 to vector<34x1xf32>
    %154 = arith.divf %152, %153 : vector<34x1xf32>
    %155 = vector.broadcast %154 : vector<34x1xf32> to vector<34x32xf32>
    %156 = arith.subf %146, %155 : vector<34x32xf32>
    %157 = arith.mulf %156, %156 : vector<34x32xf32>
    %cst_60 = arith.constant dense<0.000000e+00> : vector<34xf32>
    %158 = vector.multi_reduction <add>, %157, %cst_60 [1] : vector<34x32xf32> to vector<34xf32>
    %159 = vector.shape_cast %158 : vector<34xf32> to vector<34x1xf32>
    %cst_61 = arith.constant 3.200000e+01 : f32
    %160 = vector.broadcast %cst_61 : f32 to vector<34x1xf32>
    %161 = arith.divf %159, %160 : vector<34x1xf32>
    %162 = vector.broadcast %154 : vector<34x1xf32> to vector<34x32xf32>
    %163 = arith.subf %146, %162 : vector<34x32xf32>
    %cst_62 = arith.constant 9.99999974E-6 : f32
    %164 = vector.broadcast %cst_62 : f32 to vector<34x1xf32>
    %165 = arith.addf %161, %164 : vector<34x1xf32>
    %166 = math.rsqrt %165 : vector<34x1xf32>
    %167 = vector.broadcast %166 : vector<34x1xf32> to vector<34x32xf32>
    %168 = arith.mulf %163, %167 : vector<34x32xf32>
    %169 = vector.broadcast %148 : vector<1x32xf32> to vector<34x32xf32>
    %170 = arith.mulf %168, %169 : vector<34x32xf32>
    %171 = vector.broadcast %150 : vector<1x32xf32> to vector<34x32xf32>
    %172 = arith.addf %170, %171 : vector<34x32xf32>
    %173 = arith.truncf %172 : vector<34x32xf32> to vector<34x32xbf16>
    %c0_63 = arith.constant 0 : index
    %c0_64 = arith.constant 0 : index
    %c0_65 = arith.constant 0 : index
    %174 = vector.load %arg12[%c0_63, %c0_64, %c0_65] : memref<2x32x128xbf16, #tpu.memory_space<vmem>>, vector<1x32x128xbf16>
    %175 = vector.shape_cast %174 : vector<1x32x128xbf16> to vector<32x128xbf16>
    %cst_66 = arith.constant dense<0.000000e+00> : vector<34x128xf32>
    %176 = tpu.matmul %173, %175, %cst_66 {dimension_numbers = #tpu.dot_dimension_numbers<[1], [0], [0], [1], [0, 0, 1, 1], [], []>} : vector<34x32xbf16>, vector<32x128xbf16>, vector<34x128xf32> -> vector<34x128xf32>
    %c0_67 = arith.constant 0 : index
    %c0_68 = arith.constant 0 : index
    %c0_69 = arith.constant 0 : index
    %177 = vector.load %arg13[%c0_67, %c0_68, %c0_69] : memref<2x1x128xf32, #tpu.memory_space<vmem>>, vector<1x1x128xf32>
    %178 = vector.shape_cast %177 : vector<1x1x128xf32> to vector<1x128xf32>
    %179 = vector.broadcast %178 : vector<1x128xf32> to vector<34x128xf32>
    %180 = arith.addf %176, %179 : vector<34x128xf32>
    %181 = arith.mulf %180, %180 : vector<34x128xf32>
    %182 = arith.mulf %180, %181 : vector<34x128xf32>
    %cst_70 = arith.constant 4.471500e-02 : f32
    %183 = vector.broadcast %cst_70 : f32 to vector<34x128xf32>
    %184 = arith.mulf %183, %182 : vector<34x128xf32>
    %185 = arith.addf %180, %184 : vector<34x128xf32>
    %cst_71 = arith.constant 0.797884583 : f32
    %186 = vector.broadcast %cst_71 : f32 to vector<34x128xf32>
    %187 = arith.mulf %186, %185 : vector<34x128xf32>
    %188 = math.tanh %187 : vector<34x128xf32>
    %cst_72 = arith.constant 1.000000e+00 : f32
    %189 = vector.broadcast %cst_72 : f32 to vector<34x128xf32>
    %190 = arith.addf %189, %188 : vector<34x128xf32>
    %cst_73 = arith.constant 5.000000e-01 : f32
    %191 = vector.broadcast %cst_73 : f32 to vector<34x128xf32>
    %192 = arith.mulf %191, %190 : vector<34x128xf32>
    %193 = arith.mulf %180, %192 : vector<34x128xf32>
    %194 = arith.truncf %193 : vector<34x128xf32> to vector<34x128xbf16>
    %c0_74 = arith.constant 0 : index
    %c0_75 = arith.constant 0 : index
    %c0_76 = arith.constant 0 : index
    %195 = vector.load %arg14[%c0_74, %c0_75, %c0_76] : memref<2x128x32xbf16, #tpu.memory_space<vmem>>, vector<1x128x32xbf16>
    %196 = vector.shape_cast %195 : vector<1x128x32xbf16> to vector<128x32xbf16>
    %cst_77 = arith.constant dense<0.000000e+00> : vector<34x32xf32>
    %197 = tpu.matmul %194, %196, %cst_77 {dimension_numbers = #tpu.dot_dimension_numbers<[1], [0], [0], [1], [0, 0, 1, 1], [], []>} : vector<34x128xbf16>, vector<128x32xbf16>, vector<34x32xf32> -> vector<34x32xf32>
    %c0_78 = arith.constant 0 : index
    %c0_79 = arith.constant 0 : index
    %c0_80 = arith.constant 0 : index
    %198 = vector.load %arg15[%c0_78, %c0_79, %c0_80] : memref<2x1x32xf32, #tpu.memory_space<vmem>>, vector<1x1x32xf32>
    %199 = vector.shape_cast %198 : vector<1x1x32xf32> to vector<1x32xf32>
    %200 = vector.broadcast %199 : vector<1x32xf32> to vector<34x32xf32>
    %201 = arith.addf %197, %200 : vector<34x32xf32>
    %202 = arith.addf %146, %201 : vector<34x32xf32>
    %c1 = arith.constant 1 : index
    %c0_81 = arith.constant 0 : index
    %c0_82 = arith.constant 0 : index
    %203 = vector.load %arg4[%c1, %c0_81, %c0_82] : memref<2x1x32xf32, #tpu.memory_space<vmem>>, vector<1x1x32xf32>
    %204 = vector.shape_cast %203 : vector<1x1x32xf32> to vector<1x32xf32>
    %c1_83 = arith.constant 1 : index
    %c0_84 = arith.constant 0 : index
    %c0_85 = arith.constant 0 : index
    %205 = vector.load %arg5[%c1_83, %c0_84, %c0_85] : memref<2x1x32xf32, #tpu.memory_space<vmem>>, vector<1x1x32xf32>
    %206 = vector.shape_cast %205 : vector<1x1x32xf32> to vector<1x32xf32>
    %cst_86 = arith.constant dense<0.000000e+00> : vector<34xf32>
    %207 = vector.multi_reduction <add>, %202, %cst_86 [1] : vector<34x32xf32> to vector<34xf32>
    %208 = vector.shape_cast %207 : vector<34xf32> to vector<34x1xf32>
    %cst_87 = arith.constant 3.200000e+01 : f32
    %209 = vector.broadcast %cst_87 : f32 to vector<34x1xf32>
    %210 = arith.divf %208, %209 : vector<34x1xf32>
    %211 = vector.broadcast %210 : vector<34x1xf32> to vector<34x32xf32>
    %212 = arith.subf %202, %211 : vector<34x32xf32>
    %213 = arith.mulf %212, %212 : vector<34x32xf32>
    %cst_88 = arith.constant dense<0.000000e+00> : vector<34xf32>
    %214 = vector.multi_reduction <add>, %213, %cst_88 [1] : vector<34x32xf32> to vector<34xf32>
    %215 = vector.shape_cast %214 : vector<34xf32> to vector<34x1xf32>
    %cst_89 = arith.constant 3.200000e+01 : f32
    %216 = vector.broadcast %cst_89 : f32 to vector<34x1xf32>
    %217 = arith.divf %215, %216 : vector<34x1xf32>
    %218 = vector.broadcast %210 : vector<34x1xf32> to vector<34x32xf32>
    %219 = arith.subf %202, %218 : vector<34x32xf32>
    %cst_90 = arith.constant 9.99999974E-6 : f32
    %220 = vector.broadcast %cst_90 : f32 to vector<34x1xf32>
    %221 = arith.addf %217, %220 : vector<34x1xf32>
    %222 = math.rsqrt %221 : vector<34x1xf32>
    %223 = vector.broadcast %222 : vector<34x1xf32> to vector<34x32xf32>
    %224 = arith.mulf %219, %223 : vector<34x32xf32>
    %225 = vector.broadcast %204 : vector<1x32xf32> to vector<34x32xf32>
    %226 = arith.mulf %224, %225 : vector<34x32xf32>
    %227 = vector.broadcast %206 : vector<1x32xf32> to vector<34x32xf32>
    %228 = arith.addf %226, %227 : vector<34x32xf32>
    %229 = arith.truncf %228 : vector<34x32xf32> to vector<34x32xbf16>
    %c1_91 = arith.constant 1 : index
    %c0_92 = arith.constant 0 : index
    %c0_93 = arith.constant 0 : index
    %230 = vector.load %arg6[%c1_91, %c0_92, %c0_93] : memref<2x32x96xbf16, #tpu.memory_space<vmem>>, vector<1x32x96xbf16>
    %231 = vector.shape_cast %230 : vector<1x32x96xbf16> to vector<32x96xbf16>
    %cst_94 = arith.constant dense<0.000000e+00> : vector<34x96xf32>
    %232 = tpu.matmul %229, %231, %cst_94 {dimension_numbers = #tpu.dot_dimension_numbers<[1], [0], [0], [1], [0, 0, 1, 1], [], []>} : vector<34x32xbf16>, vector<32x96xbf16>, vector<34x96xf32> -> vector<34x96xf32>
    %c1_95 = arith.constant 1 : index
    %c0_96 = arith.constant 0 : index
    %c0_97 = arith.constant 0 : index
    %233 = vector.load %arg7[%c1_95, %c0_96, %c0_97] : memref<2x1x96xf32, #tpu.memory_space<vmem>>, vector<1x1x96xf32>
    %234 = vector.shape_cast %233 : vector<1x1x96xf32> to vector<1x96xf32>
    %235 = vector.broadcast %234 : vector<1x96xf32> to vector<34x96xf32>
    %236 = arith.addf %232, %235 : vector<34x96xf32>
    %c1_98 = arith.constant 1 : index
    %c0_99 = arith.constant 0 : index
    %c0_100 = arith.constant 0 : index
    %c0_101 = arith.constant 0 : index
    %237 = vector.load %arg8[%c1_98, %c0_99, %c0_100, %c0_101] : memref<2x4x8x32xbf16, #tpu.memory_space<vmem>>, vector<1x4x8x32xbf16>
    %238 = vector.shape_cast %237 : vector<1x4x8x32xbf16> to vector<4x8x32xbf16>
    %239 = vector.extract_strided_slice %236 {offsets = [0, 0], sizes = [34, 8], strides = [1, 1]} : vector<34x96xf32> to vector<34x8xf32>
    %240 = arith.truncf %239 : vector<34x8xf32> to vector<34x8xbf16>
    %241 = vector.extract_strided_slice %236 {offsets = [0, 32], sizes = [34, 8], strides = [1, 1]} : vector<34x96xf32> to vector<34x8xf32>
    %242 = arith.truncf %241 : vector<34x8xf32> to vector<34x8xbf16>
    %243 = vector.extract_strided_slice %236 {offsets = [0, 64], sizes = [34, 8], strides = [1, 1]} : vector<34x96xf32> to vector<34x8xf32>
    %244 = arith.truncf %243 : vector<34x8xf32> to vector<34x8xbf16>
    %cst_102 = arith.constant dense<0.000000e+00> : vector<34x34xf32>
    %245 = tpu.matmul %240, %242, %cst_102 {dimension_numbers = #tpu.dot_dimension_numbers<[1], [1], [0], [0], [0, 0, 1, 0], [], []>} : vector<34x8xbf16>, vector<34x8xbf16>, vector<34x34xf32> -> vector<34x34xf32>
    %246 = arith.addf %245, %6 : vector<34x34xf32>
    %cst_103 = arith.constant dense<0xFF800000> : vector<34xf32>
    %247 = vector.multi_reduction <maximumf>, %246, %cst_103 [1] : vector<34x34xf32> to vector<34xf32>
    %248 = vector.shape_cast %247 : vector<34xf32> to vector<34x1xf32>
    %249 = vector.broadcast %248 : vector<34x1xf32> to vector<34x34xf32>
    %250 = arith.subf %246, %249 : vector<34x34xf32>
    %251 = math.exp %250 : vector<34x34xf32>
    %cst_104 = arith.constant dense<0.000000e+00> : vector<34xf32>
    %252 = vector.multi_reduction <add>, %251, %cst_104 [1] : vector<34x34xf32> to vector<34xf32>
    %253 = vector.shape_cast %252 : vector<34xf32> to vector<34x1xf32>
    %254 = tpu.reciprocal %253 : vector<34x1xf32> -> vector<34x1xf32>
    %255 = arith.truncf %251 : vector<34x34xf32> to vector<34x34xbf16>
    %cst_105 = arith.constant dense<0.000000e+00> : vector<34x8xf32>
    %256 = tpu.matmul %255, %244, %cst_105 {dimension_numbers = #tpu.dot_dimension_numbers<[1], [0], [0], [1], [0, 0, 1, 1], [], []>} : vector<34x34xbf16>, vector<34x8xbf16>, vector<34x8xf32> -> vector<34x8xf32>
    %257 = vector.broadcast %254 : vector<34x1xf32> to vector<34x8xf32>
    %258 = arith.mulf %256, %257 : vector<34x8xf32>
    %259 = arith.truncf %258 : vector<34x8xf32> to vector<34x8xbf16>
    %260 = vector.extract_strided_slice %238 {offsets = [0, 0, 0], sizes = [1, 8, 32], strides = [1, 1, 1]} : vector<4x8x32xbf16> to vector<1x8x32xbf16>
    %261 = vector.shape_cast %260 : vector<1x8x32xbf16> to vector<8x32xbf16>
    %cst_106 = arith.constant dense<0.000000e+00> : vector<34x32xf32>
    %262 = tpu.matmul %259, %261, %cst_106 {dimension_numbers = #tpu.dot_dimension_numbers<[1], [0], [0], [1], [0, 0, 1, 1], [], []>} : vector<34x8xbf16>, vector<8x32xbf16>, vector<34x32xf32> -> vector<34x32xf32>
    %263 = vector.extract_strided_slice %236 {offsets = [0, 8], sizes = [34, 8], strides = [1, 1]} : vector<34x96xf32> to vector<34x8xf32>
    %264 = arith.truncf %263 : vector<34x8xf32> to vector<34x8xbf16>
    %265 = vector.extract_strided_slice %236 {offsets = [0, 40], sizes = [34, 8], strides = [1, 1]} : vector<34x96xf32> to vector<34x8xf32>
    %266 = arith.truncf %265 : vector<34x8xf32> to vector<34x8xbf16>
    %267 = vector.extract_strided_slice %236 {offsets = [0, 72], sizes = [34, 8], strides = [1, 1]} : vector<34x96xf32> to vector<34x8xf32>
    %268 = arith.truncf %267 : vector<34x8xf32> to vector<34x8xbf16>
    %cst_107 = arith.constant dense<0.000000e+00> : vector<34x34xf32>
    %269 = tpu.matmul %264, %266, %cst_107 {dimension_numbers = #tpu.dot_dimension_numbers<[1], [1], [0], [0], [0, 0, 1, 0], [], []>} : vector<34x8xbf16>, vector<34x8xbf16>, vector<34x34xf32> -> vector<34x34xf32>
    %270 = arith.addf %269, %6 : vector<34x34xf32>
    %cst_108 = arith.constant dense<0xFF800000> : vector<34xf32>
    %271 = vector.multi_reduction <maximumf>, %270, %cst_108 [1] : vector<34x34xf32> to vector<34xf32>
    %272 = vector.shape_cast %271 : vector<34xf32> to vector<34x1xf32>
    %273 = vector.broadcast %272 : vector<34x1xf32> to vector<34x34xf32>
    %274 = arith.subf %270, %273 : vector<34x34xf32>
    %275 = math.exp %274 : vector<34x34xf32>
    %cst_109 = arith.constant dense<0.000000e+00> : vector<34xf32>
    %276 = vector.multi_reduction <add>, %275, %cst_109 [1] : vector<34x34xf32> to vector<34xf32>
    %277 = vector.shape_cast %276 : vector<34xf32> to vector<34x1xf32>
    %278 = tpu.reciprocal %277 : vector<34x1xf32> -> vector<34x1xf32>
    %279 = arith.truncf %275 : vector<34x34xf32> to vector<34x34xbf16>
    %cst_110 = arith.constant dense<0.000000e+00> : vector<34x8xf32>
    %280 = tpu.matmul %279, %268, %cst_110 {dimension_numbers = #tpu.dot_dimension_numbers<[1], [0], [0], [1], [0, 0, 1, 1], [], []>} : vector<34x34xbf16>, vector<34x8xbf16>, vector<34x8xf32> -> vector<34x8xf32>
    %281 = vector.broadcast %278 : vector<34x1xf32> to vector<34x8xf32>
    %282 = arith.mulf %280, %281 : vector<34x8xf32>
    %283 = arith.truncf %282 : vector<34x8xf32> to vector<34x8xbf16>
    %284 = vector.extract_strided_slice %238 {offsets = [1, 0, 0], sizes = [1, 8, 32], strides = [1, 1, 1]} : vector<4x8x32xbf16> to vector<1x8x32xbf16>
    %285 = vector.shape_cast %284 : vector<1x8x32xbf16> to vector<8x32xbf16>
    %cst_111 = arith.constant dense<0.000000e+00> : vector<34x32xf32>
    %286 = tpu.matmul %283, %285, %cst_111 {dimension_numbers = #tpu.dot_dimension_numbers<[1], [0], [0], [1], [0, 0, 1, 1], [], []>} : vector<34x8xbf16>, vector<8x32xbf16>, vector<34x32xf32> -> vector<34x32xf32>
    %287 = arith.addf %262, %286 : vector<34x32xf32>
    %288 = vector.extract_strided_slice %236 {offsets = [0, 16], sizes = [34, 8], strides = [1, 1]} : vector<34x96xf32> to vector<34x8xf32>
    %289 = arith.truncf %288 : vector<34x8xf32> to vector<34x8xbf16>
    %290 = vector.extract_strided_slice %236 {offsets = [0, 48], sizes = [34, 8], strides = [1, 1]} : vector<34x96xf32> to vector<34x8xf32>
    %291 = arith.truncf %290 : vector<34x8xf32> to vector<34x8xbf16>
    %292 = vector.extract_strided_slice %236 {offsets = [0, 80], sizes = [34, 8], strides = [1, 1]} : vector<34x96xf32> to vector<34x8xf32>
    %293 = arith.truncf %292 : vector<34x8xf32> to vector<34x8xbf16>
    %cst_112 = arith.constant dense<0.000000e+00> : vector<34x34xf32>
    %294 = tpu.matmul %289, %291, %cst_112 {dimension_numbers = #tpu.dot_dimension_numbers<[1], [1], [0], [0], [0, 0, 1, 0], [], []>} : vector<34x8xbf16>, vector<34x8xbf16>, vector<34x34xf32> -> vector<34x34xf32>
    %295 = arith.addf %294, %6 : vector<34x34xf32>
    %cst_113 = arith.constant dense<0xFF800000> : vector<34xf32>
    %296 = vector.multi_reduction <maximumf>, %295, %cst_113 [1] : vector<34x34xf32> to vector<34xf32>
    %297 = vector.shape_cast %296 : vector<34xf32> to vector<34x1xf32>
    %298 = vector.broadcast %297 : vector<34x1xf32> to vector<34x34xf32>
    %299 = arith.subf %295, %298 : vector<34x34xf32>
    %300 = math.exp %299 : vector<34x34xf32>
    %cst_114 = arith.constant dense<0.000000e+00> : vector<34xf32>
    %301 = vector.multi_reduction <add>, %300, %cst_114 [1] : vector<34x34xf32> to vector<34xf32>
    %302 = vector.shape_cast %301 : vector<34xf32> to vector<34x1xf32>
    %303 = tpu.reciprocal %302 : vector<34x1xf32> -> vector<34x1xf32>
    %304 = arith.truncf %300 : vector<34x34xf32> to vector<34x34xbf16>
    %cst_115 = arith.constant dense<0.000000e+00> : vector<34x8xf32>
    %305 = tpu.matmul %304, %293, %cst_115 {dimension_numbers = #tpu.dot_dimension_numbers<[1], [0], [0], [1], [0, 0, 1, 1], [], []>} : vector<34x34xbf16>, vector<34x8xbf16>, vector<34x8xf32> -> vector<34x8xf32>
    %306 = vector.broadcast %303 : vector<34x1xf32> to vector<34x8xf32>
    %307 = arith.mulf %305, %306 : vector<34x8xf32>
    %308 = arith.truncf %307 : vector<34x8xf32> to vector<34x8xbf16>
    %309 = vector.extract_strided_slice %238 {offsets = [2, 0, 0], sizes = [1, 8, 32], strides = [1, 1, 1]} : vector<4x8x32xbf16> to vector<1x8x32xbf16>
    %310 = vector.shape_cast %309 : vector<1x8x32xbf16> to vector<8x32xbf16>
    %cst_116 = arith.constant dense<0.000000e+00> : vector<34x32xf32>
    %311 = tpu.matmul %308, %310, %cst_116 {dimension_numbers = #tpu.dot_dimension_numbers<[1], [0], [0], [1], [0, 0, 1, 1], [], []>} : vector<34x8xbf16>, vector<8x32xbf16>, vector<34x32xf32> -> vector<34x32xf32>
    %312 = arith.addf %287, %311 : vector<34x32xf32>
    %313 = vector.extract_strided_slice %236 {offsets = [0, 24], sizes = [34, 8], strides = [1, 1]} : vector<34x96xf32> to vector<34x8xf32>
    %314 = arith.truncf %313 : vector<34x8xf32> to vector<34x8xbf16>
    %315 = vector.extract_strided_slice %236 {offsets = [0, 56], sizes = [34, 8], strides = [1, 1]} : vector<34x96xf32> to vector<34x8xf32>
    %316 = arith.truncf %315 : vector<34x8xf32> to vector<34x8xbf16>
    %317 = vector.extract_strided_slice %236 {offsets = [0, 88], sizes = [34, 8], strides = [1, 1]} : vector<34x96xf32> to vector<34x8xf32>
    %318 = arith.truncf %317 : vector<34x8xf32> to vector<34x8xbf16>
    %cst_117 = arith.constant dense<0.000000e+00> : vector<34x34xf32>
    %319 = tpu.matmul %314, %316, %cst_117 {dimension_numbers = #tpu.dot_dimension_numbers<[1], [1], [0], [0], [0, 0, 1, 0], [], []>} : vector<34x8xbf16>, vector<34x8xbf16>, vector<34x34xf32> -> vector<34x34xf32>
    %320 = arith.addf %319, %6 : vector<34x34xf32>
    %cst_118 = arith.constant dense<0xFF800000> : vector<34xf32>
    %321 = vector.multi_reduction <maximumf>, %320, %cst_118 [1] : vector<34x34xf32> to vector<34xf32>
    %322 = vector.shape_cast %321 : vector<34xf32> to vector<34x1xf32>
    %323 = vector.broadcast %322 : vector<34x1xf32> to vector<34x34xf32>
    %324 = arith.subf %320, %323 : vector<34x34xf32>
    %325 = math.exp %324 : vector<34x34xf32>
    %cst_119 = arith.constant dense<0.000000e+00> : vector<34xf32>
    %326 = vector.multi_reduction <add>, %325, %cst_119 [1] : vector<34x34xf32> to vector<34xf32>
    %327 = vector.shape_cast %326 : vector<34xf32> to vector<34x1xf32>
    %328 = tpu.reciprocal %327 : vector<34x1xf32> -> vector<34x1xf32>
    %329 = arith.truncf %325 : vector<34x34xf32> to vector<34x34xbf16>
    %cst_120 = arith.constant dense<0.000000e+00> : vector<34x8xf32>
    %330 = tpu.matmul %329, %318, %cst_120 {dimension_numbers = #tpu.dot_dimension_numbers<[1], [0], [0], [1], [0, 0, 1, 1], [], []>} : vector<34x34xbf16>, vector<34x8xbf16>, vector<34x8xf32> -> vector<34x8xf32>
    %331 = vector.broadcast %328 : vector<34x1xf32> to vector<34x8xf32>
    %332 = arith.mulf %330, %331 : vector<34x8xf32>
    %333 = arith.truncf %332 : vector<34x8xf32> to vector<34x8xbf16>
    %334 = vector.extract_strided_slice %238 {offsets = [3, 0, 0], sizes = [1, 8, 32], strides = [1, 1, 1]} : vector<4x8x32xbf16> to vector<1x8x32xbf16>
    %335 = vector.shape_cast %334 : vector<1x8x32xbf16> to vector<8x32xbf16>
    %cst_121 = arith.constant dense<0.000000e+00> : vector<34x32xf32>
    %336 = tpu.matmul %333, %335, %cst_121 {dimension_numbers = #tpu.dot_dimension_numbers<[1], [0], [0], [1], [0, 0, 1, 1], [], []>} : vector<34x8xbf16>, vector<8x32xbf16>, vector<34x32xf32> -> vector<34x32xf32>
    %337 = arith.addf %312, %336 : vector<34x32xf32>
    %338 = arith.addf %202, %337 : vector<34x32xf32>
    %c1_122 = arith.constant 1 : index
    %c0_123 = arith.constant 0 : index
    %c0_124 = arith.constant 0 : index
    %339 = vector.load %arg9[%c1_122, %c0_123, %c0_124] : memref<2x1x32xf32, #tpu.memory_space<vmem>>, vector<1x1x32xf32>
    %340 = vector.shape_cast %339 : vector<1x1x32xf32> to vector<1x32xf32>
    %341 = vector.broadcast %340 : vector<1x32xf32> to vector<34x32xf32>
    %342 = arith.addf %338, %341 : vector<34x32xf32>
    %c1_125 = arith.constant 1 : index
    %c0_126 = arith.constant 0 : index
    %c0_127 = arith.constant 0 : index
    %343 = vector.load %arg10[%c1_125, %c0_126, %c0_127] : memref<2x1x32xf32, #tpu.memory_space<vmem>>, vector<1x1x32xf32>
    %344 = vector.shape_cast %343 : vector<1x1x32xf32> to vector<1x32xf32>
    %c1_128 = arith.constant 1 : index
    %c0_129 = arith.constant 0 : index
    %c0_130 = arith.constant 0 : index
    %345 = vector.load %arg11[%c1_128, %c0_129, %c0_130] : memref<2x1x32xf32, #tpu.memory_space<vmem>>, vector<1x1x32xf32>
    %346 = vector.shape_cast %345 : vector<1x1x32xf32> to vector<1x32xf32>
    %cst_131 = arith.constant dense<0.000000e+00> : vector<34xf32>
    %347 = vector.multi_reduction <add>, %342, %cst_131 [1] : vector<34x32xf32> to vector<34xf32>
    %348 = vector.shape_cast %347 : vector<34xf32> to vector<34x1xf32>
    %cst_132 = arith.constant 3.200000e+01 : f32
    %349 = vector.broadcast %cst_132 : f32 to vector<34x1xf32>
    %350 = arith.divf %348, %349 : vector<34x1xf32>
    %351 = vector.broadcast %350 : vector<34x1xf32> to vector<34x32xf32>
    %352 = arith.subf %342, %351 : vector<34x32xf32>
    %353 = arith.mulf %352, %352 : vector<34x32xf32>
    %cst_133 = arith.constant dense<0.000000e+00> : vector<34xf32>
    %354 = vector.multi_reduction <add>, %353, %cst_133 [1] : vector<34x32xf32> to vector<34xf32>
    %355 = vector.shape_cast %354 : vector<34xf32> to vector<34x1xf32>
    %cst_134 = arith.constant 3.200000e+01 : f32
    %356 = vector.broadcast %cst_134 : f32 to vector<34x1xf32>
    %357 = arith.divf %355, %356 : vector<34x1xf32>
    %358 = vector.broadcast %350 : vector<34x1xf32> to vector<34x32xf32>
    %359 = arith.subf %342, %358 : vector<34x32xf32>
    %cst_135 = arith.constant 9.99999974E-6 : f32
    %360 = vector.broadcast %cst_135 : f32 to vector<34x1xf32>
    %361 = arith.addf %357, %360 : vector<34x1xf32>
    %362 = math.rsqrt %361 : vector<34x1xf32>
    %363 = vector.broadcast %362 : vector<34x1xf32> to vector<34x32xf32>
    %364 = arith.mulf %359, %363 : vector<34x32xf32>
    %365 = vector.broadcast %344 : vector<1x32xf32> to vector<34x32xf32>
    %366 = arith.mulf %364, %365 : vector<34x32xf32>
    %367 = vector.broadcast %346 : vector<1x32xf32> to vector<34x32xf32>
    %368 = arith.addf %366, %367 : vector<34x32xf32>
    %369 = arith.truncf %368 : vector<34x32xf32> to vector<34x32xbf16>
    %c1_136 = arith.constant 1 : index
    %c0_137 = arith.constant 0 : index
    %c0_138 = arith.constant 0 : index
    %370 = vector.load %arg12[%c1_136, %c0_137, %c0_138] : memref<2x32x128xbf16, #tpu.memory_space<vmem>>, vector<1x32x128xbf16>
    %371 = vector.shape_cast %370 : vector<1x32x128xbf16> to vector<32x128xbf16>
    %cst_139 = arith.constant dense<0.000000e+00> : vector<34x128xf32>
    %372 = tpu.matmul %369, %371, %cst_139 {dimension_numbers = #tpu.dot_dimension_numbers<[1], [0], [0], [1], [0, 0, 1, 1], [], []>} : vector<34x32xbf16>, vector<32x128xbf16>, vector<34x128xf32> -> vector<34x128xf32>
    %c1_140 = arith.constant 1 : index
    %c0_141 = arith.constant 0 : index
    %c0_142 = arith.constant 0 : index
    %373 = vector.load %arg13[%c1_140, %c0_141, %c0_142] : memref<2x1x128xf32, #tpu.memory_space<vmem>>, vector<1x1x128xf32>
    %374 = vector.shape_cast %373 : vector<1x1x128xf32> to vector<1x128xf32>
    %375 = vector.broadcast %374 : vector<1x128xf32> to vector<34x128xf32>
    %376 = arith.addf %372, %375 : vector<34x128xf32>
    %377 = arith.mulf %376, %376 : vector<34x128xf32>
    %378 = arith.mulf %376, %377 : vector<34x128xf32>
    %cst_143 = arith.constant 4.471500e-02 : f32
    %379 = vector.broadcast %cst_143 : f32 to vector<34x128xf32>
    %380 = arith.mulf %379, %378 : vector<34x128xf32>
    %381 = arith.addf %376, %380 : vector<34x128xf32>
    %cst_144 = arith.constant 0.797884583 : f32
    %382 = vector.broadcast %cst_144 : f32 to vector<34x128xf32>
    %383 = arith.mulf %382, %381 : vector<34x128xf32>
    %384 = math.tanh %383 : vector<34x128xf32>
    %cst_145 = arith.constant 1.000000e+00 : f32
    %385 = vector.broadcast %cst_145 : f32 to vector<34x128xf32>
    %386 = arith.addf %385, %384 : vector<34x128xf32>
    %cst_146 = arith.constant 5.000000e-01 : f32
    %387 = vector.broadcast %cst_146 : f32 to vector<34x128xf32>
    %388 = arith.mulf %387, %386 : vector<34x128xf32>
    %389 = arith.mulf %376, %388 : vector<34x128xf32>
    %390 = arith.truncf %389 : vector<34x128xf32> to vector<34x128xbf16>
    %c1_147 = arith.constant 1 : index
    %c0_148 = arith.constant 0 : index
    %c0_149 = arith.constant 0 : index
    %391 = vector.load %arg14[%c1_147, %c0_148, %c0_149] : memref<2x128x32xbf16, #tpu.memory_space<vmem>>, vector<1x128x32xbf16>
    %392 = vector.shape_cast %391 : vector<1x128x32xbf16> to vector<128x32xbf16>
    %cst_150 = arith.constant dense<0.000000e+00> : vector<34x32xf32>
    %393 = tpu.matmul %390, %392, %cst_150 {dimension_numbers = #tpu.dot_dimension_numbers<[1], [0], [0], [1], [0, 0, 1, 1], [], []>} : vector<34x128xbf16>, vector<128x32xbf16>, vector<34x32xf32> -> vector<34x32xf32>
    %c1_151 = arith.constant 1 : index
    %c0_152 = arith.constant 0 : index
    %c0_153 = arith.constant 0 : index
    %394 = vector.load %arg15[%c1_151, %c0_152, %c0_153] : memref<2x1x32xf32, #tpu.memory_space<vmem>>, vector<1x1x32xf32>
    %395 = vector.shape_cast %394 : vector<1x1x32xf32> to vector<1x32xf32>
    %396 = vector.broadcast %395 : vector<1x32xf32> to vector<34x32xf32>
    %397 = arith.addf %393, %396 : vector<34x32xf32>
    %398 = arith.addf %342, %397 : vector<34x32xf32>
    %399 = vector.extract_strided_slice %398 {offsets = [32, 0], sizes = [2, 32], strides = [1, 1]} : vector<34x32xf32> to vector<2x32xf32>
    %c0_154 = arith.constant 0 : index
    %c0_155 = arith.constant 0 : index
    %400 = vector.load %arg16[%c0_154, %c0_155] : memref<32x10xf32, #tpu.memory_space<vmem>>, vector<32x10xf32>
    %cst_156 = arith.constant dense<0.000000e+00> : vector<2x10xf32>
    %401 = tpu.matmul %399, %400, %cst_156 {dimension_numbers = #tpu.dot_dimension_numbers<[1], [0], [0], [1], [0, 0, 1, 1], [], []>} : vector<2x32xf32>, vector<32x10xf32>, vector<2x10xf32> -> vector<2x10xf32>
    %c0_157 = arith.constant 0 : index
    %c0_158 = arith.constant 0 : index
    %402 = vector.load %arg17[%c0_157, %c0_158] : memref<1x10xf32, #tpu.memory_space<vmem>>, vector<1x10xf32>
    %403 = vector.broadcast %402 : vector<1x10xf32> to vector<2x10xf32>
    %404 = arith.addf %401, %403 : vector<2x10xf32>
    %c0_159 = arith.constant 0 : index
    %c0_160 = arith.constant 0 : index
    %405 = vector.load %arg18[%c0_159, %c0_160] : memref<2x10xf32, #tpu.memory_space<vmem>>, vector<2x10xf32>
    tpu.vector_store %arg18[%c0_159, %c0_160], %404 {strides = array<i32>} : memref<2x10xf32, #tpu.memory_space<vmem>>, vector<2x10xf32>,
    return
  }
}

</mosaic_0001>

<bundles_post_ra>
// kernel: vit_forward.1
= control target key start
LH: loop header
LB: loop body
LE: loop exit
PB: predicated region body
PF: predicated region fallthrough
CT: control target
= control target key end

     0   :  { %s6320_s0 = inlined_call_operand.vmem [shape: f32[34,48], index: 0, kind: input, shape index: {}]   ;;  %s6321_s1 = inlined_call_operand.vmem [shape: bf16[48,32], index: 1, kind: input, shape index: {}]   ;;  %s6322_s2 = inlined_call_operand.vmem [shape: f32[34,32], index: 2, kind: input, shape index: {}]   ;;  %s6323_s3 = inlined_call_operand.vmem [shape: f32[34,34], index: 3, kind: input, shape index: {}]   ;;  %s6324_s4 = inlined_call_operand.vmem [shape: f32[2,1,32], index: 4, kind: input, shape index: {}]   ;;  %s6325_s5 = inlined_call_operand.vmem [shape: f32[2,1,32], index: 5, kind: input, shape index: {}]   ;;  %s6326_s6 = inlined_call_operand.vmem [shape: bf16[2,32,96], index: 6, kind: input, shape index: {}]   ;;  %s6327_s7 = inlined_call_operand.vmem [shape: f32[2,1,96], index: 7, kind: input, shape index: {}]   ;;  %s6328_s8 = inlined_call_operand.vmem [shape: bf16[2,4,8,32], index: 8, kind: input, shape index: {}]   ;;  %s6329_s9 = inlined_call_operand.vmem [shape: f32[2,1,32], index: 9, kind: input, shape index: {}]   ;;  %s6330_s10 = inlined_call_operand.vmem [shape: f32[2,1,32], index: 10, kind: input, shape index: {}]   ;;  %s6331_s11 = inlined_call_operand.vmem [shape: f32[2,1,32], index: 11, kind: input, shape index: {}]   ;;  %s6332_s12 = inlined_call_operand.vmem [shape: bf16[2,32,128], index: 12, kind: input, shape index: {}]   ;;  %s6333_s13 = inlined_call_operand.vmem [shape: f32[2,1,128], index: 13, kind: input, shape index: {}]   ;;  %s6334_s14 = inlined_call_operand.vmem [shape: bf16[2,128,32], index: 14, kind: input, shape index: {}]   ;;  %s6335_s15 = inlined_call_operand.vmem [shape: f32[2,1,32], index: 15, kind: input, shape index: {}]   ;;  %s6336_s16 = inlined_call_operand.vmem [shape: f32[32,10], index: 16, kind: input, shape index: {}]   ;;  %s6337_s17 = inlined_call_operand.vmem [shape: f32[1,10], index: 17, kind: input, shape index: {}]   ;;  %s6338_s18 = inlined_call_operand.hbm [shape: f32[2,10], index: 18, kind: output, shape index: {}]  }
   0x1   :  { %6348 = sst [smem:[#allocation5_spill]] %s6320_s0 }
   0x2   :  { %6349 = sst [smem:[#allocation6_spill]] %s6321_s1 }
   0x3   :  { %6350 = sst [smem:[#allocation7_spill]] %s6322_s2 }
   0x4   :  { %s6351_s29 = sld [smem:[#allocation6_spill]]  ;;  %v4952_v1 = vmov 0.0   ;;  %vm4953_vm0 = vmmov 0   ;;  %s6352_s22 = sld [smem:[#allocation5_spill]]  ;;  %vm98_vm1 = vcmask 392192  }
   0x5   :  { %4100 = vmatprep.subr.bf16.mxu0 %v4952_v1  ;;  %4118 = vmatprep.subr.bf16.mxu1 %v4952_v1 }
   0x6   :  { %4106 = vmatprep.mubr.msk.bf16.mxu0 %vm4953_vm0, %v4952_v1  ;;  %4122 = vmatprep.mubr.msk.bf16.mxu1 %vm4953_vm0, %v4952_v1 }
   0xa   :  { %v4676_v0 = vld [vmem:[%s6351_s29] sm:$0xff]   ;;  %v4677_v2 = vld [vmem:[%s6351_s29 + $0x8] sm:$0xff]   ;;  %v4678_v3 = vld [vmem:[%s6351_s29 + $0x10] sm:$0xff]  }
   0xb   :  { %4101 = vmatpush3.bf16.msra.mxu0 %v4676_v0  ;;  %v61_v4 = vld [vmem:[%s6352_s22] sm:$0xff]  ;;  %v62_v5 = vld [vmem:[%s6352_s22 + $0x8] sm:$0xff]  ;;  %v63_v7 = vld [vmem:[%s6352_s22 + $0x10] sm:$0xff] }
   0xc   :  { %4102 = vmatprep.subr.bf16.mxu0 %v4952_v1  ;;  %v66_v6 = vpack.c.bf16 %v62_v5, %v61_v4  ;;  %v64_v8 = vld [vmem:[%s6352_s22 + $0x18] sm:$0xff] }
   0xd   :  { %v67_v9 = vpack.c.bf16 %v64_v8, %v63_v7 }
   0xf   :  { %4103 = vmatpush3.bf16.msra.mxu0 %v4677_v2 }
  0x10   :  { %4104 = vmatprep.subr.bf16.mxu0 %v4952_v1 }
  0x13   :  { %4105 = vmatpush3.bf16.msra.mxu0 %v4678_v3 }
  0x14   :  { %4152 = vmatprep.subr.bf16.mxu0 %v4952_v1 }
  0x16   :  { %4107 = vmatmul.mubr.msk.bf16.vlgmr.msra.gmra.mrb[0].mxu0 %vm98_vm1, %v66_v6 }
  0x17   :  { %4110 = vmatprep.mubr.msk.bf16.mxu0 %vm4953_vm0, %v4952_v1 }
  0x1e   :  { %4111 = vmatmul.mubr.msk.bf16.gmra.mrb[4].mxu0 %vm98_vm1, %v67_v9 }
  0x1f   :  { %23 = vsyncpa [#allocation3], 0  ;;  %4114 = vmatprep.mubr.msk.bf16.mxu0 %vm4953_vm0, %v4952_v1  ;;  %v65_v10 = vld [vmem:[%s6352_s22 + $0x20] sm:$0x3]  ;;  %s6353_s19 = sld [smem:[#allocation7_spill]]  ;;  %vm171_vm2 = vcmask 261120  }
  0x20   :  { %v68_v11 = vpack.c.bf16 %v65_v10, %v65_v10  ;;  %vm184_vm3 = vcmask 254976   ;;  %v4679_v0 = vld [vmem:[%s6326_s6] sm:$0xff]   ;;  %v4680_v2 = vld [vmem:[%s6326_s6 + $0x8] sm:$0xff]   ;;  %s4954_s22 = smov 96   ;;  %s4955_s2 = smov 88   ;;  %vm368_vm4 = vcmask 64512  }
  0x21   :  { %4119 = vmatpush3.bf16.msra.mxu1 %v4679_v0  ;;  %s4956_s23 = smov 120   ;;  %s4957_s24 = smov 64   ;;  %vm443_vm5 = vcmask 277504   ;;  %vm456_vm6 = vcmask 271360   ;;  %vm515_vm7 = vcmask 1040384   ;;  %vm815_vm8 = vcmask 1043456  }
  0x22   :  { %4120 = vmatprep.subr.bf16.mxu1 %v4952_v1  ;;  %s4958_s21 = smov 56   ;;  %s4959_s25 = smov 80   ;;  %vm3735_vm9 = vcmask 74752  }
  0x23   :  { %s4960_s26 = smov 112   ;;  %s4961_s29 = smov 48  }
  0x24   :  { %s6344_s1 = smov 104   ;;  %s6342_s20 = smov 40  }
  0x25   :  { %v75_v12 = vld [vmem:[%s6353_s19] sm:$0xff]  ;;  %v76_v14 = vld [vmem:[%s6353_s19 + $0x8] sm:$0xff]  ;;  %v77_v21 = vld [vmem:[%s6353_s19 + $0x10] sm:$0xff]  ;;  %4121 = vmatpush3.bf16.msra.mxu1 %v4680_v2 }
  0x26   :  { %4115 = vmatmul.mubr.msk.bf16.gmra.mrb[8].mxu0 %vm98_vm1, %v68_v11  ;;  %v78_v24 = vld [vmem:[%s6353_s19 + $0x18] sm:$0xff]  ;;  %v79_v31 = vld [vmem:[%s6353_s19 + $0x20] sm:$0x3]  ;;  %4134 = vmatprep.subr.bf16.mxu1 %v4952_v1  ;;  %s6346_s19 = smov 72  }
  0x27   :  { %4158 = vmatprep.mubr.msk.bf16.mxu0 %vm4953_vm0, %v4952_v1 }
  0xe9   :  { %v142_v13 = vpop.f32.mrb[0].mxu0 }
  0xea   :  { %v5110_v15 = vadd.f32 %v142_v13, %v75_v12  ;;  %v4108_v16 = vpop.f32.mrb[1].mxu0 }
  0xeb   :  { %v145_v17 = vpop.f32.mrb[2].mxu0 }
  0xec   :  { %v5112_v18 = vadd.f32 %v145_v17, %v76_v14  ;;  %v4109_v19 = vpop.f32.mrb[3].mxu0  ;;  %v172_v20 = vsel %vm171_vm2, %v5110_v15, 0.0 }
  0xed   :  { %173 = vadd.xlane.f32.xlu0 %v172_v20 }
  0xee   :  { %v175_v22 = vsel %vm171_vm2, %v5112_v18, 0.0 }
  0xf1   :  { %176 = vadd.xlane.f32.xlu0 %v175_v22  ;;  %v150_v23 = vpop.f32.mrb[4].mxu0 }
  0xf2   :  { %v5124_v25 = vadd.f32 %v150_v23, %v77_v21  ;;  %v4112_v26 = vpop.f32.mrb[5].mxu0  ;;  %v3757_v21 = vld [vmem:[%s6324_s4] ss:$0 sm:$0xff] }
  0xf3   :  { %v153_v27 = vpop.f32.mrb[6].mxu0 }
  0xf4   :  { %v5126_v28 = vadd.f32 %v153_v27, %v78_v24  ;;  %v4113_v29 = vpop.f32.mrb[7].mxu0  ;;  %v178_v30 = vsel %vm171_vm2, %v5124_v25, 0.0  ;;  %v3758_v27 = vld [vmem:[%s6325_s5] ss:$0 sm:$0xff] }
  0xf5   :  { %179 = vadd.xlane.f32.xlu1 %v178_v30 }
  0xf6   :  { %v181_v32 = vsel %vm171_vm2, %v5126_v28, 0.0 }
  0xf9   :  { %182 = vadd.xlane.f32.xlu1 %v181_v32  ;;  %v158_v33 = vpop.f32.mrb[8].mxu0 }
  0xfa   :  { %v5135_v34 = vadd.f32 %v158_v33, %v79_v31  ;;  %v4116_v35 = vpop.f32.mrb[9].mxu0 }
  0xfb   :  { %v161_v36 = vpop.f32.mrb[10].mxu0 }
  0xfc   :  { %v185_v37 = vsel %vm184_vm3, %v5135_v34, 0.0  ;;  %v4117_v38 = vpop.f32.mrb[11].mxu0 }
  0xfd   :  { %186 = vadd.xlane.f32.xlu0 %v185_v37 }
 0x17a   :  { %v174_v39 = vpop.xlane.xlu0 %173 }
 0x17b   :  { %v189_v40 = vmul.f32 0.03125, %v174_v39 }
 0x17d   :  { %v194_v41 = vsub.f32 %v5110_v15, %v189_v40 }
 0x17e   :  { %v177_v42 = vpop.xlane.xlu0 %176 }
 0x17f   :  { %v190_v43 = vmul.f32 0.03125, %v177_v42  ;;  %v199_v44 = vmul.f32 %v194_v41, %v194_v41 }
 0x181   :  { %v195_v45 = vsub.f32 %v5112_v18, %v190_v43  ;;  %v204_v46 = vsel %vm171_vm2, %v199_v44, 0.0 }
 0x182   :  { %v180_v47 = vpop.xlane.xlu1 %179  ;;  %205 = vadd.xlane.f32.xlu1 %v204_v46 }
 0x183   :  { %v191_v48 = vmul.f32 0.03125, %v180_v47  ;;  %v200_v49 = vmul.f32 %v195_v45, %v195_v45 }
 0x185   :  { %v196_v50 = vsub.f32 %v5124_v25, %v191_v48  ;;  %v207_v51 = vsel %vm171_vm2, %v200_v49, 0.0  ;;  %v3759_v48 = vld [vmem:[%s6327_s7] ss:$0 sm:$0xff] }
 0x186   :  { %v183_v52 = vpop.xlane.xlu1 %182  ;;  %208 = vadd.xlane.f32.xlu0 %v207_v51 }
 0x187   :  { %v192_v53 = vmul.f32 0.03125, %v183_v52  ;;  %v201_v54 = vmul.f32 %v196_v50, %v196_v50 }
 0x189   :  { %v197_v55 = vsub.f32 %v5126_v28, %v192_v53  ;;  %v210_v56 = vsel %vm171_vm2, %v201_v54, 0.0 }
 0x18a   :  { %211 = vadd.xlane.f32.xlu1 %v210_v56  ;;  %v187_v57 = vpop.xlane.xlu0 %186 }
 0x18b   :  { %v193_v58 = vmul.f32 0.03125, %v187_v57  ;;  %v202_v59 = vmul.f32 %v197_v55, %v197_v55 }
 0x18d   :  { %v198_v60 = vsub.f32 %v5135_v34, %v193_v58  ;;  %v213_v61 = vsel %vm171_vm2, %v202_v59, 0.0 }
 0x18e   :  { %214 = vadd.xlane.f32.xlu0 %v213_v61 }
 0x18f   :  { %v203_v62 = vmul.f32 %v198_v60, %v198_v60 }
 0x191   :  { %v216_v63 = vsel %vm184_vm3, %v203_v62, 0.0 }
 0x192   :  { %217 = vadd.xlane.f32.xlu1 %v216_v63 }
 0x20f   :  { %v206_v3 = vpop.xlane.xlu1 %205 }
 0x210   :  { %v219_v4 = vmul.f32 0.03125, %v206_v3 }
 0x212   :  { %v224_v5 = vadd.f32 1e-05, %v219_v4 }
 0x213   :  { %v209_v6 = vpop.xlane.xlu0 %208 }
 0x214   :  { %4703 = vrsqrt.f32 %v224_v5  ;;  %v220_v7 = vmul.f32 0.03125, %v209_v6 }
 0x216   :  { %v225_v8 = vadd.f32 1e-05, %v220_v7 }
 0x217   :  { %v212_v9 = vpop.xlane.xlu1 %211 }
 0x218   :  { %4705 = vrsqrt.f32 %v225_v8  ;;  %v221_v10 = vmul.f32 0.03125, %v212_v9 }
 0x21a   :  { %v226_v11 = vadd.f32 1e-05, %v221_v10 }
 0x21b   :  { %v215_v12 = vpop.xlane.xlu0 %214 }
 0x21c   :  { %4707 = vrsqrt.f32 %v226_v11  ;;  %v222_v13 = vmul.f32 0.03125, %v215_v12 }
 0x21e   :  { %v4704_v14 = vpop.eup %4703  ;;  %v227_v16 = vadd.f32 1e-05, %v222_v13 }
 0x21f   :  { %v218_v17 = vpop.xlane.xlu1 %217  ;;  %v234_v19 = vmul.f32 %v4704_v14, %v194_v41 }
 0x220   :  { %4709 = vrsqrt.f32 %v227_v16  ;;  %v223_v20 = vmul.f32 0.03125, %v218_v17 }
 0x221   :  { %v245_v26 = vmul.f32 %v3757_v21, %v234_v19 }
 0x222   :  { %v4706_v22 = vpop.eup %4705  ;;  %v228_v23 = vadd.f32 1e-05, %v223_v20 }
 0x223   :  { %v235_v24 = vmul.f32 %v4706_v22, %v195_v45  ;;  %v256_v31 = vadd.f32 %v3758_v27, %v245_v26  ;;  %v5241_v26 = vld [vmem:[%s6323_s3] sm:$0xff] }
 0x224   :  { %4711 = vrsqrt.f32 %v228_v23 }
 0x225   :  { %v246_v29 = vmul.f32 %v3757_v21, %v235_v24 }
 0x226   :  { %v4708_v30 = vpop.eup %4707 }
 0x227   :  { %v257_v32 = vadd.f32 %v3758_v27, %v246_v29  ;;  %v236_v33 = vmul.f32 %v4708_v30, %v196_v50  ;;  %v5246_v29 = vld [vmem:[%s6323_s3 + $0x8] sm:$0xff] }
 0x229   :  { %v261_v35 = vpack.c.bf16 %v257_v32, %v256_v31  ;;  %v247_v38 = vmul.f32 %v3757_v21, %v236_v33 }
 0x22a   :  { %v4710_v36 = vpop.eup %4709 }
 0x22b   :  { %4123 = vmatmul.mubr.msk.bf16.vlgmr.msra.gmra.mrb[0].mxu1 %vm171_vm2, %v261_v35  ;;  %v237_v37 = vmul.f32 %v4710_v36, %v197_v55  ;;  %v258_v41 = vadd.f32 %v3758_v27, %v247_v38  ;;  %v5261_v38 = vld [vmem:[%s6323_s3 + $0x10] sm:$0xff] }
 0x22c   :  { %4126 = vmatprep.mubr.msk.bf16.mxu1 %vm4953_vm0, %v4952_v1 }
 0x22d   :  { %v248_v39 = vmul.f32 %v3757_v21, %v237_v37 }
 0x22e   :  { %v4712_v40 = vpop.eup %4711 }
 0x22f   :  { %v259_v42 = vadd.f32 %v3758_v27, %v248_v39  ;;  %v238_v43 = vmul.f32 %v4712_v40, %v198_v60  ;;  %v5266_v40 = vld [vmem:[%s6323_s3 + $0x18] sm:$0xff] }
 0x231   :  { %v262_v44 = vpack.c.bf16 %v259_v42, %v258_v41  ;;  %v249_v45 = vmul.f32 %v3757_v21, %v238_v43 }
 0x233   :  { %4127 = vmatmul.mubr.msk.bf16.gmra.mrb[4].mxu1 %vm171_vm2, %v262_v44  ;;  %v260_v46 = vadd.f32 %v3758_v27, %v249_v45 }
 0x234   :  { %4130 = vmatprep.mubr.msk.bf16.mxu1 %vm4953_vm0, %v4952_v1 }
 0x235   :  { %v263_v47 = vpack.c.bf16 %v260_v46, %v260_v46 }
 0x23b   :  { %4131 = vmatmul.mubr.msk.bf16.gmra.mrb[8].mxu1 %vm171_vm2, %v263_v47  ;;  %v5274_v47 = vld [vmem:[%s6323_s3 + $0x20] sm:$0x3] }
 0x23c   :  { %4140 = vmatprep.mubr.msk.bf16.mxu1 %vm4953_vm0, %v4952_v1 }
 0x2fe   :  { %v330_v49 = vpop.f32.mrb[0].mxu1 }
 0x2ff   :  { %v4124_v50 = vpop.f32.mrb[1].mxu1  ;;  %v331_v52 = vadd.f32 %v3759_v48, %v330_v49 }
 0x300   :  { %v333_v51 = vpop.f32.mrb[2].mxu1 }
 0x301   :  { %v334_v53 = vadd.f32 %v3759_v48, %v333_v51  ;;  %v4125_v54 = vpop.f32.mrb[3].mxu1 }
 0x303   :  { %v5175_v55 = vpack.c.bf16 %v334_v53, %v331_v52 }
 0x305   :  { %362 = vrot.lane.b32.xlu0 %v5175_v55, %s4954_s22 }
 0x306   :  { %v338_v56 = vpop.f32.mrb[4].mxu1 }
 0x307   :  { %v4128_v57 = vpop.f32.mrb[5].mxu1  ;;  %v339_v59 = vadd.f32 %v3759_v48, %v338_v56 }
 0x308   :  { %v341_v58 = vpop.f32.mrb[6].mxu1 }
 0x309   :  { %v342_v60 = vadd.f32 %v3759_v48, %v341_v58  ;;  %v4129_v61 = vpop.f32.mrb[7].mxu1 }
 0x30b   :  { %v5179_v62 = vpack.c.bf16 %v342_v60, %v339_v59 }
 0x30d   :  { %591 = vrot.lane.b32.xlu0 %v5179_v62, %s4955_s2  ;;  %364 = vrot.lane.b32.xlu1 %v5179_v62, %s4954_s22 }
 0x30e   :  { %v346_v63 = vpop.f32.mrb[8].mxu1 }
 0x30f   :  { %v347_v0 = vadd.f32 %v3759_v48, %v346_v63  ;;  %v4132_v2 = vpop.f32.mrb[9].mxu1 }
 0x310   :  { %v349_v3 = vpop.f32.mrb[10].mxu1 }
 0x311   :  { %v5185_v4 = vpack.c.bf16 %v347_v0, %v347_v0  ;;  %583 = vrot.lane.b32.xlu0 %v5175_v55, %s4956_s23  ;;  %v4133_v5 = vpop.f32.mrb[11].mxu1 }
 0x313   :  { %366 = vrot.lane.b32.xlu1 %v5185_v4, %s4954_s22 }
 0x315   :  { %587 = vrot.lane.b32.xlu0 %v5185_v4, %s4956_s23 }
 0x317   :  { %589 = vrot.lane.b32.xlu1 %v5175_v55, %s4955_s2 }
 0x319   :  { %498 = vrot.lane.b32.xlu0 %v5175_v55, %s4957_s24 }
 0x31b   :  { %593 = vrot.lane.b32.xlu1 %v5185_v4, %s4955_s2 }
 0x31f   :  { %585 = vrot.lane.b32.xlu1 %v5179_v62, %s4956_s23 }
 0x323   :  { %500 = vrot.lane.b32.xlu1 %v5179_v62, %s4957_s24 }
 0x377   :  { %v363_v6 = vpop.permute.xlu0 %362 }
 0x378   :  { %v379_v7 = vsel %vm368_vm4, %v363_v6, 0 }
 0x379   :  { %4135 = vmatpush3.bf16.xpose.msra.mxu1 %v379_v7 }
 0x37a   :  { %4136 = vmatprep.subr.bf16.mxu1 %v4952_v1 }
 0x37f   :  { %v365_v8 = vpop.permute.xlu1 %364  ;;  %v592_v9 = vpop.permute.xlu0 %591 }
 0x380   :  { %v382_v10 = vsel %vm368_vm4, %v365_v8, 0  ;;  %v608_v23 = vsel %vm368_vm4, %v592_v9, 0 }
 0x381   :  { %4137 = vmatpush3.bf16.xpose.msra.mxu1 %v382_v10 }
 0x382   :  { %4138 = vmatprep.subr.bf16.mxu1 %v4952_v1 }
 0x383   :  { %v584_v11 = vpop.permute.xlu0 %583 }
 0x385   :  { %v367_v12 = vpop.permute.xlu1 %366 }
 0x386   :  { %v385_v14 = vsel %vm368_vm4, %v367_v12, 0 }
 0x387   :  { %v588_v13 = vpop.permute.xlu0 %587 }
 0x389   :  { %v590_v16 = vpop.permute.xlu1 %589  ;;  %4139 = vmatpush3.bf16.xpose.msra.mxu1 %v385_v14 }
 0x38a   :  { %4170 = vmatprep.subr.bf16.mxu1 %v4952_v1  ;;  %v605_v20 = vsel %vm368_vm4, %v590_v16, 0 }
 0x38b   :  { %v499_v17 = vpop.permute.xlu0 %498 }
 0x38c   :  { %4153 = vmatpush3.bf16.msra.mxu0 %v499_v17 }
 0x38d   :  { %v594_v19 = vpop.permute.xlu1 %593  ;;  %4154 = vmatprep.subr.bf16.mxu0 %v4952_v1 }
 0x38e   :  { %v611_v24 = vsel %vm368_vm4, %v594_v19, 0 }
 0x390   :  { %4141 = vmatmul.mubr.msk.bf16.vlgmr.msra.gmra.mrb[12].mxu1 %vm368_vm4, %v5175_v55 }
 0x391   :  { %v586_v21 = vpop.permute.xlu1 %585  ;;  %4171 = vmatpush3.bf16.xpose.msra.mxu1 %v605_v20  ;;  %4144 = vmatprep.mubr.msk.bf16.mxu1 %vm4953_vm0, %v4952_v1 }
 0x392   :  { %4172 = vmatprep.subr.bf16.mxu1 %v4952_v1 }
 0x395   :  { %v501_v22 = vpop.permute.xlu1 %500 }
 0x396   :  { %4155 = vmatpush3.bf16.msra.mxu0 %v501_v22 }
 0x397   :  { %4156 = vmatprep.subr.bf16.mxu0 %v4952_v1 }
 0x398   :  { %4145 = vmatmul.mubr.msk.bf16.gmra.mrb[16].mxu1 %vm368_vm4, %v5179_v62 }
 0x399   :  { %4173 = vmatpush3.bf16.xpose.msra.mxu1 %v608_v23  ;;  %4148 = vmatprep.mubr.msk.bf16.mxu1 %vm4953_vm0, %v4952_v1 }
 0x39a   :  { %4174 = vmatprep.subr.bf16.mxu1 %v4952_v1 }
 0x3a0   :  { %4149 = vmatmul.mubr.msk.bf16.gmra.mrb[20].mxu1 %vm368_vm4, %v5185_v4 }
 0x3a1   :  { %4175 = vmatpush3.bf16.xpose.msra.mxu1 %v611_v24  ;;  %4176 = vmatprep.mubr.msk.bf16.mxu1 %vm4953_vm0, %v4952_v1 }
 0x3a2   :  { %4206 = vmatprep.subr.bf16.mxu1 %v4952_v1 }
 0x3a8   :  { %4177 = vmatmul.mubr.msk.bf16.vlgmr.msra.gmra.mrb[24].mxu1 %vm368_vm4, %v584_v11 }
 0x3a9   :  { %4180 = vmatprep.mubr.msk.bf16.mxu1 %vm4953_vm0, %v4952_v1 }
 0x3b0   :  { %4181 = vmatmul.mubr.msk.bf16.gmra.mrb[28].mxu1 %vm368_vm4, %v586_v21 }
 0x3b1   :  { %4184 = vmatprep.mubr.msk.bf16.mxu1 %vm4953_vm0, %v4952_v1 }
 0x3b8   :  { %4185 = vmatmul.mubr.msk.bf16.gmra.mrb[32].mxu1 %vm368_vm4, %v588_v13 }
 0x3b9   :  { %4208 = vmatprep.mubr.msk.bf16.mxu1 %vm4953_vm0, %v4952_v1 }
 0x463   :  { %v421_v27 = vpop.f32.mrb[12].mxu1 }
 0x464   :  { %v5249_v30 = vadd.f32 %v421_v27, %v5241_v26  ;;  %v4142_v31 = vpop.f32.mrb[13].mxu1 }
 0x465   :  { %v424_v32 = vpop.f32.mrb[14].mxu1 }
 0x466   :  { %v5252_v33 = vadd.f32 %v424_v32, %v5246_v29  ;;  %v4143_v35 = vpop.f32.mrb[15].mxu1  ;;  %v444_v36 = vsel %vm443_vm5, %v5249_v30, -inf }
 0x467   :  { %445 = vmax.xlane.f32.xlu1 %v444_v36 }
 0x468   :  { %v447_v37 = vsel %vm443_vm5, %v5252_v33, -inf }
 0x469   :  { %448 = vmax.xlane.f32.xlu0 %v447_v37 }
 0x46b   :  { %v429_v39 = vpop.f32.mrb[16].mxu1 }
 0x46c   :  { %v430_v41 = vadd.f32 %v429_v39, %v5261_v38  ;;  %v4146_v42 = vpop.f32.mrb[17].mxu1 }
 0x46d   :  { %v432_v43 = vpop.f32.mrb[18].mxu1 }
 0x46e   :  { %v433_v44 = vadd.f32 %v432_v43, %v5266_v40  ;;  %v4147_v45 = vpop.f32.mrb[19].mxu1  ;;  %v450_v46 = vsel %vm443_vm5, %v430_v41, -inf }
 0x46f   :  { %451 = vmax.xlane.f32.xlu0 %v450_v46 }
 0x470   :  { %v453_v48 = vsel %vm443_vm5, %v433_v44, -inf }
 0x473   :  { %454 = vmax.xlane.f32.xlu0 %v453_v48  ;;  %v437_v49 = vpop.f32.mrb[20].mxu1 }
 0x474   :  { %v5278_v50 = vadd.f32 %v437_v49, %v5274_v47  ;;  %v4150_v51 = vpop.f32.mrb[21].mxu1 }
 0x475   :  { %v440_v52 = vpop.f32.mrb[22].mxu1 }
 0x476   :  { %v4151_v53 = vpop.f32.mrb[23].mxu1  ;;  %v457_v54 = vsel %vm456_vm6, %v5278_v50, -inf }
 0x477   :  { %458 = vmax.xlane.f32.xlu1 %v457_v54 }
 0x47b   :  { %v647_v56 = vpop.f32.mrb[24].mxu1 }
 0x47c   :  { %v5283_v57 = vadd.f32 %v647_v56, %v5241_v26  ;;  %v4178_v58 = vpop.f32.mrb[25].mxu1 }
 0x47d   :  { %v650_v59 = vpop.f32.mrb[26].mxu1 }
 0x47e   :  { %v4179_v60 = vpop.f32.mrb[27].mxu1  ;;  %v669_v61 = vsel %vm443_vm5, %v5283_v57, -inf  ;;  %v5307_v16 = vadd.f32 %v650_v59, %v5246_v29 }
 0x47f   :  { %670 = vmax.xlane.f32.xlu1 %v669_v61 }
 0x480   :  { %v672_v17 = vsel %vm443_vm5, %v5307_v16, -inf }
 0x483   :  { %v655_v63 = vpop.f32.mrb[28].mxu1 }
 0x484   :  { %v5288_v0 = vadd.f32 %v655_v63, %v5261_v38  ;;  %v4182_v2 = vpop.f32.mrb[29].mxu1 }
 0x485   :  { %v658_v3 = vpop.f32.mrb[30].mxu1 }
 0x486   :  { %v5291_v5 = vadd.f32 %v658_v3, %v5266_v40  ;;  %v4183_v6 = vpop.f32.mrb[31].mxu1  ;;  %v675_v7 = vsel %vm443_vm5, %v5288_v0, -inf }
 0x487   :  { %676 = vmax.xlane.f32.xlu1 %v675_v7 }
 0x488   :  { %v678_v8 = vsel %vm443_vm5, %v5291_v5, -inf }
 0x489   :  { %502 = vrot.lane.b32.xlu0 %v5185_v4, %s4957_s24 }
 0x48b   :  { %679 = vmax.xlane.f32.xlu1 %v678_v8  ;;  %v663_v9 = vpop.f32.mrb[32].mxu1 }
 0x48c   :  { %v5300_v10 = vadd.f32 %v663_v9, %v5274_v47  ;;  %v4186_v11 = vpop.f32.mrb[33].mxu1 }
 0x48d   :  { %v666_v12 = vpop.f32.mrb[34].mxu1 }
 0x48e   :  { %v4187_v13 = vpop.f32.mrb[35].mxu1  ;;  %v681_v14 = vsel %vm456_vm6, %v5300_v10, -inf }
 0x48f   :  { %682 = vmax.xlane.f32.xlu1 %v681_v14 }
 0x4a0   :  { %722 = vrot.lane.b32.xlu1 %v5175_v55, %s4958_s21 }
 0x4a8   :  { %673 = vmax.xlane.f32.xlu0 %v672_v17 }
 0x4be   :  { %724 = vrot.lane.b32.xlu0 %v5179_v62, %s4958_s21 }
 0x4c2   :  { %726 = vrot.lane.b32.xlu0 %v5185_v4, %s4958_s21 }
 0x4f4   :  { %v446_v19 = vpop.xlane.xlu1 %445 }
 0x4f5   :  { %v460_v20 = vsub.f32 %v5249_v30, %v446_v19 }
 0x4f6   :  { %v449_v21 = vpop.xlane.xlu0 %448 }
 0x4f7   :  { %v465_v22 = vmul.f32 1.442695, %v460_v20  ;;  %v461_v23 = vsub.f32 %v5252_v33, %v449_v21 }
 0x4f9   :  { %v467_v24 = vmul.f32 1.442695, %v461_v23  ;;  %4713 = vpow2.f32 %v465_v22 }
 0x4fb   :  { %4715 = vpow2.f32 %v467_v24 }
 0x4fc   :  { %v452_v27 = vpop.xlane.xlu0 %451 }
 0x4fd   :  { %v462_v31 = vsub.f32 %v430_v41, %v452_v27 }
 0x4ff   :  { %v469_v32 = vmul.f32 1.442695, %v462_v31  ;;  %v353_v31 = vld [vmem:[%s6328_s8 + $0x4] sm:$0xf] }
 0x500   :  { %v455_v35 = vpop.xlane.xlu0 %454 }
 0x501   :  { %v463_v36 = vsub.f32 %v433_v44, %v455_v35  ;;  %4717 = vpow2.f32 %v469_v32  ;;  %v817_v32 = vsel %vm815_vm8, %v353_v31, 0 }
 0x502   :  { %4207 = vmatpush3.bf16.msra.mxu1 %v817_v32 }
 0x503   :  { %v471_v37 = vmul.f32 1.442695, %v463_v36  ;;  %v5317_v39 = vpop.eup %4713  ;;  %4234 = vmatprep.subr.bf16.mxu1 %v4952_v1 }
 0x504   :  { %v459_v42 = vpop.xlane.xlu1 %458  ;;  %v503_v43 = vpop.permute.xlu0 %502  ;;  %v475_v35 = vsel %vm443_vm5, %v5317_v39, 0.0 }
 0x505   :  { %v5319_v30 = vpop.eup %4715  ;;  %4719 = vpow2.f32 %v471_v37  ;;  %v464_v33 = vsub.f32 %v5278_v50, %v459_v42  ;;  %v517_v45 = vsel %vm515_vm7, %v503_v43, 0 }
 0x506   :  { %v495_v41 = vpack.c.bf16 %v5319_v30, %v5317_v39  ;;  %4157 = vmatpush3.bf16.msra.mxu0 %v517_v45  ;;  %v478_v37 = vsel %vm443_vm5, %v5319_v30, 0.0  ;;  %v352_v39 = vld [vmem:[%s6328_s8] sm:$0xf] }
 0x507   :  { %v473_v46 = vmul.f32 1.442695, %v464_v33  ;;  %4188 = vmatprep.subr.bf16.mxu0 %v4952_v1  ;;  %v885_v33 = vsel %vm815_vm8, %v352_v39, 0 }
 0x509   :  { %4159 = vmatmul.mubr.msk.bf16.vlgmr.msra.gmra.mrb[12].mxu0 %vm443_vm5, %v495_v41  ;;  %4721 = vpow2.f32 %v473_v46 }
 0x50a   :  { %4162 = vmatprep.mubr.msk.bf16.mxu0 %vm4953_vm0, %v4952_v1 }
 0x50b   :  { %v5330_v49 = vpop.eup %4717 }
 0x50c   :  { %v671_v44 = vpop.xlane.xlu1 %670  ;;  %v481_v36 = vsel %vm443_vm5, %v5330_v49, 0.0 }
 0x50d   :  { %v684_v48 = vsub.f32 %v5283_v57, %v671_v44 }
 0x50f   :  { %v5332_v50 = vpop.eup %4719  ;;  %v689_v51 = vmul.f32 1.442695, %v684_v48 }
 0x510   :  { %v496_v52 = vpack.c.bf16 %v5332_v50, %v5330_v49  ;;  %v484_v42 = vsel %vm443_vm5, %v5332_v50, 0.0 }
 0x511   :  { %4723 = vpow2.f32 %v689_v51 }
 0x512   :  { %4163 = vmatmul.mubr.msk.bf16.gmra.mrb[16].mxu0 %vm443_vm5, %v496_v52 }
 0x513   :  { %4166 = vmatprep.mubr.msk.bf16.mxu0 %vm4953_vm0, %v4952_v1  ;;  %v5339_v54 = vpop.eup %4721 }
 0x514   :  { %v677_v53 = vpop.xlane.xlu1 %676  ;;  %v497_v57 = vpack.c.bf16 %v5339_v54, %v5339_v54  ;;  %v487_v43 = vsel %vm456_vm6, %v5339_v54, 0.0 }
 0x515   :  { %v686_v63 = vsub.f32 %v5288_v0, %v677_v53 }
 0x517   :  { %v693_v6 = vmul.f32 1.442695, %v686_v63 }
 0x518   :  { %v680_v56 = vpop.xlane.xlu1 %679 }
 0x519   :  { %v687_v7 = vsub.f32 %v5291_v5, %v680_v56 }
 0x51a   :  { %4167 = vmatmul.mubr.msk.bf16.gmra.mrb[20].mxu0 %vm443_vm5, %v497_v57 }
 0x51b   :  { %v4724_v58 = vpop.eup %4723  ;;  %4194 = vmatprep.mubr.msk.bf16.mxu0 %vm4953_vm0, %v4952_v1  ;;  %v695_v11 = vmul.f32 1.442695, %v687_v7 }
 0x51c   :  { %v683_v59 = vpop.xlane.xlu1 %682  ;;  %v699_v60 = vsel %vm443_vm5, %v4724_v58, 0.0 }
 0x51d   :  { %700 = vadd.xlane.f32.xlu1 %v699_v60  ;;  %v688_v12 = vsub.f32 %v5300_v10, %v683_v59 }
 0x51f   :  { %v697_v0 = vmul.f32 1.442695, %v688_v12 }
 0x520   :  { %v723_v61 = vpop.permute.xlu1 %722 }
 0x521   :  { %4189 = vmatpush3.bf16.msra.mxu0 %v723_v61 }
 0x522   :  { %4190 = vmatprep.subr.bf16.mxu0 %v4952_v1 }
 0x52e   :  { %951 = vrot.lane.b32.xlu1 %v5179_v62, %s4959_s25 }
 0x535   :  { %v674_v2 = vpop.xlane.xlu0 %673 }
 0x536   :  { %v685_v3 = vsub.f32 %v5307_v16, %v674_v2 }
 0x538   :  { %v691_v8 = vmul.f32 1.442695, %v685_v3 }
 0x539   :  { %v725_v9 = vpop.permute.xlu0 %724 }
 0x53a   :  { %4725 = vpow2.f32 %v691_v8  ;;  %4191 = vmatpush3.bf16.msra.mxu0 %v725_v9 }
 0x53b   :  { %4192 = vmatprep.subr.bf16.mxu0 %v4952_v1  ;;  %4727 = vpow2.f32 %v693_v6 }
 0x53c   :  { %4729 = vpow2.f32 %v695_v11 }
 0x53d   :  { %v727_v13 = vpop.permute.xlu0 %726  ;;  %4731 = vpow2.f32 %v697_v0 }
 0x53e   :  { %v740_v14 = vsel %vm515_vm7, %v727_v13, 0 }
 0x53f   :  { %4193 = vmatpush3.bf16.msra.mxu0 %v740_v14 }
 0x540   :  { %4220 = vmatprep.subr.bf16.mxu0 %v4952_v1 }
 0x544   :  { %v4726_v16 = vpop.eup %4725 }
 0x545   :  { %v719_v5 = vpack.c.bf16 %v4726_v16, %v4724_v58  ;;  %v702_v17 = vsel %vm443_vm5, %v4726_v16, 0.0  ;;  %v4728_v19 = vpop.eup %4727 }
 0x546   :  { %703 = vadd.xlane.f32.xlu0 %v702_v17  ;;  %v705_v10 = vsel %vm443_vm5, %v4728_v19, 0.0  ;;  %v4730_v20 = vpop.eup %4729 }
 0x547   :  { %4195 = vmatmul.mubr.msk.bf16.vlgmr.msra.gmra.mrb[24].mxu0 %vm443_vm5, %v719_v5  ;;  %v708_v21 = vsel %vm443_vm5, %v4730_v20, 0.0  ;;  %v720_v22 = vpack.c.bf16 %v4730_v20, %v4728_v19  ;;  %v4732_v23 = vpop.eup %4731 }
 0x548   :  { %4198 = vmatprep.mubr.msk.bf16.mxu0 %vm4953_vm0, %v4952_v1  ;;  %v711_v24 = vsel %vm456_vm6, %v4732_v23, 0.0  ;;  %v721_v27 = vpack.c.bf16 %v4732_v23, %v4732_v23  ;;  %4221 = vmatpush3.bf16.msra.mxu0 %v885_v33 }
 0x549   :  { %4252 = vmatprep.subr.bf16.mxu0 %v4952_v1 }
 0x54a   :  { %706 = vadd.xlane.f32.xlu0 %v705_v10 }
 0x54e   :  { %709 = vadd.xlane.f32.xlu0 %v708_v21 }
 0x54f   :  { %4199 = vmatmul.mubr.msk.bf16.gmra.mrb[28].mxu0 %vm443_vm5, %v720_v22 }
 0x550   :  { %4202 = vmatprep.mubr.msk.bf16.mxu0 %vm4953_vm0, %v4952_v1 }
 0x552   :  { %712 = vadd.xlane.f32.xlu1 %v711_v24 }
 0x557   :  { %4203 = vmatmul.mubr.msk.bf16.gmra.mrb[32].mxu0 %vm443_vm5, %v721_v27 }
 0x558   :  { %4222 = vmatprep.mubr.msk.bf16.mxu0 %vm4953_vm0, %v4952_v1 }
 0x563   :  { %953 = vrot.lane.b32.xlu1 %v5185_v4, %s4959_s25 }
 0x564   :  { %949 = vrot.lane.b32.xlu0 %v5175_v55, %s4959_s25 }
 0x567   :  { %943 = vrot.lane.b32.xlu1 %v5175_v55, %s4960_s26 }
 0x568   :  { %945 = vrot.lane.b32.xlu0 %v5179_v62, %s4960_s26 }
 0x56b   :  { %947 = vrot.lane.b32.xlu1 %v5185_v4, %s4960_s26 }
 0x587   :  { %476 = vadd.xlane.f32.xlu0 %v475_v35 }
 0x58b   :  { %482 = vadd.xlane.f32.xlu0 %v481_v36 }
 0x58f   :  { %479 = vadd.xlane.f32.xlu1 %v478_v37  ;;  %485 = vadd.xlane.f32.xlu0 %v484_v42 }
 0x593   :  { %488 = vadd.xlane.f32.xlu0 %v487_v43 }
 0x5a0   :  { %1082 = vrot.lane.b32.xlu1 %v5175_v55, %s4961_s29 }
 0x5aa   :  { %v701_v57 = vpop.xlane.xlu1 %700 }
 0x5ab   :  { %4733 = vrcp.f32 %v701_v57 }
 0x5ae   :  { %v952_v59 = vpop.permute.xlu1 %951 }
 0x5b5   :  { %v4734_v13 = vpop.eup %4733 }
 0x5d3   :  { %v704_v56 = vpop.xlane.xlu0 %703 }
 0x5d4   :  { %4735 = vrcp.f32 %v704_v56 }
 0x5d7   :  { %v707_v58 = vpop.xlane.xlu0 %706 }
 0x5d8   :  { %4737 = vrcp.f32 %v707_v58 }
 0x5db   :  { %v710_v60 = vpop.xlane.xlu0 %709 }
 0x5dc   :  { %v5402_v30 = vpop.f32.mrb[12].mxu0  ;;  %4739 = vrcp.f32 %v710_v60 }
 0x5dd   :  { %v4160_v45 = vpop.f32.mrb[13].mxu0 }
 0x5de   :  { %v5404_v41 = vpop.f32.mrb[14].mxu0  ;;  %v4736_v16 = vpop.eup %4735 }
 0x5df   :  { %v4161_v46 = vpop.f32.mrb[15].mxu0  ;;  %v713_v61 = vpop.xlane.xlu1 %712 }
 0x5e0   :  { %v950_v63 = vpop.permute.xlu0 %949 }
 0x5e1   :  { %v965_v21 = vsel %vm368_vm4, %v950_v63, 0 }
 0x5e2   :  { %v4738_v23 = vpop.eup %4737 }
 0x5e3   :  { %v5410_v2 = vpop.permute.xlu1 %953 }
 0x5e4   :  { %v5412_v3 = vpop.permute.xlu0 %945 }
 0x5e5   :  { %v5406_v44 = vpop.f32.mrb[16].mxu0 }
 0x5e6   :  { %v4164_v48 = vpop.f32.mrb[17].mxu0  ;;  %v4740_v27 = vpop.eup %4739 }
 0x5e7   :  { %v564_v49 = vpop.f32.mrb[18].mxu0  ;;  %v5414_v6 = vpop.permute.xlu1 %943 }
 0x5e8   :  { %v4165_v50 = vpop.f32.mrb[19].mxu0 }
 0x5eb   :  { %v5416_v8 = vpop.permute.xlu1 %947 }
 0x5ed   :  { %v5408_v51 = vpop.f32.mrb[20].mxu0 }
 0x5ee   :  { %v4168_v52 = vpop.f32.mrb[21].mxu0 }
 0x5ef   :  { %v572_v53 = vpop.f32.mrb[22].mxu0 }
 0x5f0   :  { %v4169_v54 = vpop.f32.mrb[23].mxu0  ;;  %v968_v53 = vsel %vm368_vm4, %v952_v59, 0  ;;  %v971_v59 = vsel %vm368_vm4, %v5410_v2, 0 }
 0x614   :  { %v477_v7 = vpop.xlane.xlu0 %476 }
 0x615   :  { %4741 = vrcp.f32 %v477_v7 }
 0x618   :  { %v483_v9 = vpop.xlane.xlu0 %482 }
 0x619   :  { %4743 = vrcp.f32 %v483_v9 }
 0x61a   :  { %v776_v11 = vpop.f32.mrb[24].mxu0 }
 0x61b   :  { %v4196_v12 = vpop.f32.mrb[25].mxu0  ;;  %v798_v17 = vmul.f32 %v4734_v13, %v776_v11 }
 0x61c   :  { %v480_v14 = vpop.xlane.xlu1 %479  ;;  %v486_v0 = vpop.xlane.xlu0 %485 }
 0x61d   :  { %4745 = vrcp.f32 %v480_v14  ;;  %v779_v5 = vpop.f32.mrb[26].mxu0 }
 0x61e   :  { %4747 = vrcp.f32 %v486_v0  ;;  %v799_v19 = vmul.f32 %v4736_v16, %v779_v5  ;;  %v4197_v10 = vpop.f32.mrb[27].mxu0 }
 0x61f   :  { %4749 = vrcp.f32 %v713_v61  ;;  %v4742_v32 = vpop.eup %4741 }
 0x620   :  { %v803_v20 = vpack.c.bf16 %v799_v19, %v798_v17  ;;  %v489_v43 = vpop.xlane.xlu0 %488  ;;  %v575_v46 = vmul.f32 %v4742_v32, %v5402_v30  ;;  %v1083_v30 = vpop.permute.xlu1 %1082 }
 0x621   :  { %4751 = vrcp.f32 %v489_v43 }
 0x622   :  { %4209 = vmatmul.mubr.msk.bf16.vlgmr.msra.gmra.mrb[36].mxu1 %vm368_vm4, %v803_v20  ;;  %v784_v22 = vpop.f32.mrb[28].mxu0 }
 0x623   :  { %4235 = vmatpush3.bf16.xpose.msra.mxu1 %v965_v21  ;;  %v4200_v24 = vpop.f32.mrb[29].mxu0  ;;  %4212 = vmatprep.mubr.msk.bf16.mxu1 %vm4953_vm0, %v4952_v1  ;;  %v800_v35 = vmul.f32 %v4738_v23, %v784_v22  ;;  %v4744_v42 = vpop.eup %4743 }
 0x624   :  { %v787_v31 = vpop.f32.mrb[30].mxu0  ;;  %4236 = vmatprep.subr.bf16.mxu1 %v4952_v1  ;;  %v577_v50 = vmul.f32 %v4744_v42, %v5406_v44 }
 0x625   :  { %v801_v36 = vmul.f32 %v4740_v27, %v787_v31  ;;  %v4201_v37 = vpop.f32.mrb[31].mxu0 }
 0x627   :  { %v4746_v39 = vpop.eup %4745  ;;  %v804_v33 = vpack.c.bf16 %v801_v36, %v800_v35 }
 0x628   :  { %v4748_v45 = vpop.eup %4747  ;;  %v576_v48 = vmul.f32 %v4746_v39, %v5404_v41 }
 0x629   :  { %v578_v52 = vmul.f32 %v4748_v45, %v564_v49  ;;  %v4750_v57 = vpop.eup %4749 }
 0x62a   :  { %v580_v54 = vpack.c.bf16 %v576_v48, %v575_v46  ;;  %4213 = vmatmul.mubr.msk.bf16.gmra.mrb[40].mxu1 %vm368_vm4, %v804_v33  ;;  %v792_v56 = vpop.f32.mrb[32].mxu0 }
 0x62b   :  { %4237 = vmatpush3.bf16.xpose.msra.mxu1 %v968_v53  ;;  %v4204_v58 = vpop.f32.mrb[33].mxu0  ;;  %4216 = vmatprep.mubr.msk.bf16.mxu1 %vm4953_vm0, %v4952_v1  ;;  %v581_v60 = vpack.c.bf16 %v578_v52, %v577_v50  ;;  %v802_v61 = vmul.f32 %v4750_v57, %v792_v56  ;;  %v4752_v63 = vpop.eup %4751 }
 0x62c   :  { %v795_v41 = vpop.f32.mrb[34].mxu0  ;;  %4223 = vmatmul.mubr.msk.bf16.vlgmr.msra.gmra.mrb[36].mxu0 %vm368_vm4, %v580_v54  ;;  %4238 = vmatprep.subr.bf16.mxu1 %v4952_v1  ;;  %v579_v7 = vmul.f32 %v4752_v63, %v5408_v51 }
 0x62d   :  { %4253 = vmatpush3.bf16.msra.mxu0 %v1083_v30  ;;  %v4205_v44 = vpop.f32.mrb[35].mxu0  ;;  %4226 = vmatprep.mubr.msk.bf16.mxu0 %vm4953_vm0, %v4952_v1  ;;  %v805_v49 = vpack.c.bf16 %v802_v61, %v802_v61 }
 0x62e   :  { %4254 = vmatprep.subr.bf16.mxu0 %v4952_v1  ;;  %v582_v2 = vpack.c.bf16 %v579_v7, %v579_v7 }
 0x632   :  { %4217 = vmatmul.mubr.msk.bf16.gmra.mrb[44].mxu1 %vm368_vm4, %v805_v49 }
 0x633   :  { %4239 = vmatpush3.bf16.xpose.msra.mxu1 %v971_v59  ;;  %4240 = vmatprep.mubr.msk.bf16.mxu1 %vm4953_vm0, %v4952_v1 }
 0x634   :  { %4227 = vmatmul.mubr.msk.bf16.gmra.mrb[40].mxu0 %vm368_vm4, %v581_v60  ;;  %4270 = vmatprep.subr.bf16.mxu1 %v4952_v1 }
 0x635   :  { %4230 = vmatprep.mubr.msk.bf16.mxu0 %vm4953_vm0, %v4952_v1 }
 0x63a   :  { %4241 = vmatmul.mubr.msk.bf16.vlgmr.msra.gmra.mrb[48].mxu1 %vm368_vm4, %v5414_v6 }
 0x63b   :  { %4244 = vmatprep.mubr.msk.bf16.mxu1 %vm4953_vm0, %v4952_v1 }
 0x63c   :  { %4231 = vmatmul.mubr.msk.bf16.gmra.mrb[44].mxu0 %vm368_vm4, %v582_v2 }
 0x63d   :  { %4258 = vmatprep.mubr.msk.bf16.mxu0 %vm4953_vm0, %v4952_v1 }
 0x642   :  { %4245 = vmatmul.mubr.msk.bf16.gmra.mrb[52].mxu1 %vm368_vm4, %v5412_v3 }
 0x643   :  { %4248 = vmatprep.mubr.msk.bf16.mxu1 %vm4953_vm0, %v4952_v1 }
 0x64a   :  { %4249 = vmatmul.mubr.msk.bf16.gmra.mrb[56].mxu1 %vm368_vm4, %v5416_v8 }
 0x64b   :  { %4272 = vmatprep.mubr.msk.bf16.mxu1 %vm4953_vm0, %v4952_v1 }
 0x6f5   :  { %v853_v51 = vpop.f32.mrb[36].mxu1 }
 0x6f6   :  { %v4210_v6 = vpop.f32.mrb[37].mxu1 }
 0x6f7   :  { %v856_v9 = vpop.f32.mrb[38].mxu1 }
 0x6f8   :  { %v4211_v11 = vpop.f32.mrb[39].mxu1 }
 0x6fd   :  { %v861_v12 = vpop.f32.mrb[40].mxu1 }
 0x6fe   :  { %v4214_v13 = vpop.f32.mrb[41].mxu1 }
 0x6ff   :  { %v864_v14 = vpop.f32.mrb[42].mxu1  ;;  %v921_v0 = vpop.f32.mrb[36].mxu0 }
 0x700   :  { %v4215_v16 = vpop.f32.mrb[43].mxu1  ;;  %v5460_v5 = vadd.f32 %v921_v0, %v853_v51  ;;  %v4224_v3 = vpop.f32.mrb[37].mxu0 }
 0x701   :  { %v924_v17 = vpop.f32.mrb[38].mxu0 }
 0x702   :  { %v5462_v19 = vadd.f32 %v924_v17, %v856_v9  ;;  %v4225_v10 = vpop.f32.mrb[39].mxu0 }
 0x705   :  { %v869_v8 = vpop.f32.mrb[44].mxu1 }
 0x706   :  { %v4218_v20 = vpop.f32.mrb[45].mxu1 }
 0x707   :  { %v872_v21 = vpop.f32.mrb[46].mxu1  ;;  %v929_v22 = vpop.f32.mrb[40].mxu0 }
 0x708   :  { %v4219_v23 = vpop.f32.mrb[47].mxu1  ;;  %v5464_v24 = vadd.f32 %v929_v22, %v861_v12  ;;  %v4228_v27 = vpop.f32.mrb[41].mxu0 }
 0x709   :  { %v932_v31 = vpop.f32.mrb[42].mxu0 }
 0x70a   :  { %v5466_v32 = vadd.f32 %v932_v31, %v864_v14  ;;  %v4229_v35 = vpop.f32.mrb[43].mxu0 }
 0x70d   :  { %v1007_v36 = vpop.f32.mrb[48].mxu1 }
 0x70e   :  { %v1008_v37 = vadd.f32 %v1007_v36, %v5241_v26  ;;  %v4242_v42 = vpop.f32.mrb[49].mxu1 }
 0x70f   :  { %v1010_v43 = vpop.f32.mrb[50].mxu1  ;;  %v937_v39 = vpop.f32.mrb[44].mxu0 }
 0x710   :  { %v1011_v33 = vadd.f32 %v1010_v43, %v5246_v29  ;;  %v5470_v45 = vadd.f32 %v937_v39, %v869_v8  ;;  %v4243_v46 = vpop.f32.mrb[51].mxu1  ;;  %v1029_v48 = vsel %vm443_vm5, %v1008_v37, -inf  ;;  %v4232_v50 = vpop.f32.mrb[45].mxu0 }
 0x711   :  { %1030 = vmax.xlane.f32.xlu1 %v1029_v48  ;;  %v940_v52 = vpop.f32.mrb[46].mxu0 }
 0x712   :  { %v1032_v53 = vsel %vm443_vm5, %v1011_v33, -inf  ;;  %v4233_v54 = vpop.f32.mrb[47].mxu0 }
 0x713   :  { %1033 = vmax.xlane.f32.xlu0 %v1032_v53 }
 0x715   :  { %v1015_v56 = vpop.f32.mrb[52].mxu1 }
 0x716   :  { %v1016_v57 = vadd.f32 %v1015_v56, %v5261_v38  ;;  %v4246_v58 = vpop.f32.mrb[53].mxu1 }
 0x717   :  { %v1018_v60 = vpop.f32.mrb[54].mxu1 }
 0x718   :  { %v1019_v30 = vadd.f32 %v1018_v60, %v5266_v40  ;;  %v4247_v61 = vpop.f32.mrb[55].mxu1  ;;  %v1035_v41 = vsel %vm443_vm5, %v1016_v57, -inf }
 0x719   :  { %1036 = vmax.xlane.f32.xlu1 %v1035_v41 }
 0x71a   :  { %v1038_v44 = vsel %vm443_vm5, %v1019_v30, -inf }
 0x71b   :  { %1039 = vmax.xlane.f32.xlu0 %v1038_v44 }
 0x71d   :  { %v1023_v49 = vpop.f32.mrb[56].mxu1 }
 0x71e   :  { %v1024_v59 = vadd.f32 %v1023_v49, %v5274_v47  ;;  %v4250_v63 = vpop.f32.mrb[57].mxu1 }
 0x71f   :  { %v1026_v7 = vpop.f32.mrb[58].mxu1 }
 0x720   :  { %v4251_v2 = vpop.f32.mrb[59].mxu1  ;;  %v1041_v51 = vsel %vm456_vm6, %v1024_v59, -inf }
 0x721   :  { %1042 = vmax.xlane.f32.xlu0 %v1041_v51 }
 0x72a   :  { %1086 = vrot.lane.b32.xlu1 %v5185_v4, %s4961_s29 }
 0x72e   :  { %1245 = vrot.lane.b32.xlu1 %v5175_v55, %s6346_s19 }
 0x732   :  { %1247 = vrot.lane.b32.xlu1 %v5179_v62, %s6346_s19 }
 0x736   :  { %1249 = vrot.lane.b32.xlu1 %v5185_v4, %s6346_s19 }
 0x737   :  { %1084 = vrot.lane.b32.xlu0 %v5179_v62, %s4961_s29 }
 0x73a   :  { %1241 = vrot.lane.b32.xlu1 %v5179_v62, %s6344_s1 }
 0x73b   :  { %1239 = vrot.lane.b32.xlu0 %v5175_v55, %s6344_s1 }
 0x73f   :  { %1243 = vrot.lane.b32.xlu0 %v5185_v4, %s6344_s1  ;;  %s6356_s1 = smov 40  }
 0x743   :  { %1378 = vrot.lane.b32.xlu0 %v5175_v55, %s6342_s20 }
 0x79e   :  { %v1031_v6 = vpop.xlane.xlu1 %1030 }
 0x79f   :  { %v1044_v9 = vsub.f32 %v1008_v37, %v1031_v6 }
 0x7a0   :  { %v1034_v11 = vpop.xlane.xlu0 %1033 }
 0x7a1   :  { %v1049_v12 = vmul.f32 1.442695, %v1044_v9  ;;  %v1045_v13 = vsub.f32 %v1011_v33, %v1034_v11 }
 0x7a3   :  { %4753 = vpow2.f32 %v1049_v12  ;;  %v1051_v14 = vmul.f32 1.442695, %v1045_v13 }
 0x7a5   :  { %4755 = vpow2.f32 %v1051_v14 }
 0x7a6   :  { %v1037_v0 = vpop.xlane.xlu1 %1036 }
 0x7a7   :  { %v1046_v16 = vsub.f32 %v1016_v57, %v1037_v0 }
 0x7a8   :  { %v1040_v3 = vpop.xlane.xlu0 %1039 }
 0x7a9   :  { %v1053_v17 = vmul.f32 1.442695, %v1046_v16  ;;  %v1047_v10 = vsub.f32 %v1019_v30, %v1040_v3 }
 0x7aa   :  { %v1087_v36 = vpop.permute.xlu1 %1086 }
 0x7ab   :  { %4757 = vpow2.f32 %v1053_v17  ;;  %v1055_v8 = vmul.f32 1.442695, %v1047_v10  ;;  %v1100_v42 = vsel %vm515_vm7, %v1087_v36, 0 }
 0x7ad   :  { %v4754_v20 = vpop.eup %4753  ;;  %4759 = vpow2.f32 %v1055_v8 }
 0x7ae   :  { %v1043_v21 = vpop.xlane.xlu0 %1042  ;;  %v1059_v55 = vsel %vm443_vm5, %v4754_v20, 0.0  ;;  %v1246_v48 = vpop.permute.xlu1 %1245 }
 0x7af   :  { %v4756_v22 = vpop.eup %4755  ;;  %v1048_v23 = vsub.f32 %v1024_v59, %v1043_v21  ;;  %1060 = vadd.xlane.f32.xlu1 %v1059_v55  ;;  %v1261_v53 = vsel %vm368_vm4, %v1246_v48, 0  ;;  %v354_v59 = vld [vmem:[%s6328_s8 + $0x8] sm:$0xf] }
 0x7b0   :  { %v1062_v27 = vsel %vm443_vm5, %v4756_v22, 0.0  ;;  %v1079_v33 = vpack.c.bf16 %v4756_v22, %v4754_v20  ;;  %v1176_v63 = vsel %vm815_vm8, %v354_v59, 0 }
 0x7b1   :  { %v1057_v31 = vmul.f32 1.442695, %v1048_v23  ;;  %1063 = vadd.xlane.f32.xlu0 %v1062_v27  ;;  %4271 = vmatpush3.bf16.msra.mxu1 %v1176_v63 }
 0x7b2   :  { %v1085_v35 = vpop.permute.xlu0 %1084  ;;  %v1248_v56 = vpop.permute.xlu1 %1247  ;;  %4655 = vmatprep.subr.bf16.mxu1 %v4952_v1 }
 0x7b3   :  { %4761 = vpow2.f32 %v1057_v31  ;;  %4255 = vmatpush3.bf16.msra.mxu0 %v1085_v35  ;;  %v1264_v57 = vsel %vm368_vm4, %v1248_v56, 0 }
 0x7b4   :  { %4256 = vmatprep.subr.bf16.mxu0 %v4952_v1 }
 0x7b5   :  { %v4758_v37 = vpop.eup %4757 }
 0x7b6   :  { %v1065_v43 = vsel %vm443_vm5, %v4758_v37, 0.0  ;;  %v1240_v60 = vpop.permute.xlu0 %1239  ;;  %v1250_v30 = vpop.permute.xlu1 %1249 }
 0x7b7   :  { %v4760_v39 = vpop.eup %4759  ;;  %1066 = vadd.xlane.f32.xlu0 %v1065_v43  ;;  %4257 = vmatpush3.bf16.msra.mxu0 %v1100_v42  ;;  %v1267_v61 = vsel %vm368_vm4, %v1250_v30, 0 }
 0x7b8   :  { %4284 = vmatprep.subr.bf16.mxu0 %v4952_v1  ;;  %v1068_v46 = vsel %vm443_vm5, %v4760_v39, 0.0  ;;  %v1080_v54 = vpack.c.bf16 %v4760_v39, %v4758_v37 }
 0x7ba   :  { %4259 = vmatmul.mubr.msk.bf16.vlgmr.msra.gmra.mrb[48].mxu0 %vm443_vm5, %v1079_v33  ;;  %v1244_v41 = vpop.permute.xlu0 %1243  ;;  %v1242_v49 = vpop.permute.xlu1 %1241 }
 0x7bb   :  { %1069 = vadd.xlane.f32.xlu0 %v1068_v46  ;;  %4262 = vmatprep.mubr.msk.bf16.mxu0 %vm4953_vm0, %v4952_v1 }
 0x7bd   :  { %v4762_v50 = vpop.eup %4761 }
 0x7be   :  { %v1071_v52 = vsel %vm456_vm6, %v4762_v50, 0.0  ;;  %v1081_v58 = vpack.c.bf16 %v4762_v50, %v4762_v50  ;;  %v1379_v44 = vpop.permute.xlu0 %1378 }
 0x7bf   :  { %1072 = vadd.xlane.f32.xlu1 %v1071_v52 }
 0x7c0   :  { %4285 = vmatpush3.bf16.xpose.msra.mxu0 %v1261_v53 }
 0x7c1   :  { %4286 = vmatprep.subr.bf16.mxu0 %v4952_v1 }
 0x7c2   :  { %4263 = vmatmul.mubr.msk.bf16.gmra.mrb[52].mxu0 %vm443_vm5, %v1080_v54 }
 0x7c3   :  { %4266 = vmatprep.mubr.msk.bf16.mxu0 %vm4953_vm0, %v4952_v1 }
 0x7c8   :  { %4287 = vmatpush3.bf16.xpose.msra.mxu0 %v1264_v57 }
 0x7c9   :  { %4288 = vmatprep.subr.bf16.mxu0 %v4952_v1 }
 0x7ca   :  { %4267 = vmatmul.mubr.msk.bf16.gmra.mrb[56].mxu0 %vm443_vm5, %v1081_v58 }
 0x7cb   :  { %4290 = vmatprep.mubr.msk.bf16.mxu0 %vm4953_vm0, %v4952_v1 }
 0x7d0   :  { %4289 = vmatpush3.bf16.xpose.msra.mxu0 %v1267_v61 }
 0x7d1   :  { %4302 = vmatprep.subr.bf16.mxu0 %v4952_v1 }
 0x7d7   :  { %4291 = vmatmul.mubr.msk.bf16.vlgmr.msra.gmra.mrb[60].mxu0 %vm368_vm4, %v1240_v60 }
 0x7d8   :  { %4303 = vmatpush3.bf16.msra.mxu0 %v1379_v44  ;;  %4294 = vmatprep.mubr.msk.bf16.mxu0 %vm4953_vm0, %v4952_v1 }
 0x7d9   :  { %4304 = vmatprep.subr.bf16.mxu0 %v4952_v1 }
 0x7df   :  { %4295 = vmatmul.mubr.msk.bf16.gmra.mrb[64].mxu0 %vm368_vm4, %v1242_v49 }
 0x7e0   :  { %4298 = vmatprep.mubr.msk.bf16.mxu0 %vm4953_vm0, %v4952_v1 }
 0x7e7   :  { %4299 = vmatmul.mubr.msk.bf16.gmra.mrb[68].mxu0 %vm368_vm4, %v1244_v41 }
 0x7e8   :  { %4308 = vmatprep.mubr.msk.bf16.mxu0 %vm4953_vm0, %v4952_v1 }
 0x83c   :  { %v1061_v2 = vpop.xlane.xlu1 %1060 }
 0x83d   :  { %4763 = vrcp.f32 %v1061_v2 }
 0x83e   :  { %v1064_v7 = vpop.xlane.xlu0 %1063 }
 0x83f   :  { %4765 = vrcp.f32 %v1064_v7 }
 0x844   :  { %v1067_v51 = vpop.xlane.xlu0 %1066 }
 0x845   :  { %4767 = vrcp.f32 %v1067_v51 }
 0x847   :  { %v4764_v11 = vpop.eup %4763 }
 0x848   :  { %v1070_v6 = vpop.xlane.xlu0 %1069 }
 0x849   :  { %4769 = vrcp.f32 %v1070_v6  ;;  %v4766_v13 = vpop.eup %4765 }
 0x84c   :  { %v1073_v0 = vpop.xlane.xlu1 %1072 }
 0x84d   :  { %4771 = vrcp.f32 %v1073_v0 }
 0x84f   :  { %v4768_v20 = vpop.eup %4767 }
 0x853   :  { %v4770_v55 = vpop.eup %4769 }
 0x857   :  { %v4772_v36 = vpop.eup %4771 }
 0x88d   :  { %v1136_v9 = vpop.f32.mrb[48].mxu0 }
 0x88e   :  { %v4260_v12 = vpop.f32.mrb[49].mxu0  ;;  %v1158_v16 = vmul.f32 %v4764_v11, %v1136_v9 }
 0x88f   :  { %v1139_v14 = vpop.f32.mrb[50].mxu0 }
 0x890   :  { %v1159_v3 = vmul.f32 %v4766_v13, %v1139_v14  ;;  %v4261_v17 = vpop.f32.mrb[51].mxu0 }
 0x892   :  { %v1163_v10 = vpack.c.bf16 %v1159_v3, %v1158_v16 }
 0x894   :  { %4273 = vmatmul.mubr.msk.bf16.vlgmr.msra.gmra.mrb[60].mxu1 %vm368_vm4, %v1163_v10 }
 0x895   :  { %4658 = vmatpush3.bf16.msra.mxu1 %v1379_v44  ;;  %v1144_v8 = vpop.f32.mrb[52].mxu0  ;;  %4276 = vmatprep.mubr.msk.bf16.mxu1 %vm4953_vm0, %v4952_v1 }
 0x896   :  { %v4264_v21 = vpop.f32.mrb[53].mxu0  ;;  %4656 = vmatprep.subr.bf16.mxu1 %v4952_v1  ;;  %v1160_v23 = vmul.f32 %v4768_v20, %v1144_v8 }
 0x897   :  { %v1147_v22 = vpop.f32.mrb[54].mxu0 }
 0x898   :  { %v1161_v27 = vmul.f32 %v4770_v55, %v1147_v22  ;;  %v4265_v31 = vpop.f32.mrb[55].mxu0 }
 0x89a   :  { %v1164_v35 = vpack.c.bf16 %v1161_v27, %v1160_v23 }
 0x89c   :  { %4277 = vmatmul.mubr.msk.bf16.gmra.mrb[64].mxu1 %vm368_vm4, %v1164_v35 }
 0x89d   :  { %v1152_v37 = vpop.f32.mrb[56].mxu0  ;;  %4280 = vmatprep.mubr.msk.bf16.mxu1 %vm4953_vm0, %v4952_v1 }
 0x89e   :  { %v1162_v42 = vmul.f32 %v4772_v36, %v1152_v37  ;;  %v4268_v43 = vpop.f32.mrb[57].mxu0 }
 0x89f   :  { %v1155_v39 = vpop.f32.mrb[58].mxu0 }
 0x8a0   :  { %v4269_v33 = vpop.f32.mrb[59].mxu0  ;;  %v1165_v46 = vpack.c.bf16 %v1162_v42, %v1162_v42 }
 0x8a4   :  { %4281 = vmatmul.mubr.msk.bf16.gmra.mrb[68].mxu1 %vm368_vm4, %v1165_v46 }
 0x8a5   :  { %4312 = vmatprep.mubr.msk.bf16.mxu1 %vm4953_vm0, %v4952_v1 }
 0x8aa   :  { %v1303_v48 = vpop.f32.mrb[60].mxu0 }
 0x8ab   :  { %v1304_v50 = vadd.f32 %v1303_v48, %v5241_v26  ;;  %v4292_v52 = vpop.f32.mrb[61].mxu0 }
 0x8ac   :  { %v1306_v53 = vpop.f32.mrb[62].mxu0 }
 0x8ad   :  { %v1307_v54 = vadd.f32 %v1306_v53, %v5246_v29  ;;  %v4293_v56 = vpop.f32.mrb[63].mxu0  ;;  %v1325_v57 = vsel %vm443_vm5, %v1304_v50, -inf }
 0x8ae   :  { %1326 = vmax.xlane.f32.xlu1 %v1325_v57 }
 0x8af   :  { %v1328_v58 = vsel %vm443_vm5, %v1307_v54, -inf }
 0x8b0   :  { %1329 = vmax.xlane.f32.xlu0 %v1328_v58 }
 0x8b2   :  { %v1311_v60 = vpop.f32.mrb[64].mxu0 }
 0x8b3   :  { %v1312_v30 = vadd.f32 %v1311_v60, %v5261_v38  ;;  %v4296_v61 = vpop.f32.mrb[65].mxu0 }
 0x8b4   :  { %v1314_v41 = vpop.f32.mrb[66].mxu0 }
 0x8b5   :  { %v1315_v44 = vadd.f32 %v1314_v41, %v5266_v40  ;;  %v4297_v49 = vpop.f32.mrb[67].mxu0  ;;  %v1331_v26 = vsel %vm443_vm5, %v1312_v30, -inf }
 0x8b6   :  { %1332 = vmax.xlane.f32.xlu0 %v1331_v26 }
 0x8b7   :  { %v1334_v29 = vsel %vm443_vm5, %v1315_v44, -inf }
 0x8b8   :  { %1335 = vmax.xlane.f32.xlu1 %v1334_v29 }
 0x8ba   :  { %v1319_v59 = vpop.f32.mrb[68].mxu0 }
 0x8bb   :  { %v4300_v63 = vpop.f32.mrb[69].mxu0  ;;  %v5559_v38 = vadd.f32 %v1319_v59, %v5274_v47 }
 0x8bc   :  { %v1322_v7 = vpop.f32.mrb[70].mxu0 }
 0x8bd   :  { %v4301_v2 = vpop.f32.mrb[71].mxu0  ;;  %v1337_v40 = vsel %vm456_vm6, %v5559_v38, -inf }
 0x8c9   :  { %1380 = vrot.lane.b32.xlu1 %v5179_v62, %s6342_s20 }
 0x8cc   :  { %1382 = vrot.lane.b32.xlu0 %v5185_v4, %s6342_s20 }
 0x8ed   :  { %1338 = vmax.xlane.f32.xlu1 %v1337_v40 }
 0x93b   :  { %v1327_v51 = vpop.xlane.xlu1 %1326 }
 0x93c   :  { %v1340_v6 = vsub.f32 %v1304_v50, %v1327_v51 }
 0x93d   :  { %v1330_v9 = vpop.xlane.xlu0 %1329 }
 0x93e   :  { %v1345_v11 = vmul.f32 1.442695, %v1340_v6  ;;  %v1341_v12 = vsub.f32 %v1307_v54, %v1330_v9 }
 0x940   :  { %4773 = vpow2.f32 %v1345_v11  ;;  %v1347_v13 = vmul.f32 1.442695, %v1341_v12 }
 0x942   :  { %4775 = vpow2.f32 %v1347_v13 }
 0x943   :  { %v1333_v14 = vpop.xlane.xlu0 %1332 }
 0x944   :  { %v1342_v62 = vsub.f32 %v1312_v30, %v1333_v14 }
 0x945   :  { %v1336_v0 = vpop.xlane.xlu1 %1335 }
 0x946   :  { %v1349_v16 = vmul.f32 1.442695, %v1342_v62  ;;  %v1343_v4 = vsub.f32 %v1315_v44, %v1336_v0 }
 0x947   :  { %v1383_v10 = vpop.permute.xlu0 %1382 }
 0x948   :  { %4777 = vpow2.f32 %v1349_v16  ;;  %v1351_v47 = vmul.f32 1.442695, %v1343_v4  ;;  %v1396_v21 = vsel %vm515_vm7, %v1383_v10, 0 }
 0x949   :  { %v1381_v3 = vpop.permute.xlu1 %1380 }
 0x94a   :  { %v4774_v17 = vpop.eup %4773  ;;  %4779 = vpow2.f32 %v1351_v47  ;;  %4305 = vmatpush3.bf16.msra.mxu0 %v1381_v3  ;;  %4659 = vmatpush3.bf16.msra.mxu1 %v1381_v3 }
 0x94b   :  { %v1355_v8 = vsel %vm443_vm5, %v4774_v17, 0.0  ;;  %4306 = vmatprep.subr.bf16.mxu0 %v4952_v1  ;;  %4657 = vmatprep.subr.bf16.mxu1 %v4952_v1 }
 0x94c   :  { %v4776_v20 = vpop.eup %4775  ;;  %1356 = vadd.xlane.f32.xlu0 %v1355_v8 }
 0x94d   :  { %v1358_v55 = vsel %vm443_vm5, %v4776_v20, 0.0  ;;  %v1375_v22 = vpack.c.bf16 %v4776_v20, %v4774_v17 }
 0x94e   :  { %4307 = vmatpush3.bf16.msra.mxu0 %v1396_v21  ;;  %4660 = vmatpush3.bf16.msra.mxu1 %v1396_v21 }
 0x94f   :  { %1359 = vadd.xlane.f32.xlu1 %v1358_v55  ;;  %4320 = vmatprep.subr.bf16.mxu0 %v4952_v1 }
 0x950   :  { %4334 = vmatprep.subr.bf16.mxu1 %v4952_v1 }
 0x951   :  { %4309 = vmatmul.mubr.msk.bf16.vlgmr.msra.gmra.mrb[72].mxu0 %vm443_vm5, %v1375_v22 }
 0x952   :  { %v4778_v23 = vpop.eup %4777  ;;  %4322 = vmatprep.mubr.msk.bf16.mxu0 %vm4953_vm0, %v4952_v1 }
 0x953   :  { %v1361_v27 = vsel %vm443_vm5, %v4778_v23, 0.0 }
 0x954   :  { %v4780_v31 = vpop.eup %4779  ;;  %1362 = vadd.xlane.f32.xlu0 %v1361_v27 }
 0x955   :  { %v1376_v35 = vpack.c.bf16 %v4780_v31, %v4778_v23  ;;  %v1364_v36 = vsel %vm443_vm5, %v4780_v31, 0.0 }
 0x956   :  { %1365 = vadd.xlane.f32.xlu1 %v1364_v36 }
 0x957   :  { %4313 = vmatmul.mubr.msk.bf16.vlgmr.msra.gmra.mrb[72].mxu1 %vm443_vm5, %v1376_v35 }
 0x958   :  { %4316 = vmatprep.mubr.msk.bf16.mxu1 %vm4953_vm0, %v4952_v1 }
 0x967   :  { %v1212_v37 = vpop.f32.mrb[60].mxu1 }
 0x968   :  { %v5579_v42 = vadd.f32 %v1212_v37, %v5460_v5  ;;  %v4274_v43 = vpop.f32.mrb[61].mxu1  ;;  %v3801_v37 = vld [vmem:[%s6329_s9] ss:$0 sm:$0xff] }
 0x969   :  { %v1215_v39 = vpop.f32.mrb[62].mxu1 }
 0x96a   :  { %v5582_v33 = vadd.f32 %v1215_v39, %v5462_v19  ;;  %v4275_v46 = vpop.f32.mrb[63].mxu1 }
 0x96f   :  { %v1220_v48 = vpop.f32.mrb[64].mxu1 }
 0x970   :  { %v5585_v50 = vadd.f32 %v1220_v48, %v5464_v24  ;;  %v4278_v52 = vpop.f32.mrb[65].mxu1 }
 0x971   :  { %v1223_v53 = vpop.f32.mrb[66].mxu1 }
 0x972   :  { %v5588_v54 = vadd.f32 %v1223_v53, %v5466_v32  ;;  %v4279_v56 = vpop.f32.mrb[67].mxu1  ;;  %v355_v32 = vld [vmem:[%s6328_s8 + $0xc] sm:$0xf] }
 0x977   :  { %v1228_v57 = vpop.f32.mrb[68].mxu1 }
 0x978   :  { %v5591_v5 = vadd.f32 %v1228_v57, %v5470_v45  ;;  %v4282_v58 = vpop.f32.mrb[69].mxu1  ;;  %v1472_v45 = vsel %vm815_vm8, %v355_v32, 0 }
 0x979   :  { %v1231_v60 = vpop.f32.mrb[70].mxu1  ;;  %4321 = vmatpush3.bf16.msra.mxu0 %v1472_v45 }
 0x97a   :  { %v4283_v30 = vpop.f32.mrb[71].mxu1  ;;  %v1339_v19 = vpop.xlane.xlu1 %1338  ;;  %4350 = vmatprep.subr.bf16.mxu0 %v4952_v1 }
 0x97b   :  { %v1344_v61 = vsub.f32 %v5559_v38, %v1339_v19 }
 0x97d   :  { %v1353_v41 = vmul.f32 1.442695, %v1344_v61 }
 0x97f   :  { %4781 = vpow2.f32 %v1353_v41 }
 0x989   :  { %v4782_v24 = vpop.eup %4781 }
 0x98a   :  { %v1367_v44 = vsel %vm456_vm6, %v4782_v24, 0.0  ;;  %v1377_v49 = vpack.c.bf16 %v4782_v24, %v4782_v24 }
 0x98b   :  { %1368 = vadd.xlane.f32.xlu0 %v1367_v44 }
 0x98c   :  { %4317 = vmatmul.mubr.msk.bf16.gmra.mrb[76].mxu1 %vm443_vm5, %v1377_v49 }
 0x98d   :  { %4338 = vmatprep.mubr.msk.bf16.mxu1 %vm4953_vm0, %v4952_v1 }
 0x9d9   :  { %v1357_v26 = vpop.xlane.xlu0 %1356 }
 0x9da   :  { %4783 = vrcp.f32 %v1357_v26 }
 0x9dc   :  { %v1360_v29 = vpop.xlane.xlu1 %1359 }
 0x9dd   :  { %4785 = vrcp.f32 %v1360_v29 }
 0x9e1   :  { %v1363_v59 = vpop.xlane.xlu0 %1362 }
 0x9e2   :  { %4787 = vrcp.f32 %v1363_v59 }
 0x9e3   :  { %v1366_v63 = vpop.xlane.xlu1 %1365 }
 0x9e4   :  { %4789 = vrcp.f32 %v1366_v63  ;;  %v4784_v2 = vpop.eup %4783 }
 0x9e7   :  { %v4786_v40 = vpop.eup %4785 }
 0x9ec   :  { %v4788_v14 = vpop.eup %4787 }
 0x9ee   :  { %v4790_v0 = vpop.eup %4789 }
 0xa18   :  { %v1369_v10 = vpop.xlane.xlu0 %1368 }
 0xa19   :  { %4791 = vrcp.f32 %v1369_v10 }
 0xa23   :  { %v4792_v8 = vpop.eup %4791 }
 0xa24   :  { %v1432_v7 = vpop.f32.mrb[72].mxu0 }
 0xa25   :  { %v4310_v38 = vpop.f32.mrb[73].mxu0  ;;  %v1454_v6 = vmul.f32 %v4784_v2, %v1432_v7 }
 0xa26   :  { %v1435_v51 = vpop.f32.mrb[74].mxu0 }
 0xa27   :  { %v1455_v9 = vmul.f32 %v4786_v40, %v1435_v51  ;;  %v4311_v11 = vpop.f32.mrb[75].mxu0 }
 0xa29   :  { %v1459_v12 = vpack.c.bf16 %v1455_v9, %v1454_v6 }
 0xa2a   :  { %v1440_v13 = vpop.f32.mrb[72].mxu1 }
 0xa2b   :  { %v4314_v62 = vpop.f32.mrb[73].mxu1  ;;  %4323 = vmatmul.mubr.msk.bf16.vlgmr.msra.gmra.mrb[76].mxu0 %vm368_vm4, %v1459_v12  ;;  %v1456_v4 = vmul.f32 %v4788_v14, %v1440_v13 }
 0xa2c   :  { %v1443_v16 = vpop.f32.mrb[74].mxu1  ;;  %4326 = vmatprep.mubr.msk.bf16.mxu0 %vm4953_vm0, %v4952_v1 }
 0xa2d   :  { %v1457_v47 = vmul.f32 %v4790_v0, %v1443_v16  ;;  %v4315_v3 = vpop.f32.mrb[75].mxu1 }
 0xa2e   :  { %v4681_v3 = vld [vmem:[%s6332_s12] sm:$0xff]  }
 0xa2f   :  { %v1460_v17 = vpack.c.bf16 %v1457_v47, %v1456_v4  ;;  %4335 = vmatpush3.bf16.msra.mxu1 %v4681_v3 }
 0xa30   :  { %4336 = vmatprep.subr.bf16.mxu1 %v4952_v1 }
 0xa33   :  { %4327 = vmatmul.mubr.msk.bf16.gmra.mrb[80].mxu0 %vm368_vm4, %v1460_v17  ;;  %v4682_v17 = vld [vmem:[%s6332_s12 + $0x8] sm:$0xff]  }
 0xa34   :  { %4330 = vmatprep.mubr.msk.bf16.mxu0 %vm4953_vm0, %v4952_v1  ;;  %4337 = vmatpush3.bf16.msra.mxu1 %v4682_v17 }
 0xa35   :  { %4378 = vmatprep.subr.bf16.mxu1 %v4952_v1 }
 0xa5f   :  { %v1448_v20 = vpop.f32.mrb[76].mxu1 }
 0xa60   :  { %v1458_v21 = vmul.f32 %v4792_v8, %v1448_v20  ;;  %v4318_v55 = vpop.f32.mrb[77].mxu1 }
 0xa61   :  { %v1451_v22 = vpop.f32.mrb[78].mxu1 }
 0xa62   :  { %v1461_v23 = vpack.c.bf16 %v1458_v21, %v1458_v21  ;;  %v4319_v27 = vpop.f32.mrb[79].mxu1 }
 0xa64   :  { %4331 = vmatmul.mubr.msk.bf16.gmra.mrb[84].mxu0 %vm368_vm4, %v1461_v23 }
 0xa65   :  { %4366 = vmatprep.mubr.msk.bf16.mxu0 %vm4953_vm0, %v4952_v1 }
 0xafe   :  { %v1508_v31 = vpop.f32.mrb[76].mxu0 }
 0xaff   :  { %v1530_v35 = vadd.f32 %v1508_v31, %v5579_v42  ;;  %v4324_v36 = vpop.f32.mrb[77].mxu0 }
 0xb00   :  { %v1511_v43 = vpop.f32.mrb[78].mxu0 }
 0xb01   :  { %v1535_v39 = vadd.f32 %v1530_v35, %v5110_v15  ;;  %v1531_v46 = vadd.f32 %v1511_v43, %v5582_v33  ;;  %v4325_v48 = vpop.f32.mrb[79].mxu0 }
 0xb03   :  { %v5618_v52 = vadd.f32 %v3801_v37, %v1535_v39  ;;  %v1536_v53 = vadd.f32 %v1531_v46, %v5112_v18 }
 0xb05   :  { %v5621_v56 = vadd.f32 %v3801_v37, %v1536_v53  ;;  %v1554_v42 = vsel %vm171_vm2, %v5618_v52, 0.0 }
 0xb06   :  { %1555 = vadd.xlane.f32.xlu1 %v1554_v42  ;;  %v1516_v57 = vpop.f32.mrb[80].mxu0 }
 0xb07   :  { %v1532_v58 = vadd.f32 %v1516_v57, %v5585_v50  ;;  %v4328_v60 = vpop.f32.mrb[81].mxu0  ;;  %v1557_v15 = vsel %vm171_vm2, %v5621_v56, 0.0  ;;  %v3802_v57 = vld [vmem:[%s6330_s10] ss:$0 sm:$0xff] }
 0xb08   :  { %1558 = vadd.xlane.f32.xlu0 %v1557_v15  ;;  %v1519_v33 = vpop.f32.mrb[82].mxu0 }
 0xb09   :  { %v1537_v30 = vadd.f32 %v1532_v58, %v5124_v25  ;;  %v1533_v19 = vadd.f32 %v1519_v33, %v5588_v54  ;;  %v4329_v18 = vpop.f32.mrb[83].mxu0 }
 0xb0b   :  { %v5630_v61 = vadd.f32 %v3801_v37, %v1537_v30  ;;  %v1538_v41 = vadd.f32 %v1533_v19, %v5126_v28  ;;  %v3803_v30 = vld [vmem:[%s6331_s11] ss:$0 sm:$0xff] }
 0xb0d   :  { %v5633_v24 = vadd.f32 %v3801_v37, %v1538_v41  ;;  %v1560_v50 = vsel %vm171_vm2, %v5630_v61, 0.0 }
 0xb0e   :  { %1561 = vadd.xlane.f32.xlu1 %v1560_v50 }
 0xb0f   :  { %v1563_v44 = vsel %vm171_vm2, %v5633_v24, 0.0 }
 0xb10   :  { %1564 = vadd.xlane.f32.xlu0 %v1563_v44 }
 0xb37   :  { %v1524_v49 = vpop.f32.mrb[84].mxu0 }
 0xb38   :  { %v1534_v25 = vadd.f32 %v1524_v49, %v5591_v5  ;;  %v4332_v32 = vpop.f32.mrb[85].mxu0 }
 0xb39   :  { %v1527_v54 = vpop.f32.mrb[86].mxu0 }
 0xb3a   :  { %v1539_v45 = vadd.f32 %v1534_v25, %v5135_v34  ;;  %v4333_v26 = vpop.f32.mrb[87].mxu0 }
 0xb3c   :  { %v5641_v29 = vadd.f32 %v3801_v37, %v1539_v45 }
 0xb3e   :  { %v1566_v28 = vsel %vm184_vm3, %v5641_v29, 0.0 }
 0xb3f   :  { %1567 = vadd.xlane.f32.xlu1 %v1566_v28 }
 0xb93   :  { %v1556_v59 = vpop.xlane.xlu1 %1555 }
 0xb94   :  { %v1569_v63 = vmul.f32 0.03125, %v1556_v59 }
 0xb95   :  { %v1559_v7 = vpop.xlane.xlu0 %1558 }
 0xb96   :  { %v1574_v2 = vsub.f32 %v5618_v52, %v1569_v63  ;;  %v1570_v38 = vmul.f32 0.03125, %v1559_v7 }
 0xb98   :  { %v1575_v40 = vsub.f32 %v5621_v56, %v1570_v38  ;;  %v1579_v5 = vmul.f32 %v1574_v2, %v1574_v2 }
 0xb9a   :  { %v1584_v51 = vsel %vm171_vm2, %v1579_v5, 0.0  ;;  %v1580_v6 = vmul.f32 %v1575_v40, %v1575_v40 }
 0xb9b   :  { %v1562_v34 = vpop.xlane.xlu1 %1561  ;;  %1585 = vadd.xlane.f32.xlu0 %v1584_v51 }
 0xb9c   :  { %v1571_v9 = vmul.f32 0.03125, %v1562_v34  ;;  %v1587_v11 = vsel %vm171_vm2, %v1580_v6, 0.0  ;;  %v4683_v34 = vld [vmem:[%s6334_s14] sm:$0xff]  }
 0xb9d   :  { %v1565_v12 = vpop.xlane.xlu0 %1564  ;;  %1588 = vadd.xlane.f32.xlu1 %v1587_v11  ;;  %4351 = vmatpush3.bf16.msra.mxu0 %v4683_v34  ;;  %v4685_v11 = vld [vmem:[%s6334_s14 + $0x10] sm:$0xff]  }
 0xb9e   :  { %v1576_v13 = vsub.f32 %v5630_v61, %v1571_v9  ;;  %v1572_v14 = vmul.f32 0.03125, %v1565_v12  ;;  %4352 = vmatprep.subr.bf16.mxu0 %v4952_v1  ;;  %v4684_v9 = vld [vmem:[%s6334_s14 + $0x8] sm:$0xff]   ;;  %v4686_v12 = vld [vmem:[%s6334_s14 + $0x18] sm:$0xff]  }
 0xba0   :  { %v1577_v62 = vsub.f32 %v5633_v24, %v1572_v14  ;;  %v1581_v0 = vmul.f32 %v1576_v13, %v1576_v13  ;;  %v4688_v14 = vld [vmem:[%s6334_s14 + $0x28] sm:$0xff]  }
 0xba1   :  { %4353 = vmatpush3.bf16.msra.mxu0 %v4684_v9 }
 0xba2   :  { %v1590_v16 = vsel %vm171_vm2, %v1581_v0, 0.0  ;;  %v1582_v4 = vmul.f32 %v1577_v62, %v1577_v62  ;;  %4354 = vmatprep.subr.bf16.mxu0 %v4952_v1  ;;  %v4690_v0 = vld [vmem:[%s6334_s14 + $0x38] sm:$0xff]  }
 0xba3   :  { %1591 = vadd.xlane.f32.xlu0 %v1590_v16  ;;  %v3804_v16 = vld [vmem:[%s6333_s13] ss:$0 sm:$0xff] }
 0xba4   :  { %v1593_v47 = vsel %vm171_vm2, %v1582_v4, 0.0 }
 0xba5   :  { %1594 = vadd.xlane.f32.xlu1 %v1593_v47  ;;  %4355 = vmatpush3.bf16.msra.mxu0 %v4685_v11 }
 0xba6   :  { %4356 = vmatprep.subr.bf16.mxu0 %v4952_v1 }
 0xba9   :  { %4357 = vmatpush3.bf16.msra.mxu0 %v4686_v12 }
 0xbaa   :  { %4358 = vmatprep.subr.bf16.mxu0 %v4952_v1 }
 0xbcc   :  { %v1568_v10 = vpop.xlane.xlu1 %1567 }
 0xbcd   :  { %v1573_v8 = vmul.f32 0.03125, %v1568_v10 }
 0xbcf   :  { %v1578_v20 = vsub.f32 %v5641_v29, %v1573_v8 }
 0xbd1   :  { %v1583_v21 = vmul.f32 %v1578_v20, %v1578_v20 }
 0xbd3   :  { %v1596_v55 = vsel %vm184_vm3, %v1583_v21, 0.0 }
 0xbd4   :  { %1597 = vadd.xlane.f32.xlu0 %v1596_v55 }
 0xc28   :  { %v1586_v22 = vpop.xlane.xlu0 %1585 }
 0xc29   :  { %v1599_v23 = vmul.f32 0.03125, %v1586_v22 }
 0xc2a   :  { %v1589_v27 = vpop.xlane.xlu1 %1588 }
 0xc2b   :  { %v1604_v31 = vadd.f32 1e-05, %v1599_v23  ;;  %v1600_v35 = vmul.f32 0.03125, %v1589_v27 }
 0xc2d   :  { %4793 = vrsqrt.f32 %v1604_v31  ;;  %v1605_v36 = vadd.f32 1e-05, %v1600_v35 }
 0xc2f   :  { %4795 = vrsqrt.f32 %v1605_v36 }
 0xc30   :  { %v1592_v37 = vpop.xlane.xlu0 %1591 }
 0xc31   :  { %v1601_v43 = vmul.f32 0.03125, %v1592_v37 }
 0xc32   :  { %v1595_v39 = vpop.xlane.xlu1 %1594 }
 0xc33   :  { %v1606_v46 = vadd.f32 1e-05, %v1601_v43  ;;  %v1602_v48 = vmul.f32 0.03125, %v1595_v39 }
 0xc35   :  { %4797 = vrsqrt.f32 %v1606_v46  ;;  %v1607_v53 = vadd.f32 1e-05, %v1602_v48 }
 0xc37   :  { %v4794_v42 = vpop.eup %4793  ;;  %4799 = vrsqrt.f32 %v1607_v53 }
 0xc38   :  { %v1614_v58 = vmul.f32 %v4794_v42, %v1574_v2 }
 0xc39   :  { %v4796_v60 = vpop.eup %4795 }
 0xc3a   :  { %v1625_v15 = vmul.f32 %v3802_v57, %v1614_v58  ;;  %v1615_v33 = vmul.f32 %v4796_v60, %v1575_v40 }
 0xc3c   :  { %v1626_v19 = vmul.f32 %v3802_v57, %v1615_v33  ;;  %v1636_v18 = vadd.f32 %v3803_v30, %v1625_v15 }
 0xc3e   :  { %v1637_v41 = vadd.f32 %v3803_v30, %v1626_v19 }
 0xc3f   :  { %v4798_v50 = vpop.eup %4797 }
 0xc40   :  { %v1616_v44 = vmul.f32 %v4798_v50, %v1576_v13  ;;  %v1641_v49 = vpack.c.bf16 %v1637_v41, %v1636_v18  ;;  %v4687_v13 = vld [vmem:[%s6334_s14 + $0x20] sm:$0xff]  }
 0xc41   :  { %v4800_v25 = vpop.eup %4799  ;;  %4359 = vmatpush3.bf16.msra.mxu0 %v4687_v13 }
 0xc42   :  { %v1617_v32 = vmul.f32 %v4800_v25, %v1577_v62  ;;  %4339 = vmatmul.mubr.msk.bf16.vlgmr.msra.gmra.mrb[80].mxu1 %vm171_vm2, %v1641_v49  ;;  %v1627_v54 = vmul.f32 %v3802_v57, %v1616_v44  ;;  %4360 = vmatprep.subr.bf16.mxu0 %v4952_v1  ;;  %v4689_v62 = vld [vmem:[%s6334_s14 + $0x30] sm:$0xff]  }
 0xc43   :  { %4342 = vmatprep.mubr.msk.bf16.mxu1 %vm4953_vm0, %v4952_v1 }
 0xc44   :  { %v1628_v45 = vmul.f32 %v3802_v57, %v1617_v32  ;;  %v1638_v26 = vadd.f32 %v3803_v30, %v1627_v54 }
 0xc45   :  { %4361 = vmatpush3.bf16.msra.mxu0 %v4688_v14 }
 0xc46   :  { %v1639_v28 = vadd.f32 %v3803_v30, %v1628_v45  ;;  %4362 = vmatprep.subr.bf16.mxu0 %v4952_v1 }
 0xc48   :  { %v1642_v59 = vpack.c.bf16 %v1639_v28, %v1638_v26 }
 0xc49   :  { %4363 = vmatpush3.bf16.msra.mxu0 %v4689_v62 }
 0xc4a   :  { %4343 = vmatmul.mubr.msk.bf16.gmra.mrb[84].mxu1 %vm171_vm2, %v1642_v59  ;;  %4364 = vmatprep.subr.bf16.mxu0 %v4952_v1 }
 0xc4b   :  { %4346 = vmatprep.mubr.msk.bf16.mxu1 %vm4953_vm0, %v4952_v1 }
 0xc4d   :  { %4365 = vmatpush3.bf16.msra.mxu0 %v4690_v0 }
 0xc4e   :  { %4394 = vmatprep.subr.bf16.mxu0 %v4952_v1 }
 0xc61   :  { %v1598_v63 = vpop.xlane.xlu0 %1597 }
 0xc62   :  { %v1603_v7 = vmul.f32 0.03125, %v1598_v63 }
 0xc64   :  { %v1608_v2 = vadd.f32 1e-05, %v1603_v7 }
 0xc66   :  { %4801 = vrsqrt.f32 %v1608_v2 }
 0xc70   :  { %v4802_v38 = vpop.eup %4801 }
 0xc71   :  { %v1618_v40 = vmul.f32 %v4802_v38, %v1578_v20 }
 0xc73   :  { %v1629_v5 = vmul.f32 %v3802_v57, %v1618_v40 }
 0xc75   :  { %v1640_v51 = vadd.f32 %v3803_v30, %v1629_v5 }
 0xc77   :  { %v1643_v6 = vpack.c.bf16 %v1640_v51, %v1640_v51 }
 0xc79   :  { %4347 = vmatmul.mubr.msk.bf16.gmra.mrb[88].mxu1 %vm171_vm2, %v1643_v6 }
 0xc7a   :  { %4382 = vmatprep.mubr.msk.bf16.mxu1 %vm4953_vm0, %v4952_v1 }
 0xd15   :  { %v1710_v4 = vpop.f32.mrb[80].mxu1 }
 0xd16   :  { %v1711_v47 = vadd.f32 %v3804_v16, %v1710_v4  ;;  %v4340_v3 = vpop.f32.mrb[81].mxu1 }
 0xd17   :  { %v1713_v17 = vpop.f32.mrb[82].mxu1 }
 0xd18   :  { %v1732_v10 = vmul.f32 %v1711_v47, %v1711_v47  ;;  %v1714_v8 = vadd.f32 %v3804_v16, %v1713_v17  ;;  %v4341_v20 = vpop.f32.mrb[83].mxu1 }
 0xd1a   :  { %v1737_v21 = vmul.f32 %v1732_v10, %v1711_v47  ;;  %v1733_v55 = vmul.f32 %v1714_v8, %v1714_v8 }
 0xd1c   :  { %v1742_v22 = vmul.f32 0.044715, %v1737_v21  ;;  %v1738_v23 = vmul.f32 %v1733_v55, %v1714_v8 }
 0xd1d   :  { %v1718_v27 = vpop.f32.mrb[84].mxu1 }
 0xd1e   :  { %v1747_v31 = vadd.f32 %v1742_v22, %v1711_v47  ;;  %v1743_v35 = vmul.f32 0.044715, %v1738_v23  ;;  %v1719_v36 = vadd.f32 %v3804_v16, %v1718_v27  ;;  %v4344_v37 = vpop.f32.mrb[85].mxu1 }
 0xd1f   :  { %v1721_v43 = vpop.f32.mrb[86].mxu1 }
 0xd20   :  { %v1752_v39 = vmul.f32 0.7978846, %v1747_v31  ;;  %v1748_v46 = vadd.f32 %v1743_v35, %v1714_v8  ;;  %v1734_v48 = vmul.f32 %v1719_v36, %v1719_v36  ;;  %v1722_v53 = vadd.f32 %v3804_v16, %v1721_v43  ;;  %v4345_v42 = vpop.f32.mrb[87].mxu1 }
 0xd22   :  { %4803 = vtanh.f32 %v1752_v39  ;;  %v1753_v57 = vmul.f32 0.7978846, %v1748_v46  ;;  %v1739_v58 = vmul.f32 %v1734_v48, %v1719_v36  ;;  %v1735_v60 = vmul.f32 %v1722_v53, %v1722_v53 }
 0xd24   :  { %4805 = vtanh.f32 %v1753_v57  ;;  %v1744_v15 = vmul.f32 0.044715, %v1739_v58  ;;  %v1740_v33 = vmul.f32 %v1735_v60, %v1722_v53 }
 0xd26   :  { %v1749_v30 = vadd.f32 %v1744_v15, %v1719_v36  ;;  %v1745_v19 = vmul.f32 0.044715, %v1740_v33 }
 0xd28   :  { %v1754_v18 = vmul.f32 0.7978846, %v1749_v30  ;;  %v1750_v41 = vadd.f32 %v1745_v19, %v1722_v53 }
 0xd2a   :  { %4807 = vtanh.f32 %v1754_v18  ;;  %v1755_v50 = vmul.f32 0.7978846, %v1750_v41 }
 0xd2c   :  { %v4804_v44 = vpop.eup %4803  ;;  %4809 = vtanh.f32 %v1755_v50 }
 0xd2d   :  { %v1762_v49 = vadd.f32 1.0, %v4804_v44 }
 0xd2e   :  { %v4806_v25 = vpop.eup %4805 }
 0xd2f   :  { %v1767_v32 = vmul.f32 0.5, %v1762_v49  ;;  %v1763_v54 = vadd.f32 1.0, %v4806_v25 }
 0xd31   :  { %v1768_v45 = vmul.f32 0.5, %v1763_v54  ;;  %v1772_v26 = vmul.f32 %v1767_v32, %v1711_v47 }
 0xd33   :  { %v1773_v28 = vmul.f32 %v1768_v45, %v1714_v8 }
 0xd34   :  { %v4808_v59 = vpop.eup %4807 }
 0xd35   :  { %v1777_v63 = vpack.c.bf16 %v1773_v28, %v1772_v26  ;;  %v1764_v7 = vadd.f32 1.0, %v4808_v59 }
 0xd36   :  { %v4810_v2 = vpop.eup %4809 }
 0xd37   :  { %4367 = vmatmul.mubr.bf16.vlgmr.msra.gmra.mrb[88].mxu0 %v1777_v63  ;;  %v1765_v38 = vadd.f32 1.0, %v4810_v2  ;;  %v1769_v40 = vmul.f32 0.5, %v1764_v7 }
 0xd38   :  { %4370 = vmatprep.mubr.msk.bf16.mxu0 %vm4953_vm0, %v4952_v1 }
 0xd39   :  { %v1770_v5 = vmul.f32 0.5, %v1765_v38  ;;  %v1774_v51 = vmul.f32 %v1769_v40, %v1719_v36 }
 0xd3b   :  { %v1775_v6 = vmul.f32 %v1770_v5, %v1722_v53 }
 0xd3d   :  { %v1778_v34 = vpack.c.bf16 %v1775_v6, %v1774_v51 }
 0xd3f   :  { %4371 = vmatmul.mubr.bf16.gmra.mrb[92].mxu0 %v1778_v34 }
 0xd40   :  { %4374 = vmatprep.mubr.msk.bf16.mxu0 %vm4953_vm0, %v4952_v1 }
 0xd4c   :  { %v1726_v9 = vpop.f32.mrb[88].mxu1 }
 0xd4d   :  { %v1727_v11 = vadd.f32 %v3804_v16, %v1726_v9  ;;  %v4348_v12 = vpop.f32.mrb[89].mxu1  ;;  %v3810_v16 = vld [vmem:[%s6335_s15] ss:$0 sm:$0xff]  ;;  %v4691_v9 = vld [vmem:[%s6326_s6 + $0x10] sm:$0xff]  }
 0xd4e   :  { %v1729_v13 = vpop.f32.mrb[90].mxu1  ;;  %4379 = vmatpush3.bf16.msra.mxu1 %v4691_v9 }
 0xd4f   :  { %v1736_v14 = vmul.f32 %v1727_v11, %v1727_v11  ;;  %v4349_v62 = vpop.f32.mrb[91].mxu1  ;;  %4380 = vmatprep.subr.bf16.mxu1 %v4952_v1 }
 0xd51   :  { %v1741_v0 = vmul.f32 %v1736_v14, %v1727_v11 }
 0xd53   :  { %v1746_v4 = vmul.f32 0.044715, %v1741_v0 }
 0xd55   :  { %v1751_v47 = vadd.f32 %v1746_v4, %v1727_v11 }
 0xd57   :  { %v1756_v3 = vmul.f32 0.7978846, %v1751_v47 }
 0xd59   :  { %4811 = vtanh.f32 %v1756_v3 }
 0xd63   :  { %v4812_v17 = vpop.eup %4811 }
 0xd64   :  { %v1766_v10 = vadd.f32 1.0, %v4812_v17 }
 0xd66   :  { %v1771_v8 = vmul.f32 0.5, %v1766_v10 }
 0xd68   :  { %v1776_v20 = vmul.f32 %v1771_v8, %v1727_v11  ;;  %v4692_v11 = vld [vmem:[%s6326_s6 + $0x18] sm:$0xff]   ;;  %s4966_s6 = smov [#allocation2]  }
 0xd69   :  { %4381 = vmatpush3.bf16.msra.mxu1 %v4692_v11  ;;  %s3743_s28 = sshll.u32 %s4966_s6, 4  ;;  %s3744_s28 = int_to_ptr.vmem [resolvable:$true] %s3743_s28 }
 0xd6a   :  { %v1779_v21 = vpack.c.bf16 %v1776_v20, %v1776_v20  ;;  %4412 = vmatprep.subr.bf16.mxu1 %v4952_v1  ;;  %p4933_p1 = scmp.lt.s32.totalorder %s3744_s28, %s3744_s28 }
 0xd6c   :  { %4375 = vmatmul.mubr.bf16.gmra.mrb[96].mxu0 %v1779_v21 }
 0xd6d   :  { %4400 = vmatprep.mubr.msk.bf16.mxu0 %vm4953_vm0, %v4952_v1 }
 0xe0a   :  { %v1885_v55 = vpop.f32.mrb[88].mxu0 }
 0xe0b   :  { %v1886_v22 = vadd.f32 %v3810_v16, %v1885_v55  ;;  %v4368_v23 = vpop.f32.mrb[89].mxu0 }
 0xe0c   :  { %v1888_v27 = vpop.f32.mrb[90].mxu0 }
 0xe0d   :  { %v5723_v31 = vadd.f32 %v1886_v22, %v5618_v52  ;;  %v1889_v35 = vadd.f32 %v3810_v16, %v1888_v27  ;;  %v4369_v36 = vpop.f32.mrb[91].mxu0 }
 0xe0f   :  { %v5726_v37 = vadd.f32 %v1889_v35, %v5621_v56  ;;  %v1916_v43 = vsel %vm171_vm2, %v5723_v31, 0.0  ;;  %v3821_v35 = vld [vmem:[%s6324_s4 + $0x1] ss:$0 sm:$0xff] }
 0xe10   :  { %1917 = vadd.xlane.f32.xlu1 %v1916_v43 }
 0xe11   :  { %v1919_v39 = vsel %vm171_vm2, %v5726_v37, 0.0 }
 0xe12   :  { %1920 = vadd.xlane.f32.xlu0 %v1919_v39  ;;  %v1893_v46 = vpop.f32.mrb[92].mxu0 }
 0xe13   :  { %v1894_v48 = vadd.f32 %v3810_v16, %v1893_v46  ;;  %v4372_v53 = vpop.f32.mrb[93].mxu0 }
 0xe14   :  { %v1896_v42 = vpop.f32.mrb[94].mxu0 }
 0xe15   :  { %v5733_v52 = vadd.f32 %v1894_v48, %v5630_v61  ;;  %v1897_v57 = vadd.f32 %v3810_v16, %v1896_v42  ;;  %v4373_v58 = vpop.f32.mrb[95].mxu0  ;;  %v3822_v48 = vld [vmem:[%s6325_s5 + $0x1] ss:$0 sm:$0xff] }
 0xe17   :  { %v5736_v56 = vadd.f32 %v1897_v57, %v5633_v24  ;;  %v1922_v60 = vsel %vm171_vm2, %v5733_v52, 0.0 }
 0xe18   :  { %1923 = vadd.xlane.f32.xlu1 %v1922_v60 }
 0xe19   :  { %v1925_v15 = vsel %vm171_vm2, %v5736_v56, 0.0 }
 0xe1a   :  { %1926 = vadd.xlane.f32.xlu0 %v1925_v15 }
 0xe3f   :  { %v1901_v33 = vpop.f32.mrb[96].mxu0 }
 0xe40   :  { %v1902_v30 = vadd.f32 %v3810_v16, %v1901_v33  ;;  %v4376_v19 = vpop.f32.mrb[97].mxu0 }
 0xe41   :  { %v1904_v18 = vpop.f32.mrb[98].mxu0 }
 0xe42   :  { %v5743_v61 = vadd.f32 %v1902_v30, %v5641_v29  ;;  %v4377_v41 = vpop.f32.mrb[99].mxu0 }
 0xe44   :  { %v1928_v24 = vsel %vm184_vm3, %v5743_v61, 0.0 }
 0xe45   :  { %1929 = vadd.xlane.f32.xlu1 %v1928_v24 }
 0xe9d   :  { %v1918_v50 = vpop.xlane.xlu1 %1917 }
 0xe9e   :  { %v1931_v44 = vmul.f32 0.03125, %v1918_v50 }
 0xe9f   :  { %v1921_v49 = vpop.xlane.xlu0 %1920 }
 0xea0   :  { %v1936_v25 = vsub.f32 %v5723_v31, %v1931_v44  ;;  %v1932_v32 = vmul.f32 0.03125, %v1921_v49 }
 0xea2   :  { %v1937_v54 = vsub.f32 %v5726_v37, %v1932_v32  ;;  %v1941_v45 = vmul.f32 %v1936_v25, %v1936_v25 }
 0xea4   :  { %v1946_v26 = vsel %vm171_vm2, %v1941_v45, 0.0  ;;  %v1942_v28 = vmul.f32 %v1937_v54, %v1937_v54 }
 0xea5   :  { %v1924_v59 = vpop.xlane.xlu1 %1923  ;;  %1947 = vadd.xlane.f32.xlu0 %v1946_v26 }
 0xea6   :  { %v1933_v29 = vmul.f32 0.03125, %v1924_v59  ;;  %v1949_v63 = vsel %vm171_vm2, %v1942_v28, 0.0  ;;  %v3828_v59 = vld [vmem:[%s6327_s7 + $0x1] ss:$0 sm:$0xff] }
 0xea7   :  { %v1927_v7 = vpop.xlane.xlu0 %1926  ;;  %1950 = vadd.xlane.f32.xlu1 %v1949_v63 }
 0xea8   :  { %v1938_v2 = vsub.f32 %v5733_v52, %v1933_v29  ;;  %v1934_v38 = vmul.f32 0.03125, %v1927_v7 }
 0xeaa   :  { %v1939_v40 = vsub.f32 %v5736_v56, %v1934_v38  ;;  %v1943_v5 = vmul.f32 %v1938_v2, %v1938_v2 }
 0xeac   :  { %v1952_v51 = vsel %vm171_vm2, %v1943_v5, 0.0  ;;  %v1944_v6 = vmul.f32 %v1939_v40, %v1939_v40 }
 0xead   :  { %1953 = vadd.xlane.f32.xlu0 %v1952_v51 }
 0xeae   :  { %v1955_v34 = vsel %vm171_vm2, %v1944_v6, 0.0 }
 0xeaf   :  { %1956 = vadd.xlane.f32.xlu1 %v1955_v34 }
 0xed2   :  { %v1930_v12 = vpop.xlane.xlu1 %1929 }
 0xed3   :  { %v1935_v13 = vmul.f32 0.03125, %v1930_v12 }
 0xed5   :  { %v1940_v14 = vsub.f32 %v5743_v61, %v1935_v13 }
 0xed7   :  { %v1945_v62 = vmul.f32 %v1940_v14, %v1940_v14 }
 0xed9   :  { %v1958_v0 = vsel %vm184_vm3, %v1945_v62, 0.0 }
 0xeda   :  { %1959 = vadd.xlane.f32.xlu0 %v1958_v0 }
 0xf32   :  { %v1948_v4 = vpop.xlane.xlu0 %1947 }
 0xf33   :  { %v1961_v47 = vmul.f32 0.03125, %v1948_v4 }
 0xf34   :  { %v1951_v3 = vpop.xlane.xlu1 %1950 }
 0xf35   :  { %v1966_v17 = vadd.f32 1e-05, %v1961_v47  ;;  %v1962_v10 = vmul.f32 0.03125, %v1951_v3 }
 0xf37   :  { %4813 = vrsqrt.f32 %v1966_v17  ;;  %v1967_v8 = vadd.f32 1e-05, %v1962_v10 }
 0xf39   :  { %4815 = vrsqrt.f32 %v1967_v8 }
 0xf3a   :  { %v1954_v20 = vpop.xlane.xlu0 %1953 }
 0xf3b   :  { %v1963_v21 = vmul.f32 0.03125, %v1954_v20 }
 0xf3c   :  { %v1957_v16 = vpop.xlane.xlu1 %1956 }
 0xf3d   :  { %v1968_v55 = vadd.f32 1e-05, %v1963_v21  ;;  %v1964_v22 = vmul.f32 0.03125, %v1957_v16 }
 0xf3f   :  { %4817 = vrsqrt.f32 %v1968_v55  ;;  %v1969_v23 = vadd.f32 1e-05, %v1964_v22 }
 0xf41   :  { %v4814_v27 = vpop.eup %4813  ;;  %4819 = vrsqrt.f32 %v1969_v23 }
 0xf42   :  { %v1976_v36 = vmul.f32 %v4814_v27, %v1936_v25 }
 0xf43   :  { %v4816_v43 = vpop.eup %4815 }
 0xf44   :  { %v1987_v39 = vmul.f32 %v3821_v35, %v1976_v36  ;;  %v1977_v46 = vmul.f32 %v4816_v43, %v1937_v54 }
 0xf46   :  { %v1988_v53 = vmul.f32 %v3821_v35, %v1977_v46  ;;  %v1998_v42 = vadd.f32 %v3822_v48, %v1987_v39 }
 0xf48   :  { %v1999_v57 = vadd.f32 %v3822_v48, %v1988_v53 }
 0xf49   :  { %v4818_v58 = vpop.eup %4817 }
 0xf4a   :  { %v1978_v60 = vmul.f32 %v4818_v58, %v1938_v2  ;;  %v2003_v15 = vpack.c.bf16 %v1999_v57, %v1998_v42  ;;  %v5849_v57 = vld [vmem:[%s6323_s3] sm:$0xff] }
 0xf4b   :  { %v4820_v33 = vpop.eup %4819 }
 0xf4c   :  { %v1979_v30 = vmul.f32 %v4820_v33, %v1939_v40  ;;  %4383 = vmatmul.mubr.msk.bf16.vlgmr.msra.gmra.mrb[92].mxu1 %vm171_vm2, %v2003_v15  ;;  %v1989_v19 = vmul.f32 %v3821_v35, %v1978_v60  ;;  %v5857_v33 = vld [vmem:[%s6323_s3 + $0x8] sm:$0xff] }
 0xf4d   :  { %4386 = vmatprep.mubr.msk.bf16.mxu1 %vm4953_vm0, %v4952_v1 }
 0xf4e   :  { %v1990_v18 = vmul.f32 %v3821_v35, %v1979_v30  ;;  %v2000_v41 = vadd.f32 %v3822_v48, %v1989_v19 }
 0xf50   :  { %v2001_v24 = vadd.f32 %v3822_v48, %v1990_v18 }
 0xf52   :  { %v2004_v50 = vpack.c.bf16 %v2001_v24, %v2000_v41 }
 0xf54   :  { %4387 = vmatmul.mubr.msk.bf16.gmra.mrb[96].mxu1 %vm171_vm2, %v2004_v50  ;;  %v5866_v50 = vld [vmem:[%s6323_s3 + $0x10] sm:$0xff] }
 0xf55   :  { %4390 = vmatprep.mubr.msk.bf16.mxu1 %vm4953_vm0, %v4952_v1 }
 0xf67   :  { %v1960_v44 = vpop.xlane.xlu0 %1959 }
 0xf68   :  { %v1965_v49 = vmul.f32 0.03125, %v1960_v44 }
 0xf6a   :  { %v1970_v25 = vadd.f32 1e-05, %v1965_v49 }
 0xf6c   :  { %4821 = vrsqrt.f32 %v1970_v25 }
 0xf76   :  { %v4822_v32 = vpop.eup %4821 }
 0xf77   :  { %v1980_v54 = vmul.f32 %v4822_v32, %v1940_v14  ;;  %v5874_v32 = vld [vmem:[%s6323_s3 + $0x18] sm:$0xff] }
 0xf79   :  { %v1991_v45 = vmul.f32 %v3821_v35, %v1980_v54 }
 0xf7b   :  { %v2002_v26 = vadd.f32 %v3822_v48, %v1991_v45 }
 0xf7d   :  { %v2005_v28 = vpack.c.bf16 %v2002_v26, %v2002_v26 }
 0xf7f   :  { %4391 = vmatmul.mubr.msk.bf16.gmra.mrb[100].mxu1 %vm171_vm2, %v2005_v28 }
 0xf80   :  { %4418 = vmatprep.mubr.msk.bf16.mxu1 %vm4953_vm0, %v4952_v1 }
0x101f   :  { %v2074_v29 = vpop.f32.mrb[92].mxu1 }
0x1020   :  { %v4384_v63 = vpop.f32.mrb[93].mxu1  ;;  %v2075_v2 = vadd.f32 %v3828_v59, %v2074_v29  ;;  %v5883_v29 = vld [vmem:[%s6323_s3 + $0x20] sm:$0x3] }
0x1021   :  { %v2077_v7 = vpop.f32.mrb[94].mxu1 }
0x1022   :  { %v2078_v38 = vadd.f32 %v3828_v59, %v2077_v7  ;;  %v4385_v40 = vpop.f32.mrb[95].mxu1 }
0x1024   :  { %v5783_v5 = vpack.c.bf16 %v2078_v38, %v2075_v2 }
0x1026   :  { %2107 = vrot.lane.b32.xlu1 %v5783_v5, %s4954_s22 }
0x1027   :  { %v2082_v51 = vpop.f32.mrb[96].mxu1 }
0x1028   :  { %v4388_v6 = vpop.f32.mrb[97].mxu1  ;;  %v2083_v9 = vadd.f32 %v3828_v59, %v2082_v51 }
0x1029   :  { %v2085_v34 = vpop.f32.mrb[98].mxu1 }
0x102a   :  { %v2086_v11 = vadd.f32 %v3828_v59, %v2085_v34  ;;  %v4389_v12 = vpop.f32.mrb[99].mxu1 }
0x102c   :  { %v5787_v13 = vpack.c.bf16 %v2086_v11, %v2083_v9 }
0x102e   :  { %2109 = vrot.lane.b32.xlu0 %v5787_v13, %s4954_s22 }
0x1052   :  { %v2090_v14 = vpop.f32.mrb[100].mxu1 }
0x1053   :  { %v2091_v62 = vadd.f32 %v3828_v59, %v2090_v14  ;;  %v4392_v0 = vpop.f32.mrb[101].mxu1 }
0x1054   :  { %v2093_v4 = vpop.f32.mrb[102].mxu1 }
0x1055   :  { %v5791_v47 = vpack.c.bf16 %v2091_v62, %v2091_v62  ;;  %v4393_v3 = vpop.f32.mrb[103].mxu1 }
0x1057   :  { %2334 = vrot.lane.b32.xlu0 %v5791_v47, %s4955_s2  ;;  %2111 = vrot.lane.b32.xlu1 %v5791_v47, %s4954_s22 }
0x105b   :  { %2326 = vrot.lane.b32.xlu0 %v5787_v13, %s4956_s23  ;;  %2330 = vrot.lane.b32.xlu1 %v5783_v5, %s4955_s2 }
0x105f   :  { %2242 = vrot.lane.b32.xlu0 %v5787_v13, %s4957_s24  ;;  %2332 = vrot.lane.b32.xlu1 %v5787_v13, %s4955_s2 }
0x1063   :  { %2324 = vrot.lane.b32.xlu1 %v5783_v5, %s4956_s23 }
0x1067   :  { %2328 = vrot.lane.b32.xlu1 %v5791_v47, %s4956_s23 }
0x106b   :  { %2240 = vrot.lane.b32.xlu1 %v5783_v5, %s4957_s24 }
0x1098   :  { %v2108_v17 = vpop.permute.xlu1 %2107 }
0x1099   :  { %v2123_v10 = vsel %vm368_vm4, %v2108_v17, 0 }
0x109a   :  { %4395 = vmatpush3.bf16.xpose.msra.mxu0 %v2123_v10 }
0x109b   :  { %4396 = vmatprep.subr.bf16.mxu0 %v4952_v1 }
0x10a0   :  { %v2110_v8 = vpop.permute.xlu0 %2109 }
0x10a1   :  { %v2126_v20 = vsel %vm368_vm4, %v2110_v8, 0 }
0x10a2   :  { %4397 = vmatpush3.bf16.xpose.msra.mxu0 %v2126_v20 }
0x10a3   :  { %4398 = vmatprep.subr.bf16.mxu0 %v4952_v1 }
0x10c9   :  { %v2112_v21 = vpop.permute.xlu1 %2111  ;;  %v2335_v27 = vpop.permute.xlu0 %2334 }
0x10ca   :  { %v2129_v16 = vsel %vm368_vm4, %v2112_v21, 0  ;;  %v2352_v53 = vsel %vm368_vm4, %v2335_v27, 0 }
0x10cb   :  { %4399 = vmatpush3.bf16.xpose.msra.mxu0 %v2129_v16 }
0x10cc   :  { %4430 = vmatprep.subr.bf16.mxu0 %v4952_v1 }
0x10cd   :  { %v2331_v55 = vpop.permute.xlu1 %2330  ;;  %v2327_v39 = vpop.permute.xlu0 %2326 }
0x10ce   :  { %v2346_v23 = vsel %vm368_vm4, %v2331_v55, 0 }
0x10d1   :  { %v2333_v22 = vpop.permute.xlu1 %2332  ;;  %v2243_v48 = vpop.permute.xlu0 %2242 }
0x10d2   :  { %4401 = vmatmul.mubr.msk.bf16.vlgmr.msra.gmra.mrb[100].mxu0 %vm368_vm4, %v5783_v5  ;;  %v2349_v43 = vsel %vm368_vm4, %v2333_v22, 0 }
0x10d3   :  { %4431 = vmatpush3.bf16.xpose.msra.mxu0 %v2346_v23  ;;  %4404 = vmatprep.mubr.msk.bf16.mxu0 %vm4953_vm0, %v4952_v1 }
0x10d4   :  { %4432 = vmatprep.subr.bf16.mxu0 %v4952_v1 }
0x10d5   :  { %v2325_v35 = vpop.permute.xlu1 %2324 }
0x10d9   :  { %v2329_v36 = vpop.permute.xlu1 %2328 }
0x10da   :  { %4405 = vmatmul.mubr.msk.bf16.gmra.mrb[104].mxu0 %vm368_vm4, %v5787_v13 }
0x10db   :  { %4433 = vmatpush3.bf16.xpose.msra.mxu0 %v2349_v43  ;;  %4408 = vmatprep.mubr.msk.bf16.mxu0 %vm4953_vm0, %v4952_v1 }
0x10dc   :  { %4434 = vmatprep.subr.bf16.mxu0 %v4952_v1 }
0x10dd   :  { %v2241_v46 = vpop.permute.xlu1 %2240 }
0x10de   :  { %4413 = vmatpush3.bf16.msra.mxu1 %v2241_v46 }
0x10df   :  { %4414 = vmatprep.subr.bf16.mxu1 %v4952_v1 }
0x10e2   :  { %4409 = vmatmul.mubr.msk.bf16.gmra.mrb[108].mxu0 %vm368_vm4, %v5791_v47  ;;  %4415 = vmatpush3.bf16.msra.mxu1 %v2243_v48 }
0x10e3   :  { %4435 = vmatpush3.bf16.xpose.msra.mxu0 %v2352_v53  ;;  %4436 = vmatprep.mubr.msk.bf16.mxu0 %vm4953_vm0, %v4952_v1 }
0x10e4   :  { %4416 = vmatprep.subr.bf16.mxu1 %v4952_v1  ;;  %4466 = vmatprep.subr.bf16.mxu0 %v4952_v1 }
0x10ea   :  { %4437 = vmatmul.mubr.msk.bf16.vlgmr.msra.gmra.mrb[112].mxu0 %vm368_vm4, %v2325_v35 }
0x10eb   :  { %4440 = vmatprep.mubr.msk.bf16.mxu0 %vm4953_vm0, %v4952_v1 }
0x10f2   :  { %4441 = vmatmul.mubr.msk.bf16.gmra.mrb[116].mxu0 %vm368_vm4, %v2327_v39 }
0x10f3   :  { %4444 = vmatprep.mubr.msk.bf16.mxu0 %vm4953_vm0, %v4952_v1 }
0x10fa   :  { %4445 = vmatmul.mubr.msk.bf16.gmra.mrb[120].mxu0 %vm368_vm4, %v2329_v36 }
0x10fb   :  { %4468 = vmatprep.mubr.msk.bf16.mxu0 %vm4953_vm0, %v4952_v1 }
0x11a5   :  { %v2165_v42 = vpop.f32.mrb[100].mxu0 }
0x11a6   :  { %v5852_v58 = vadd.f32 %v5849_v57, %v2165_v42  ;;  %v4402_v60 = vpop.f32.mrb[101].mxu0 }
0x11a7   :  { %v2168_v15 = vpop.f32.mrb[102].mxu0 }
0x11a8   :  { %v2169_v30 = vadd.f32 %v5857_v33, %v2168_v15  ;;  %v4403_v19 = vpop.f32.mrb[103].mxu0  ;;  %v2187_v18 = vsel %vm443_vm5, %v5852_v58, -inf }
0x11a9   :  { %2188 = vmax.xlane.f32.xlu0 %v2187_v18 }
0x11aa   :  { %v2190_v41 = vsel %vm443_vm5, %v2169_v30, -inf }
0x11ab   :  { %2191 = vmax.xlane.f32.xlu1 %v2190_v41 }
0x11ad   :  { %v2173_v24 = vpop.f32.mrb[104].mxu0 }
0x11ae   :  { %v5869_v44 = vadd.f32 %v5866_v50, %v2173_v24  ;;  %v4406_v49 = vpop.f32.mrb[105].mxu0 }
0x11af   :  { %v2176_v25 = vpop.f32.mrb[106].mxu0 }
0x11b0   :  { %v2177_v54 = vadd.f32 %v5874_v32, %v2176_v25  ;;  %v4407_v45 = vpop.f32.mrb[107].mxu0  ;;  %v2193_v26 = vsel %vm443_vm5, %v5869_v44, -inf }
0x11b1   :  { %2194 = vmax.xlane.f32.xlu0 %v2193_v26 }
0x11b2   :  { %v2196_v28 = vsel %vm443_vm5, %v2177_v54, -inf }
0x11b5   :  { %2197 = vmax.xlane.f32.xlu0 %v2196_v28  ;;  %v2181_v59 = vpop.f32.mrb[108].mxu0 }
0x11b6   :  { %v2182_v63 = vadd.f32 %v5883_v29, %v2181_v59  ;;  %v4410_v7 = vpop.f32.mrb[109].mxu0 }
0x11b7   :  { %v2184_v2 = vpop.f32.mrb[110].mxu0 }
0x11b8   :  { %v4411_v38 = vpop.f32.mrb[111].mxu0  ;;  %v2199_v40 = vsel %vm456_vm6, %v2182_v63, -inf }
0x11b9   :  { %2200 = vmax.xlane.f32.xlu0 %v2199_v40 }
0x11bc   :  { %2244 = vrot.lane.b32.xlu1 %v5791_v47, %s4957_s24 }
0x11bd   :  { %v2388_v51 = vpop.f32.mrb[112].mxu0 }
0x11be   :  { %v4438_v6 = vpop.f32.mrb[113].mxu0  ;;  %v5904_v27 = vadd.f32 %v5849_v57, %v2388_v51 }
0x11bf   :  { %v2391_v34 = vpop.f32.mrb[114].mxu0 }
0x11c0   :  { %v2392_v9 = vadd.f32 %v5857_v33, %v2391_v34  ;;  %v4439_v11 = vpop.f32.mrb[115].mxu0  ;;  %v2410_v35 = vsel %vm443_vm5, %v5904_v27, -inf }
0x11c2   :  { %v2413_v12 = vsel %vm443_vm5, %v2392_v9, -inf }
0x11c3   :  { %2414 = vmax.xlane.f32.xlu0 %v2413_v12 }
0x11c5   :  { %v2396_v14 = vpop.f32.mrb[116].mxu0 }
0x11c6   :  { %v5892_v62 = vadd.f32 %v5866_v50, %v2396_v14  ;;  %v4442_v0 = vpop.f32.mrb[117].mxu0 }
0x11c7   :  { %v2399_v4 = vpop.f32.mrb[118].mxu0 }
0x11c8   :  { %v5895_v3 = vadd.f32 %v5874_v32, %v2399_v4  ;;  %v4443_v17 = vpop.f32.mrb[119].mxu0  ;;  %v2416_v10 = vsel %vm443_vm5, %v5892_v62, -inf }
0x11c9   :  { %2417 = vmax.xlane.f32.xlu0 %v2416_v10 }
0x11ca   :  { %v2419_v8 = vsel %vm443_vm5, %v5895_v3, -inf }
0x11cd   :  { %2420 = vmax.xlane.f32.xlu0 %v2419_v8  ;;  %v2404_v20 = vpop.f32.mrb[120].mxu0 }
0x11ce   :  { %v2405_v21 = vadd.f32 %v5883_v29, %v2404_v20  ;;  %v4446_v16 = vpop.f32.mrb[121].mxu0 }
0x11cf   :  { %v2407_v55 = vpop.f32.mrb[122].mxu0 }
0x11d0   :  { %v4447_v22 = vpop.f32.mrb[123].mxu0  ;;  %v2422_v23 = vsel %vm456_vm6, %v2405_v21, -inf }
0x11d1   :  { %2423 = vmax.xlane.f32.xlu0 %v2422_v23 }
0x11e0   :  { %2411 = vmax.xlane.f32.xlu1 %v2410_v35 }
0x11e7   :  { %2463 = vrot.lane.b32.xlu0 %v5783_v5, %s4958_s21 }
0x11f1   :  { %2465 = vrot.lane.b32.xlu1 %v5787_v13, %s4958_s21 }
0x11f5   :  { %2467 = vrot.lane.b32.xlu1 %v5791_v47, %s4958_s21 }
0x1236   :  { %v2189_v36 = vpop.xlane.xlu0 %2188 }
0x1237   :  { %v2202_v43 = vsub.f32 %v5852_v58, %v2189_v36 }
0x1238   :  { %v2192_v39 = vpop.xlane.xlu1 %2191 }
0x1239   :  { %v2207_v46 = vmul.f32 1.442695, %v2202_v43  ;;  %v2203_v48 = vsub.f32 %v2169_v30, %v2192_v39 }
0x123b   :  { %v2209_v53 = vmul.f32 1.442695, %v2203_v48  ;;  %4823 = vpow2.f32 %v2207_v46 }
0x123c   :  { %v2245_v42 = vpop.permute.xlu1 %2244 }
0x123d   :  { %4825 = vpow2.f32 %v2209_v53  ;;  %v2258_v60 = vsel %vm515_vm7, %v2245_v42, 0 }
0x123e   :  { %4417 = vmatpush3.bf16.msra.mxu1 %v2258_v60  ;;  %v2195_v15 = vpop.xlane.xlu0 %2194 }
0x123f   :  { %v2204_v19 = vsub.f32 %v5869_v44, %v2195_v15  ;;  %4448 = vmatprep.subr.bf16.mxu1 %v4952_v1 }
0x1241   :  { %v2211_v18 = vmul.f32 1.442695, %v2204_v19 }
0x1242   :  { %v2198_v41 = vpop.xlane.xlu0 %2197 }
0x1243   :  { %v2205_v24 = vsub.f32 %v2177_v54, %v2198_v41  ;;  %4827 = vpow2.f32 %v2211_v18  ;;  %v3835_v18 = vld [vmem:[%s6328_s8 + $0x14] sm:$0xf] }
0x1244   :  { %v2557_v41 = vsel %vm815_vm8, %v3835_v18, 0 }
0x1245   :  { %v2213_v49 = vmul.f32 1.442695, %v2205_v24  ;;  %v5918_v58 = vpop.eup %4823  ;;  %4467 = vmatpush3.bf16.msra.mxu0 %v2557_v41 }
0x1246   :  { %v2201_v30 = vpop.xlane.xlu0 %2200  ;;  %4494 = vmatprep.subr.bf16.mxu0 %v4952_v1  ;;  %v2217_v24 = vsel %vm443_vm5, %v5918_v58, 0.0 }
0x1247   :  { %v5920_v25 = vpop.eup %4825  ;;  %4829 = vpow2.f32 %v2213_v49  ;;  %v2206_v45 = vsub.f32 %v2182_v63, %v2201_v30  ;;  %v3834_v30 = vld [vmem:[%s6328_s8 + $0x10] sm:$0xf] }
0x1248   :  { %v2237_v26 = vpack.c.bf16 %v5920_v25, %v5918_v58  ;;  %v2220_v60 = vsel %vm443_vm5, %v5920_v25, 0.0  ;;  %v2625_v25 = vsel %vm815_vm8, %v3834_v30, 0 }
0x1249   :  { %v2215_v28 = vmul.f32 1.442695, %v2206_v45 }
0x124a   :  { %4419 = vmatmul.mubr.msk.bf16.vlgmr.msra.gmra.mrb[104].mxu1 %vm443_vm5, %v2237_v26 }
0x124b   :  { %4422 = vmatprep.mubr.msk.bf16.mxu1 %vm4953_vm0, %v4952_v1  ;;  %4831 = vpow2.f32 %v2215_v28 }
0x124d   :  { %v5927_v44 = vpop.eup %4827 }
0x124e   :  { %v2223_v15 = vsel %vm443_vm5, %v5927_v44, 0.0 }
0x1250   :  { %v2415_v54 = vpop.xlane.xlu0 %2414 }
0x1251   :  { %v5929_v59 = vpop.eup %4829  ;;  %v2426_v7 = vsub.f32 %v2392_v9, %v2415_v54 }
0x1252   :  { %v2238_v2 = vpack.c.bf16 %v5929_v59, %v5927_v44  ;;  %v2226_v19 = vsel %vm443_vm5, %v5929_v59, 0.0 }
0x1253   :  { %v2432_v63 = vmul.f32 1.442695, %v2426_v7 }
0x1254   :  { %4423 = vmatmul.mubr.msk.bf16.gmra.mrb[108].mxu1 %vm443_vm5, %v2238_v2 }
0x1255   :  { %4833 = vpow2.f32 %v2432_v63  ;;  %4426 = vmatprep.mubr.msk.bf16.mxu1 %vm4953_vm0, %v4952_v1  ;;  %v5936_v40 = vpop.eup %4831 }
0x1256   :  { %v2418_v38 = vpop.xlane.xlu0 %2417  ;;  %v2239_v6 = vpack.c.bf16 %v5936_v40, %v5936_v40  ;;  %v2229_v49 = vsel %vm456_vm6, %v5936_v40, 0.0 }
0x1257   :  { %v2427_v4 = vsub.f32 %v5892_v62, %v2418_v38 }
0x1259   :  { %v2434_v16 = vmul.f32 1.442695, %v2427_v4 }
0x125a   :  { %v2421_v51 = vpop.xlane.xlu0 %2420 }
0x125c   :  { %4427 = vmatmul.mubr.msk.bf16.gmra.mrb[112].mxu1 %vm443_vm5, %v2239_v6 }
0x125d   :  { %4454 = vmatprep.mubr.msk.bf16.mxu1 %vm4953_vm0, %v4952_v1 }
0x125e   :  { %v2424_v34 = vpop.xlane.xlu0 %2423 }
0x125f   :  { %v4834_v9 = vpop.eup %4833  ;;  %v2429_v11 = vsub.f32 %v2405_v21, %v2424_v34  ;;  %v2428_v21 = vsub.f32 %v5895_v3, %v2421_v51 }
0x1260   :  { %v2443_v12 = vsel %vm443_vm5, %v4834_v9, 0.0 }
0x1261   :  { %v2438_v14 = vmul.f32 1.442695, %v2429_v11  ;;  %2444 = vadd.xlane.f32.xlu0 %v2443_v12  ;;  %v2436_v23 = vmul.f32 1.442695, %v2428_v21 }
0x1262   :  { %v2464_v0 = vpop.permute.xlu0 %2463 }
0x1263   :  { %4835 = vpow2.f32 %v2438_v14  ;;  %4449 = vmatpush3.bf16.msra.mxu1 %v2464_v0 }
0x1264   :  { %4450 = vmatprep.subr.bf16.mxu1 %v4952_v1 }
0x126d   :  { %v4836_v17 = vpop.eup %4835  ;;  %v2412_v10 = vpop.xlane.xlu1 %2411 }
0x126e   :  { %v2425_v8 = vsub.f32 %v5904_v27, %v2412_v10  ;;  %v2452_v20 = vsel %vm456_vm6, %v4836_v17, 0.0  ;;  %v2462_v42 = vpack.c.bf16 %v4836_v17, %v4836_v17 }
0x126f   :  { %2453 = vadd.xlane.f32.xlu0 %v2452_v20 }
0x1270   :  { %v2430_v55 = vmul.f32 1.442695, %v2425_v8 }
0x1271   :  { %v2466_v22 = vpop.permute.xlu1 %2465 }
0x1272   :  { %4837 = vpow2.f32 %v2430_v55  ;;  %4451 = vmatpush3.bf16.msra.mxu1 %v2466_v22 }
0x1273   :  { %4452 = vmatprep.subr.bf16.mxu1 %v4952_v1  ;;  %4839 = vpow2.f32 %v2434_v16 }
0x1274   :  { %4841 = vpow2.f32 %v2436_v23 }
0x1275   :  { %v2468_v35 = vpop.permute.xlu1 %2467 }
0x1276   :  { %v2481_v62 = vsel %vm515_vm7, %v2468_v35, 0 }
0x1277   :  { %4453 = vmatpush3.bf16.msra.mxu1 %v2481_v62 }
0x1278   :  { %4480 = vmatprep.subr.bf16.mxu1 %v4952_v1 }
0x127c   :  { %v4838_v27 = vpop.eup %4837 }
0x127d   :  { %v2460_v36 = vpack.c.bf16 %v4834_v9, %v4838_v27  ;;  %v2440_v43 = vsel %vm443_vm5, %v4838_v27, 0.0  ;;  %v4840_v3 = vpop.eup %4839 }
0x127e   :  { %2441 = vadd.xlane.f32.xlu1 %v2440_v43  ;;  %v2446_v39 = vsel %vm443_vm5, %v4840_v3, 0.0  ;;  %v4842_v46 = vpop.eup %4841 }
0x127f   :  { %4455 = vmatmul.mubr.msk.bf16.vlgmr.msra.gmra.mrb[116].mxu1 %vm443_vm5, %v2460_v36  ;;  %v2449_v48 = vsel %vm443_vm5, %v4842_v46, 0.0  ;;  %v2461_v53 = vpack.c.bf16 %v4842_v46, %v4840_v3 }
0x1280   :  { %4458 = vmatprep.mubr.msk.bf16.mxu1 %vm4953_vm0, %v4952_v1  ;;  %4481 = vmatpush3.bf16.msra.mxu1 %v2625_v25 }
0x1281   :  { %4512 = vmatprep.subr.bf16.mxu1 %v4952_v1 }
0x1282   :  { %2447 = vadd.xlane.f32.xlu1 %v2446_v39 }
0x1285   :  { %2691 = vrot.lane.b32.xlu0 %v5787_v13, %s4959_s25 }
0x1286   :  { %2450 = vadd.xlane.f32.xlu1 %v2449_v48 }
0x1287   :  { %4459 = vmatmul.mubr.msk.bf16.gmra.mrb[120].mxu1 %vm443_vm5, %v2461_v53 }
0x1288   :  { %4462 = vmatprep.mubr.msk.bf16.mxu1 %vm4953_vm0, %v4952_v1 }
0x1289   :  { %2687 = vrot.lane.b32.xlu0 %v5791_v47, %s4960_s26 }
0x128f   :  { %4463 = vmatmul.mubr.msk.bf16.gmra.mrb[124].mxu1 %vm443_vm5, %v2462_v42 }
0x1290   :  { %4482 = vmatprep.mubr.msk.bf16.mxu1 %vm4953_vm0, %v4952_v1 }
0x1297   :  { %2689 = vrot.lane.b32.xlu1 %v5783_v5, %s4959_s25 }
0x129b   :  { %2693 = vrot.lane.b32.xlu1 %v5791_v47, %s4959_s25 }
0x129f   :  { %2683 = vrot.lane.b32.xlu1 %v5783_v5, %s4960_s26 }
0x12a3   :  { %2685 = vrot.lane.b32.xlu1 %v5787_v13, %s4960_s26  ;;  %s6354_s26 = smov 72  }
0x12a8   :  { %2221 = vadd.xlane.f32.xlu0 %v2220_v60 }
0x12ac   :  { %2224 = vadd.xlane.f32.xlu0 %v2223_v15 }
0x12b0   :  { %2227 = vadd.xlane.f32.xlu0 %v2226_v19 }
0x12c6   :  { %2822 = vrot.lane.b32.xlu0 %v5783_v5, %s4961_s29 }
0x12c7   :  { %2218 = vadd.xlane.f32.xlu1 %v2217_v24 }
0x12cb   :  { %2230 = vadd.xlane.f32.xlu1 %v2229_v49 }
0x12dc   :  { %2824 = vrot.lane.b32.xlu1 %v5787_v13, %s4961_s29 }
0x12e0   :  { %2826 = vrot.lane.b32.xlu1 %v5791_v47, %s4961_s29  ;;  %s6355_s29 = smov 104  }
0x12ee   :  { %v2445_v44 = vpop.xlane.xlu0 %2444 }
0x12fc   :  { %v2454_v54 = vpop.xlane.xlu0 %2453 }
0x1300   :  { %v2692_v38 = vpop.permute.xlu0 %2691 }
0x1304   :  { %v6008_v34 = vpop.permute.xlu0 %2687 }
0x130b   :  { %v2442_v40 = vpop.xlane.xlu1 %2441 }
0x130f   :  { %v2448_v11 = vpop.xlane.xlu1 %2447 }
0x1313   :  { %v2451_v0 = vpop.xlane.xlu1 %2450 }
0x1317   :  { %v2690_v10 = vpop.permute.xlu1 %2689 }
0x1318   :  { %v2705_v60 = vsel %vm368_vm4, %v2690_v10, 0 }
0x131b   :  { %v6010_v8 = vpop.permute.xlu1 %2693 }
0x131d   :  { %v6002_v58 = vpop.f32.mrb[104].mxu1 }
0x131e   :  { %v4420_v45 = vpop.f32.mrb[105].mxu1 }
0x131f   :  { %v6004_v26 = vpop.f32.mrb[106].mxu1  ;;  %v6016_v22 = vpop.permute.xlu1 %2683 }
0x1320   :  { %v4421_v28 = vpop.f32.mrb[107].mxu1 }
0x1323   :  { %v6020_v35 = vpop.permute.xlu1 %2685 }
0x1327   :  { %v2302_v59 = vpop.f32.mrb[108].mxu1 }
0x1328   :  { %v4424_v7 = vpop.f32.mrb[109].mxu1 }
0x1329   :  { %v2305_v2 = vpop.f32.mrb[110].mxu1 }
0x132a   :  { %v4425_v63 = vpop.f32.mrb[111].mxu1 }
0x132f   :  { %v6006_v51 = vpop.f32.mrb[112].mxu1 }
0x1330   :  { %v4428_v6 = vpop.f32.mrb[113].mxu1 }
0x1331   :  { %v2313_v9 = vpop.f32.mrb[114].mxu1 }
0x1332   :  { %v4429_v12 = vpop.f32.mrb[115].mxu1 }
0x1335   :  { %v2222_v14 = vpop.xlane.xlu0 %2221 }
0x1339   :  { %v2225_v4 = vpop.xlane.xlu0 %2224 }
0x133a   :  { %4843 = vrcp.f32 %v2225_v4 }
0x133d   :  { %v2228_v17 = vpop.xlane.xlu0 %2227 }
0x133e   :  { %4845 = vrcp.f32 %v2228_v17 }
0x133f   :  { %4847 = vrcp.f32 %v2445_v44 }
0x1340   :  { %4849 = vrcp.f32 %v2442_v40 }
0x1341   :  { %4851 = vrcp.f32 %v2448_v11 }
0x1342   :  { %4853 = vrcp.f32 %v2451_v0  ;;  %v2711_v0 = vsel %vm368_vm4, %v6010_v8, 0 }
0x1343   :  { %4855 = vrcp.f32 %v2222_v14 }
0x1344   :  { %v4844_v20 = vpop.eup %4843 }
0x1345   :  { %v6012_v21 = vmul.f32 %v4844_v20, %v2302_v59 }
0x1348   :  { %v4846_v16 = vpop.eup %4845 }
0x1349   :  { %v6014_v55 = vmul.f32 %v4846_v16, %v2305_v2  ;;  %v4848_v27 = vpop.eup %4847  ;;  %v2708_v2 = vsel %vm368_vm4, %v2692_v38, 0 }
0x134a   :  { %v4850_v43 = vpop.eup %4849 }
0x134b   :  { %v2322_v23 = vpack.c.bf16 %v6014_v55, %v6012_v21  ;;  %v4852_v19 = vpop.eup %4851 }
0x134c   :  { %v4854_v41 = vpop.eup %4853 }
0x134d   :  { %v4856_v49 = vpop.eup %4855 }
0x134e   :  { %v2317_v59 = vmul.f32 %v4856_v49, %v6004_v26  ;;  %v2823_v26 = vpop.permute.xlu0 %2822 }
0x1352   :  { %v2517_v62 = vpop.f32.mrb[116].mxu1 }
0x1353   :  { %v4456_v36 = vpop.f32.mrb[117].mxu1  ;;  %v2539_v46 = vmul.f32 %v4850_v43, %v2517_v62 }
0x1354   :  { %v2219_v3 = vpop.xlane.xlu1 %2218  ;;  %v2520_v39 = vpop.f32.mrb[118].mxu1 }
0x1355   :  { %4857 = vrcp.f32 %v2219_v3  ;;  %v2540_v48 = vmul.f32 %v4848_v27, %v2520_v39  ;;  %v4457_v53 = vpop.f32.mrb[119].mxu1 }
0x1356   :  { %4859 = vrcp.f32 %v2454_v54 }
0x1357   :  { %v2544_v42 = vpack.c.bf16 %v2540_v48, %v2539_v46 }
0x1358   :  { %v2231_v30 = vpop.xlane.xlu1 %2230 }
0x1359   :  { %4469 = vmatmul.mubr.msk.bf16.vlgmr.msra.gmra.mrb[124].mxu0 %vm368_vm4, %v2544_v42  ;;  %4861 = vrcp.f32 %v2231_v30 }
0x135a   :  { %4495 = vmatpush3.bf16.xpose.msra.mxu0 %v2705_v60  ;;  %v2525_v15 = vpop.f32.mrb[120].mxu1  ;;  %4472 = vmatprep.mubr.msk.bf16.mxu0 %vm4953_vm0, %v4952_v1 }
0x135b   :  { %v4460_v18 = vpop.f32.mrb[121].mxu1  ;;  %4496 = vmatprep.subr.bf16.mxu0 %v4952_v1  ;;  %v2541_v25 = vmul.f32 %v4852_v19, %v2525_v15 }
0x135c   :  { %v2528_v24 = vpop.f32.mrb[122].mxu1  ;;  %v2825_v9 = vpop.permute.xlu1 %2824 }
0x135d   :  { %v2542_v45 = vmul.f32 %v4854_v41, %v2528_v24  ;;  %v4461_v28 = vpop.f32.mrb[123].mxu1 }
0x135f   :  { %v4858_v44 = vpop.eup %4857  ;;  %v2545_v54 = vpack.c.bf16 %v2542_v45, %v2541_v25 }
0x1360   :  { %v2316_v7 = vmul.f32 %v4858_v44, %v6002_v58  ;;  %v4860_v63 = vpop.eup %4859  ;;  %v2827_v4 = vpop.permute.xlu1 %2826 }
0x1361   :  { %4473 = vmatmul.mubr.msk.bf16.gmra.mrb[128].mxu0 %vm368_vm4, %v2545_v54  ;;  %v2840_v10 = vsel %vm515_vm7, %v2827_v4, 0 }
0x1362   :  { %v2321_v40 = vpack.c.bf16 %v2317_v59, %v2316_v7  ;;  %4497 = vmatpush3.bf16.xpose.msra.mxu0 %v2708_v2  ;;  %v2533_v6 = vpop.f32.mrb[124].mxu1  ;;  %4476 = vmatprep.mubr.msk.bf16.mxu0 %vm4953_vm0, %v4952_v1 }
0x1363   :  { %v2543_v11 = vmul.f32 %v4860_v63, %v2533_v6  ;;  %v4464_v12 = vpop.f32.mrb[125].mxu1  ;;  %4498 = vmatprep.subr.bf16.mxu0 %v4952_v1  ;;  %v4862_v17 = vpop.eup %4861 }
0x1364   :  { %v2536_v14 = vpop.f32.mrb[126].mxu1  ;;  %4483 = vmatmul.mubr.msk.bf16.vlgmr.msra.gmra.mrb[128].mxu1 %vm368_vm4, %v2321_v40  ;;  %v2320_v8 = vmul.f32 %v4862_v17, %v6006_v51 }
0x1365   :  { %4513 = vmatpush3.bf16.msra.mxu1 %v2823_v26  ;;  %v4465_v58 = vpop.f32.mrb[127].mxu1  ;;  %4486 = vmatprep.mubr.msk.bf16.mxu1 %vm4953_vm0, %v4952_v1  ;;  %v2546_v38 = vpack.c.bf16 %v2543_v11, %v2543_v11 }
0x1366   :  { %4514 = vmatprep.subr.bf16.mxu1 %v4952_v1  ;;  %v2323_v20 = vpack.c.bf16 %v2320_v8, %v2320_v8 }
0x1369   :  { %4515 = vmatpush3.bf16.msra.mxu1 %v2825_v9  ;;  %4477 = vmatmul.mubr.msk.bf16.gmra.mrb[132].mxu0 %vm368_vm4, %v2546_v38 }
0x136a   :  { %4499 = vmatpush3.bf16.xpose.msra.mxu0 %v2711_v0  ;;  %4516 = vmatprep.subr.bf16.mxu1 %v4952_v1 }
0x136b   :  { %4500 = vmatprep.mubr.msk.bf16.mxu0 %vm4953_vm0, %v4952_v1  ;;  %4530 = vmatprep.subr.bf16.mxu0 %v4952_v1 }
0x136c   :  { %4487 = vmatmul.mubr.msk.bf16.gmra.mrb[132].mxu1 %vm368_vm4, %v2322_v23 }
0x136d   :  { %4517 = vmatpush3.bf16.msra.mxu1 %v2840_v10  ;;  %4490 = vmatprep.mubr.msk.bf16.mxu1 %vm4953_vm0, %v4952_v1 }
0x136e   :  { %4544 = vmatprep.subr.bf16.mxu1 %v4952_v1 }
0x1371   :  { %4501 = vmatmul.mubr.msk.bf16.vlgmr.msra.gmra.mrb[136].mxu0 %vm368_vm4, %v6016_v22 }
0x1372   :  { %4504 = vmatprep.mubr.msk.bf16.mxu0 %vm4953_vm0, %v4952_v1 }
0x1374   :  { %4491 = vmatmul.mubr.msk.bf16.gmra.mrb[136].mxu1 %vm368_vm4, %v2323_v20 }
0x1375   :  { %4518 = vmatprep.mubr.msk.bf16.mxu1 %vm4953_vm0, %v4952_v1 }
0x1379   :  { %4505 = vmatmul.mubr.msk.bf16.gmra.mrb[140].mxu0 %vm368_vm4, %v6020_v35 }
0x137a   :  { %4508 = vmatprep.mubr.msk.bf16.mxu0 %vm4953_vm0, %v4952_v1 }
0x1381   :  { %4509 = vmatmul.mubr.msk.bf16.gmra.mrb[144].mxu0 %vm368_vm4, %v6008_v34 }
0x1382   :  { %4532 = vmatprep.mubr.msk.bf16.mxu0 %vm4953_vm0, %v4952_v1 }
0x142c   :  { %v2593_v51 = vpop.f32.mrb[124].mxu0 }
0x142d   :  { %v4470_v16 = vpop.f32.mrb[125].mxu0 }
0x142e   :  { %v2596_v21 = vpop.f32.mrb[126].mxu0 }
0x142f   :  { %v4471_v55 = vpop.f32.mrb[127].mxu0 }
0x1434   :  { %v2601_v22 = vpop.f32.mrb[128].mxu0 }
0x1435   :  { %v4474_v23 = vpop.f32.mrb[129].mxu0 }
0x1436   :  { %v2604_v62 = vpop.f32.mrb[130].mxu0 }
0x1437   :  { %v4475_v27 = vpop.f32.mrb[131].mxu0  ;;  %v2661_v36 = vpop.f32.mrb[128].mxu1 }
0x1438   :  { %v6069_v43 = vadd.f32 %v2661_v36, %v2593_v51  ;;  %v4484_v35 = vpop.f32.mrb[129].mxu1 }
0x1439   :  { %v2664_v3 = vpop.f32.mrb[130].mxu1 }
0x143a   :  { %v6071_v39 = vadd.f32 %v2664_v3, %v2596_v21  ;;  %v4485_v46 = vpop.f32.mrb[131].mxu1 }
0x143c   :  { %v2609_v34 = vpop.f32.mrb[132].mxu0 }
0x143d   :  { %v4478_v48 = vpop.f32.mrb[133].mxu0 }
0x143e   :  { %v2612_v53 = vpop.f32.mrb[134].mxu0 }
0x143f   :  { %v4479_v42 = vpop.f32.mrb[135].mxu0  ;;  %v2669_v60 = vpop.f32.mrb[132].mxu1 }
0x1440   :  { %v6073_v15 = vadd.f32 %v2669_v60, %v2601_v22  ;;  %v4488_v19 = vpop.f32.mrb[133].mxu1 }
0x1441   :  { %v2672_v18 = vpop.f32.mrb[134].mxu1 }
0x1442   :  { %v6075_v41 = vadd.f32 %v2672_v18, %v2604_v62  ;;  %v4489_v24 = vpop.f32.mrb[135].mxu1 }
0x1444   :  { %v2747_v49 = vpop.f32.mrb[136].mxu0 }
0x1445   :  { %v2748_v30 = vadd.f32 %v5849_v57, %v2747_v49  ;;  %v4502_v25 = vpop.f32.mrb[137].mxu0 }
0x1446   :  { %v2750_v45 = vpop.f32.mrb[138].mxu0 }
0x1447   :  { %v2751_v28 = vadd.f32 %v5857_v33, %v2750_v45  ;;  %v2677_v44 = vpop.f32.mrb[136].mxu1  ;;  %v4503_v54 = vpop.f32.mrb[139].mxu0  ;;  %v2769_v59 = vsel %vm443_vm5, %v2748_v30, -inf }
0x1448   :  { %v6080_v7 = vadd.f32 %v2677_v44, %v2609_v34  ;;  %v4492_v2 = vpop.f32.mrb[137].mxu1  ;;  %2770 = vmax.xlane.f32.xlu0 %v2769_v59 }
0x1449   :  { %v2680_v63 = vpop.f32.mrb[138].mxu1  ;;  %v2772_v40 = vsel %vm443_vm5, %v2751_v28, -inf }
0x144a   :  { %v4493_v6 = vpop.f32.mrb[139].mxu1  ;;  %2773 = vmax.xlane.f32.xlu1 %v2772_v40 }
0x144c   :  { %v2755_v9 = vpop.f32.mrb[140].mxu0 }
0x144d   :  { %v2756_v11 = vadd.f32 %v5866_v50, %v2755_v9  ;;  %v4506_v12 = vpop.f32.mrb[141].mxu0 }
0x144e   :  { %v2758_v26 = vpop.f32.mrb[142].mxu0 }
0x144f   :  { %v2759_v14 = vadd.f32 %v5874_v32, %v2758_v26  ;;  %v4507_v58 = vpop.f32.mrb[143].mxu0  ;;  %v2775_v38 = vsel %vm443_vm5, %v2756_v11, -inf }
0x1450   :  { %2776 = vmax.xlane.f32.xlu0 %v2775_v38  ;;  %v3836_v58 = vld [vmem:[%s6328_s8 + $0x18] sm:$0xf] }
0x1451   :  { %v2778_v0 = vsel %vm443_vm5, %v2759_v14, -inf  ;;  %v2916_v38 = vsel %vm815_vm8, %v3836_v58, 0 }
0x1452   :  { %2779 = vmax.xlane.f32.xlu1 %v2778_v0  ;;  %4531 = vmatpush3.bf16.msra.mxu0 %v2916_v38 }
0x1453   :  { %4562 = vmatprep.subr.bf16.mxu0 %v4952_v1 }
0x1454   :  { %v2763_v4 = vpop.f32.mrb[144].mxu0 }
0x1455   :  { %v2764_v17 = vadd.f32 %v5883_v29, %v2763_v4  ;;  %v4510_v10 = vpop.f32.mrb[145].mxu0 }
0x1456   :  { %v2766_v8 = vpop.f32.mrb[146].mxu0 }
0x1457   :  { %v4511_v20 = vpop.f32.mrb[147].mxu0  ;;  %v2781_v51 = vsel %vm456_vm6, %v2764_v17, -inf }
0x1458   :  { %2782 = vmax.xlane.f32.xlu1 %v2781_v51 }
0x1466   :  { %2985 = vrot.lane.b32.xlu0 %v5783_v5, %s6354_s26 }
0x1469   :  { %2987 = vrot.lane.b32.xlu1 %v5787_v13, %s6354_s26 }
0x146a   :  { %2989 = vrot.lane.b32.xlu0 %v5791_v47, %s6354_s26 }
0x146d   :  { %2979 = vrot.lane.b32.xlu1 %v5783_v5, %s6355_s29 }
0x146e   :  { %2981 = vrot.lane.b32.xlu0 %v5787_v13, %s6355_s29 }
0x1471   :  { %2983 = vrot.lane.b32.xlu1 %v5791_v47, %s6355_s29 }
0x14d5   :  { %v2771_v16 = vpop.xlane.xlu0 %2770 }
0x14d6   :  { %v2784_v21 = vsub.f32 %v2748_v30, %v2771_v16 }
0x14d7   :  { %v2774_v55 = vpop.xlane.xlu1 %2773 }
0x14d8   :  { %v2789_v22 = vmul.f32 1.442695, %v2784_v21  ;;  %v2785_v23 = vsub.f32 %v2751_v28, %v2774_v55 }
0x14da   :  { %4863 = vpow2.f32 %v2789_v22  ;;  %v2791_v62 = vmul.f32 1.442695, %v2785_v23 }
0x14dc   :  { %4865 = vpow2.f32 %v2791_v62 }
0x14dd   :  { %v2777_v27 = vpop.xlane.xlu0 %2776 }
0x14de   :  { %v2786_v36 = vsub.f32 %v2756_v11, %v2777_v27 }
0x14df   :  { %v2780_v35 = vpop.xlane.xlu1 %2779 }
0x14e0   :  { %v2793_v3 = vmul.f32 1.442695, %v2786_v36  ;;  %v2787_v46 = vsub.f32 %v2759_v14, %v2780_v35 }
0x14e1   :  { %v2986_v19 = vpop.permute.xlu0 %2985 }
0x14e2   :  { %4867 = vpow2.f32 %v2793_v3  ;;  %v2795_v34 = vmul.f32 1.442695, %v2787_v46  ;;  %v3001_v25 = vsel %vm368_vm4, %v2986_v19, 0 }
0x14e4   :  { %v4864_v48 = vpop.eup %4863  ;;  %4869 = vpow2.f32 %v2795_v34 }
0x14e5   :  { %v2783_v53 = vpop.xlane.xlu1 %2782  ;;  %v2799_v42 = vsel %vm443_vm5, %v4864_v48, 0.0  ;;  %v2990_v9 = vpop.permute.xlu0 %2989 }
0x14e6   :  { %v4866_v60 = vpop.eup %4865  ;;  %v2788_v18 = vsub.f32 %v2764_v17, %v2783_v53  ;;  %2800 = vadd.xlane.f32.xlu0 %v2799_v42  ;;  %v3007_v12 = vsel %vm368_vm4, %v2990_v9, 0 }
0x14e7   :  { %v2819_v24 = vpack.c.bf16 %v4866_v60, %v4864_v48  ;;  %v2802_v49 = vsel %vm443_vm5, %v4866_v60, 0.0 }
0x14e8   :  { %v2797_v30 = vmul.f32 1.442695, %v2788_v18  ;;  %2803 = vadd.xlane.f32.xlu1 %v2802_v49 }
0x14e9   :  { %4519 = vmatmul.mubr.msk.bf16.vlgmr.msra.gmra.mrb[140].mxu1 %vm443_vm5, %v2819_v24  ;;  %v2988_v54 = vpop.permute.xlu1 %2987  ;;  %v2982_v14 = vpop.permute.xlu0 %2981 }
0x14ea   :  { %4871 = vpow2.f32 %v2797_v30  ;;  %4545 = vmatpush3.bf16.xpose.msra.mxu1 %v3001_v25  ;;  %4522 = vmatprep.mubr.msk.bf16.mxu1 %vm4953_vm0, %v4952_v1  ;;  %v3004_v2 = vsel %vm368_vm4, %v2988_v54, 0 }
0x14eb   :  { %4546 = vmatprep.subr.bf16.mxu1 %v4952_v1 }
0x14ec   :  { %v4868_v45 = vpop.eup %4867 }
0x14ed   :  { %v2805_v28 = vsel %vm443_vm5, %v4868_v45, 0.0  ;;  %v2980_v26 = vpop.permute.xlu1 %2979 }
0x14ee   :  { %v4870_v44 = vpop.eup %4869  ;;  %2806 = vadd.xlane.f32.xlu0 %v2805_v28 }
0x14ef   :  { %v2820_v59 = vpack.c.bf16 %v4870_v44, %v4868_v45  ;;  %v2808_v63 = vsel %vm443_vm5, %v4870_v44, 0.0 }
0x14f1   :  { %4523 = vmatmul.mubr.msk.bf16.gmra.mrb[144].mxu1 %vm443_vm5, %v2820_v59 }
0x14f2   :  { %4547 = vmatpush3.bf16.xpose.msra.mxu1 %v3004_v2  ;;  %2809 = vadd.xlane.f32.xlu0 %v2808_v63 }
0x14f3   :  { %4526 = vmatprep.mubr.msk.bf16.mxu1 %vm4953_vm0, %v4952_v1  ;;  %4548 = vmatprep.subr.bf16.mxu1 %v4952_v1 }
0x14f4   :  { %v4872_v40 = vpop.eup %4871 }
0x14f5   :  { %v2811_v6 = vsel %vm456_vm6, %v4872_v40, 0.0  ;;  %v2821_v11 = vpack.c.bf16 %v4872_v40, %v4872_v40 }
0x14f6   :  { %2812 = vadd.xlane.f32.xlu0 %v2811_v6 }
0x14f9   :  { %3118 = vrot.lane.b32.xlu1 %v5783_v5, %s6356_s1  ;;  %4527 = vmatmul.mubr.msk.bf16.gmra.mrb[148].mxu1 %vm443_vm5, %v2821_v11  ;;  %v2984_v5 = vpop.permute.xlu1 %2983 }
0x14fa   :  { %4549 = vmatpush3.bf16.xpose.msra.mxu1 %v3007_v12  ;;  %4550 = vmatprep.mubr.msk.bf16.mxu1 %vm4953_vm0, %v4952_v1 }
0x14fb   :  { %4580 = vmatprep.subr.bf16.mxu1 %v4952_v1 }
0x1501   :  { %4551 = vmatmul.mubr.msk.bf16.vlgmr.msra.gmra.mrb[152].mxu1 %vm368_vm4, %v2980_v26 }
0x1502   :  { %4554 = vmatprep.mubr.msk.bf16.mxu1 %vm4953_vm0, %v4952_v1 }
0x1509   :  { %4555 = vmatmul.mubr.msk.bf16.gmra.mrb[156].mxu1 %vm368_vm4, %v2982_v14 }
0x150a   :  { %4558 = vmatprep.mubr.msk.bf16.mxu1 %vm4953_vm0, %v4952_v1 }
0x1511   :  { %4559 = vmatmul.mubr.msk.bf16.gmra.mrb[160].mxu1 %vm368_vm4, %v2984_v5 }
0x1512   :  { %4582 = vmatprep.mubr.msk.bf16.mxu1 %vm4953_vm0, %v4952_v1 }
0x1573   :  { %v2801_v0 = vpop.xlane.xlu0 %2800 }
0x1574   :  { %4873 = vrcp.f32 %v2801_v0 }
0x1575   :  { %v2804_v4 = vpop.xlane.xlu1 %2803 }
0x1576   :  { %4875 = vrcp.f32 %v2804_v4 }
0x1579   :  { %v3119_v36 = vpop.permute.xlu1 %3118 }
0x157b   :  { %v2807_v17 = vpop.xlane.xlu0 %2806 }
0x157c   :  { %4877 = vrcp.f32 %v2807_v17 }
0x157e   :  { %v4874_v20 = vpop.eup %4873 }
0x157f   :  { %v2810_v10 = vpop.xlane.xlu0 %2809 }
0x1580   :  { %4879 = vrcp.f32 %v2810_v10  ;;  %v4876_v16 = vpop.eup %4875 }
0x1583   :  { %v2813_v55 = vpop.xlane.xlu0 %2812 }
0x1584   :  { %4881 = vrcp.f32 %v2813_v55 }
0x1586   :  { %v4878_v3 = vpop.eup %4877 }
0x158a   :  { %v4880_v34 = vpop.eup %4879 }
0x158e   :  { %v4882_v18 = vpop.eup %4881 }
0x15bc   :  { %v2876_v8 = vpop.f32.mrb[140].mxu1 }
0x15bd   :  { %v4520_v51 = vpop.f32.mrb[141].mxu1  ;;  %v2898_v22 = vmul.f32 %v4874_v20, %v2876_v8 }
0x15be   :  { %v2879_v21 = vpop.f32.mrb[142].mxu1 }
0x15bf   :  { %v2899_v23 = vmul.f32 %v4876_v16, %v2879_v21  ;;  %v4521_v62 = vpop.f32.mrb[143].mxu1 }
0x15c1   :  { %v2903_v27 = vpack.c.bf16 %v2899_v23, %v2898_v22 }
0x15c3   :  { %4533 = vmatmul.mubr.msk.bf16.vlgmr.msra.gmra.mrb[148].mxu0 %vm368_vm4, %v2903_v27 }
0x15c4   :  { %4563 = vmatpush3.bf16.msra.mxu0 %v3119_v36  ;;  %v2884_v35 = vpop.f32.mrb[144].mxu1  ;;  %4536 = vmatprep.mubr.msk.bf16.mxu0 %vm4953_vm0, %v4952_v1 }
0x15c5   :  { %v4524_v46 = vpop.f32.mrb[145].mxu1  ;;  %4564 = vmatprep.subr.bf16.mxu0 %v4952_v1  ;;  %v2900_v53 = vmul.f32 %v4878_v3, %v2884_v35 }
0x15c6   :  { %v2887_v48 = vpop.f32.mrb[146].mxu1 }
0x15c7   :  { %v2901_v42 = vmul.f32 %v4880_v34, %v2887_v48  ;;  %v4525_v60 = vpop.f32.mrb[147].mxu1 }
0x15c9   :  { %v2904_v19 = vpack.c.bf16 %v2901_v42, %v2900_v53 }
0x15cb   :  { %4537 = vmatmul.mubr.msk.bf16.gmra.mrb[152].mxu0 %vm368_vm4, %v2904_v19 }
0x15cc   :  { %v2892_v24 = vpop.f32.mrb[148].mxu1  ;;  %4540 = vmatprep.mubr.msk.bf16.mxu0 %vm4953_vm0, %v4952_v1 }
0x15cd   :  { %v2902_v49 = vmul.f32 %v4882_v18, %v2892_v24  ;;  %v4528_v30 = vpop.f32.mrb[149].mxu1 }
0x15ce   :  { %v2895_v25 = vpop.f32.mrb[150].mxu1 }
0x15cf   :  { %v4529_v45 = vpop.f32.mrb[151].mxu1  ;;  %v2905_v28 = vpack.c.bf16 %v2902_v49, %v2902_v49 }
0x15d3   :  { %4541 = vmatmul.mubr.msk.bf16.gmra.mrb[156].mxu0 %vm368_vm4, %v2905_v28 }
0x15d4   :  { %v3043_v44 = vpop.f32.mrb[152].mxu1  ;;  %4568 = vmatprep.mubr.msk.bf16.mxu0 %vm4953_vm0, %v4952_v1 }
0x15d5   :  { %v3044_v54 = vadd.f32 %v5849_v57, %v3043_v44  ;;  %v4552_v59 = vpop.f32.mrb[153].mxu1  ;;  %v3837_v44 = vld [vmem:[%s6328_s8 + $0x1c] sm:$0xf] }
0x15d6   :  { %v3046_v2 = vpop.f32.mrb[154].mxu1 }
0x15d7   :  { %v3047_v63 = vadd.f32 %v5857_v33, %v3046_v2  ;;  %v4553_v40 = vpop.f32.mrb[155].mxu1  ;;  %v3065_v6 = vsel %vm443_vm5, %v3044_v54, -inf }
0x15d8   :  { %3066 = vmax.xlane.f32.xlu1 %v3065_v6 }
0x15d9   :  { %v3068_v9 = vsel %vm443_vm5, %v3047_v63, -inf }
0x15da   :  { %3069 = vmax.xlane.f32.xlu0 %v3068_v9 }
0x15dc   :  { %v3051_v11 = vpop.f32.mrb[156].mxu1 }
0x15dd   :  { %v3052_v12 = vadd.f32 %v5866_v50, %v3051_v11  ;;  %v4556_v26 = vpop.f32.mrb[157].mxu1 }
0x15de   :  { %v3054_v14 = vpop.f32.mrb[158].mxu1 }
0x15df   :  { %v3055_v5 = vadd.f32 %v5874_v32, %v3054_v14  ;;  %v4557_v58 = vpop.f32.mrb[159].mxu1  ;;  %v3071_v57 = vsel %vm443_vm5, %v3052_v12, -inf }
0x15e0   :  { %3072 = vmax.xlane.f32.xlu1 %v3071_v57 }
0x15e1   :  { %v3074_v33 = vsel %vm443_vm5, %v3055_v5, -inf }
0x15e2   :  { %3075 = vmax.xlane.f32.xlu0 %v3074_v33 }
0x15e4   :  { %v3059_v38 = vpop.f32.mrb[160].mxu1 }
0x15e5   :  { %v3060_v0 = vadd.f32 %v5883_v29, %v3059_v38  ;;  %v4560_v4 = vpop.f32.mrb[161].mxu1 }
0x15e6   :  { %v3062_v17 = vpop.f32.mrb[162].mxu1 }
0x15e7   :  { %v4561_v10 = vpop.f32.mrb[163].mxu1  ;;  %v3077_v8 = vsel %vm456_vm6, %v3060_v0, -inf }
0x15e8   :  { %3078 = vmax.xlane.f32.xlu0 %v3077_v8 }
0x15f1   :  { %3122 = vrot.lane.b32.xlu1 %v5791_v47, %s6356_s1 }
0x15fe   :  { %3120 = vrot.lane.b32.xlu0 %v5787_v13, %s6356_s1 }
0x1665   :  { %v3067_v50 = vpop.xlane.xlu1 %3066 }
0x1666   :  { %v3080_v32 = vsub.f32 %v3044_v54, %v3067_v50  ;;  %v3212_v54 = vsel %vm815_vm8, %v3837_v44, 0 }
0x1667   :  { %v3070_v20 = vpop.xlane.xlu0 %3069  ;;  %4581 = vmatpush3.bf16.msra.mxu1 %v3212_v54 }
0x1668   :  { %v3085_v51 = vmul.f32 1.442695, %v3080_v32  ;;  %v3081_v16 = vsub.f32 %v3047_v63, %v3070_v20  ;;  %4610 = vmatprep.subr.bf16.mxu1 %v4952_v1 }
0x166a   :  { %4883 = vpow2.f32 %v3085_v51  ;;  %v3087_v21 = vmul.f32 1.442695, %v3081_v16 }
0x166c   :  { %4885 = vpow2.f32 %v3087_v21 }
0x166d   :  { %v3073_v29 = vpop.xlane.xlu1 %3072 }
0x166e   :  { %v3082_v55 = vsub.f32 %v3052_v12, %v3073_v29 }
0x166f   :  { %v3076_v22 = vpop.xlane.xlu0 %3075 }
0x1670   :  { %v3089_v23 = vmul.f32 1.442695, %v3082_v55  ;;  %v3083_v62 = vsub.f32 %v3055_v5, %v3076_v22 }
0x1671   :  { %v3123_v53 = vpop.permute.xlu1 %3122 }
0x1672   :  { %4887 = vpow2.f32 %v3089_v23  ;;  %v3091_v27 = vmul.f32 1.442695, %v3083_v62  ;;  %v3136_v60 = vsel %vm515_vm7, %v3123_v53, 0 }
0x1674   :  { %v4884_v36 = vpop.eup %4883  ;;  %4889 = vpow2.f32 %v3091_v27 }
0x1675   :  { %v3079_v47 = vpop.xlane.xlu0 %3078  ;;  %v3095_v13 = vsel %vm443_vm5, %v4884_v36, 0.0 }
0x1676   :  { %v4886_v35 = vpop.eup %4885  ;;  %v3084_v3 = vsub.f32 %v3060_v0, %v3079_v47  ;;  %3096 = vadd.xlane.f32.xlu1 %v3095_v13 }
0x1677   :  { %v3098_v46 = vsel %vm443_vm5, %v4886_v35, 0.0  ;;  %v3115_v24 = vpack.c.bf16 %v4886_v35, %v4884_v36 }
0x1678   :  { %v3093_v34 = vmul.f32 1.442695, %v3084_v3  ;;  %3099 = vadd.xlane.f32.xlu0 %v3098_v46 }
0x1679   :  { %v3121_v48 = vpop.permute.xlu0 %3120 }
0x167a   :  { %4891 = vpow2.f32 %v3093_v34  ;;  %4565 = vmatpush3.bf16.msra.mxu0 %v3121_v48 }
0x167b   :  { %4566 = vmatprep.subr.bf16.mxu0 %v4952_v1 }
0x167c   :  { %v4888_v42 = vpop.eup %4887 }
0x167d   :  { %v3101_v19 = vsel %vm443_vm5, %v4888_v42, 0.0 }
0x167e   :  { %v4890_v18 = vpop.eup %4889  ;;  %3102 = vadd.xlane.f32.xlu1 %v3101_v19  ;;  %4567 = vmatpush3.bf16.msra.mxu0 %v3136_v60 }
0x167f   :  { %v3104_v49 = vsel %vm443_vm5, %v4890_v18, 0.0  ;;  %4594 = vmatprep.subr.bf16.mxu0 %v4952_v1  ;;  %v3116_v45 = vpack.c.bf16 %v4890_v18, %v4888_v42 }
0x1680   :  { %3105 = vadd.xlane.f32.xlu0 %v3104_v49  ;;  %v3875_v49 = vld [vmem:[%s6329_s9 + $0x1] ss:$0 sm:$0xff] }
0x1681   :  { %4569 = vmatmul.mubr.msk.bf16.vlgmr.msra.gmra.mrb[160].mxu0 %vm443_vm5, %v3115_v24 }
0x1682   :  { %4572 = vmatprep.mubr.msk.bf16.mxu0 %vm4953_vm0, %v4952_v1 }
0x1684   :  { %v4892_v30 = vpop.eup %4891 }
0x1685   :  { %v3107_v25 = vsel %vm456_vm6, %v4892_v30, 0.0  ;;  %v3117_v28 = vpack.c.bf16 %v4892_v30, %v4892_v30 }
0x1686   :  { %3108 = vadd.xlane.f32.xlu1 %v3107_v25 }
0x1689   :  { %4573 = vmatmul.mubr.msk.bf16.gmra.mrb[164].mxu0 %vm443_vm5, %v3116_v45 }
0x168a   :  { %4576 = vmatprep.mubr.msk.bf16.mxu0 %vm4953_vm0, %v4952_v1 }
0x1691   :  { %4577 = vmatmul.mubr.msk.bf16.gmra.mrb[168].mxu0 %vm443_vm5, %v3117_v28 }
0x1692   :  { %4598 = vmatprep.mubr.msk.bf16.mxu0 %vm4953_vm0, %v4952_v1 }
0x1696   :  { %v2952_v59 = vpop.f32.mrb[148].mxu0 }
0x1697   :  { %v2974_v2 = vadd.f32 %v2952_v59, %v6069_v43  ;;  %v4534_v63 = vpop.f32.mrb[149].mxu0 }
0x1698   :  { %v2955_v40 = vpop.f32.mrb[150].mxu0 }
0x1699   :  { %v2975_v6 = vadd.f32 %v2955_v40, %v6071_v39  ;;  %v4535_v9 = vpop.f32.mrb[151].mxu0 }
0x169e   :  { %v2960_v11 = vpop.f32.mrb[152].mxu0 }
0x169f   :  { %v6186_v12 = vadd.f32 %v2960_v11, %v6073_v15  ;;  %v4538_v26 = vpop.f32.mrb[153].mxu0 }
0x16a0   :  { %v2963_v14 = vpop.f32.mrb[154].mxu0 }
0x16a1   :  { %v6189_v5 = vadd.f32 %v2963_v14, %v6075_v41  ;;  %v4539_v58 = vpop.f32.mrb[155].mxu0 }
0x16a6   :  { %v2968_v57 = vpop.f32.mrb[156].mxu0 }
0x16a7   :  { %v6192_v43 = vadd.f32 %v2968_v57, %v6080_v7  ;;  %v4542_v33 = vpop.f32.mrb[157].mxu0 }
0x16a8   :  { %v2971_v38 = vpop.f32.mrb[158].mxu0 }
0x16a9   :  { %v4543_v0 = vpop.f32.mrb[159].mxu0 }
0x1703   :  { %v3097_v4 = vpop.xlane.xlu1 %3096 }
0x1704   :  { %4893 = vrcp.f32 %v3097_v4 }
0x1705   :  { %v3100_v39 = vpop.xlane.xlu0 %3099 }
0x1706   :  { %4895 = vrcp.f32 %v3100_v39 }
0x170b   :  { %v3103_v17 = vpop.xlane.xlu1 %3102 }
0x170c   :  { %4897 = vrcp.f32 %v3103_v17 }
0x170d   :  { %v3106_v15 = vpop.xlane.xlu0 %3105 }
0x170e   :  { %4899 = vrcp.f32 %v3106_v15  ;;  %v4894_v8 = vpop.eup %4893 }
0x1710   :  { %v4896_v50 = vpop.eup %4895 }
0x1713   :  { %v3109_v20 = vpop.xlane.xlu1 %3108 }
0x1714   :  { %4901 = vrcp.f32 %v3109_v20 }
0x1716   :  { %v4898_v55 = vpop.eup %4897 }
0x1718   :  { %v4900_v23 = vpop.eup %4899 }
0x171e   :  { %v4902_v35 = vpop.eup %4901 }
0x1754   :  { %v3172_v10 = vpop.f32.mrb[160].mxu0 }
0x1755   :  { %v4570_v41 = vpop.f32.mrb[161].mxu0  ;;  %v3194_v51 = vmul.f32 %v4894_v8, %v3172_v10 }
0x1756   :  { %v3175_v32 = vpop.f32.mrb[162].mxu0 }
0x1757   :  { %v3195_v7 = vmul.f32 %v4896_v50, %v3175_v32  ;;  %v4571_v16 = vpop.f32.mrb[163].mxu0 }
0x1759   :  { %v3199_v21 = vpack.c.bf16 %v3195_v7, %v3194_v51 }
0x175b   :  { %4583 = vmatmul.mubr.msk.bf16.vlgmr.msra.gmra.mrb[164].mxu1 %vm368_vm4, %v3199_v21 }
0x175c   :  { %v3180_v29 = vpop.f32.mrb[164].mxu0  ;;  %4586 = vmatprep.mubr.msk.bf16.mxu1 %vm4953_vm0, %v4952_v1 }
0x175d   :  { %v4574_v22 = vpop.f32.mrb[165].mxu0  ;;  %v3196_v27 = vmul.f32 %v4898_v55, %v3180_v29 }
0x175e   :  { %v3183_v62 = vpop.f32.mrb[166].mxu0 }
0x175f   :  { %v3197_v36 = vmul.f32 %v4900_v23, %v3183_v62  ;;  %v4575_v47 = vpop.f32.mrb[167].mxu0 }
0x1761   :  { %v3200_v13 = vpack.c.bf16 %v3197_v36, %v3196_v27 }
0x1763   :  { %4587 = vmatmul.mubr.msk.bf16.gmra.mrb[168].mxu1 %vm368_vm4, %v3200_v13 }
0x1764   :  { %v3188_v3 = vpop.f32.mrb[168].mxu0  ;;  %4590 = vmatprep.mubr.msk.bf16.mxu1 %vm4953_vm0, %v4952_v1 }
0x1765   :  { %v3198_v46 = vmul.f32 %v4902_v35, %v3188_v3  ;;  %v4578_v34 = vpop.f32.mrb[169].mxu0 }
0x1766   :  { %v3191_v48 = vpop.f32.mrb[170].mxu0  ;;  %v4694_v34 = vld [vmem:[%s6332_s12 + $0x18] sm:$0xff]  }
0x1767   :  { %v4579_v53 = vpop.f32.mrb[171].mxu0  ;;  %v3201_v42 = vpack.c.bf16 %v3198_v46, %v3198_v46  ;;  %v4693_v46 = vld [vmem:[%s6332_s12 + $0x10] sm:$0xff]  }
0x1768   :  { %4595 = vmatpush3.bf16.msra.mxu0 %v4693_v46 }
0x1769   :  { %4596 = vmatprep.subr.bf16.mxu0 %v4952_v1 }
0x176b   :  { %4591 = vmatmul.mubr.msk.bf16.gmra.mrb[172].mxu1 %vm368_vm4, %v3201_v42 }
0x176c   :  { %4626 = vmatprep.mubr.msk.bf16.mxu1 %vm4953_vm0, %v4952_v1  ;;  %4597 = vmatpush3.bf16.msra.mxu0 %v4694_v34 }
0x182e   :  { %v3248_v60 = vpop.f32.mrb[164].mxu1 }
0x182f   :  { %v3270_v19 = vadd.f32 %v3248_v60, %v2974_v2  ;;  %v4584_v18 = vpop.f32.mrb[165].mxu1 }
0x1830   :  { %v3251_v24 = vpop.f32.mrb[166].mxu1 }
0x1831   :  { %v3275_v30 = vadd.f32 %v3270_v19, %v5723_v31  ;;  %v3271_v25 = vadd.f32 %v3251_v24, %v2975_v6  ;;  %v4585_v45 = vpop.f32.mrb[167].mxu1 }
0x1833   :  { %v3276_v28 = vadd.f32 %v3271_v25, %v5726_v37  ;;  %v3288_v44 = vadd.f32 %v3875_v49, %v3275_v30 }
0x1835   :  { %v3297_v54 = vsel %vm171_vm2, %v3288_v44, 0.0  ;;  %v3289_v59 = vadd.f32 %v3875_v49, %v3276_v28 }
0x1836   :  { %3298 = vadd.xlane.f32.xlu0 %v3297_v54  ;;  %v3256_v63 = vpop.f32.mrb[168].mxu1  ;;  %v3878_v54 = vld [vmem:[%s6330_s10 + $0x1] ss:$0 sm:$0xff] }
0x1837   :  { %v3272_v2 = vadd.f32 %v3256_v63, %v6186_v12  ;;  %v4588_v40 = vpop.f32.mrb[169].mxu1  ;;  %v3300_v9 = vsel %vm171_vm2, %v3289_v59, 0.0 }
0x1838   :  { %3301 = vadd.xlane.f32.xlu1 %v3300_v9  ;;  %v3259_v11 = vpop.f32.mrb[170].mxu1 }
0x1839   :  { %v3277_v26 = vadd.f32 %v3272_v2, %v5733_v52  ;;  %v3273_v31 = vadd.f32 %v3259_v11, %v6189_v5  ;;  %v4589_v6 = vpop.f32.mrb[171].mxu1 }
0x183b   :  { %v3278_v37 = vadd.f32 %v3273_v31, %v5736_v56  ;;  %v3290_v14 = vadd.f32 %v3875_v49, %v3277_v26  ;;  %v3879_v26 = vld [vmem:[%s6331_s11 + $0x1] ss:$0 sm:$0xff] }
0x183d   :  { %v3303_v58 = vsel %vm171_vm2, %v3290_v14, 0.0  ;;  %v3291_v57 = vadd.f32 %v3875_v49, %v3278_v37 }
0x183e   :  { %3304 = vadd.xlane.f32.xlu0 %v3303_v58  ;;  %v3264_v33 = vpop.f32.mrb[172].mxu1 }
0x183f   :  { %v3274_v12 = vadd.f32 %v3264_v33, %v6192_v43  ;;  %v4592_v38 = vpop.f32.mrb[173].mxu1  ;;  %v3306_v0 = vsel %vm171_vm2, %v3291_v57, 0.0 }
0x1840   :  { %3307 = vadd.xlane.f32.xlu1 %v3306_v0  ;;  %v3267_v4 = vpop.f32.mrb[174].mxu1 }
0x1841   :  { %v3279_v52 = vadd.f32 %v3274_v12, %v5743_v61  ;;  %v4593_v39 = vpop.f32.mrb[175].mxu1 }
0x1843   :  { %v6218_v5 = vadd.f32 %v3875_v49, %v3279_v52 }
0x1845   :  { %v3309_v56 = vsel %vm184_vm3, %v6218_v5, 0.0 }
0x1846   :  { %3310 = vadd.xlane.f32.xlu0 %v3309_v56 }
0x18c3   :  { %v3299_v17 = vpop.xlane.xlu0 %3298 }
0x18c4   :  { %v3312_v15 = vmul.f32 0.03125, %v3299_v17 }
0x18c5   :  { %v3302_v10 = vpop.xlane.xlu1 %3301 }
0x18c6   :  { %v3317_v8 = vsub.f32 %v3288_v44, %v3312_v15  ;;  %v3313_v41 = vmul.f32 0.03125, %v3302_v10 }
0x18c8   :  { %v3318_v43 = vsub.f32 %v3289_v59, %v3313_v41  ;;  %v3322_v50 = vmul.f32 %v3317_v8, %v3317_v8 }
0x18ca   :  { %v3327_v32 = vsel %vm171_vm2, %v3322_v50, 0.0  ;;  %v3323_v20 = vmul.f32 %v3318_v43, %v3318_v43  ;;  %v4696_v50 = vld [vmem:[%s6334_s14 + $0x48] sm:$0xff]  }
0x18cb   :  { %v3305_v51 = vpop.xlane.xlu0 %3304  ;;  %3328 = vadd.xlane.f32.xlu1 %v3327_v32  ;;  %v4697_v32 = vld [vmem:[%s6334_s14 + $0x50] sm:$0xff]  }
0x18cc   :  { %v3314_v61 = vmul.f32 0.03125, %v3305_v51  ;;  %v3330_v7 = vsel %vm171_vm2, %v3323_v20, 0.0  ;;  %v4698_v20 = vld [vmem:[%s6334_s14 + $0x58] sm:$0xff]   ;;  %v4699_v51 = vld [vmem:[%s6334_s14 + $0x60] sm:$0xff]  }
0x18cd   :  { %v3308_v16 = vpop.xlane.xlu1 %3307  ;;  %3331 = vadd.xlane.f32.xlu0 %v3330_v7  ;;  %v4701_v7 = vld [vmem:[%s6334_s14 + $0x70] sm:$0xff]  }
0x18ce   :  { %v3319_v21 = vsub.f32 %v3290_v14, %v3314_v61  ;;  %v3315_v29 = vmul.f32 0.03125, %v3308_v16  ;;  %v4700_v61 = vld [vmem:[%s6334_s14 + $0x68] sm:$0xff]   ;;  %v4702_v16 = vld [vmem:[%s6334_s14 + $0x78] sm:$0xff]  }
0x18d0   :  { %v3320_v55 = vsub.f32 %v3291_v57, %v3315_v29  ;;  %v3324_v22 = vmul.f32 %v3319_v21, %v3319_v21 }
0x18d2   :  { %v3333_v23 = vsel %vm171_vm2, %v3324_v22, 0.0  ;;  %v3325_v62 = vmul.f32 %v3320_v55, %v3320_v55 }
0x18d3   :  { %3334 = vadd.xlane.f32.xlu1 %v3333_v23  ;;  %v3311_v27 = vpop.xlane.xlu0 %3310 }
0x18d4   :  { %v3316_v36 = vmul.f32 0.03125, %v3311_v27  ;;  %v3336_v47 = vsel %vm171_vm2, %v3325_v62, 0.0 }
0x18d5   :  { %3337 = vadd.xlane.f32.xlu0 %v3336_v47 }
0x18d6   :  { %v3321_v13 = vsub.f32 %v6218_v5, %v3316_v36 }
0x18d8   :  { %v3326_v35 = vmul.f32 %v3321_v13, %v3321_v13 }
0x18da   :  { %v3339_v3 = vsel %vm184_vm3, %v3326_v35, 0.0 }
0x18db   :  { %3340 = vadd.xlane.f32.xlu1 %v3339_v3 }
0x1958   :  { %v3329_v48 = vpop.xlane.xlu1 %3328 }
0x1959   :  { %v3342_v53 = vmul.f32 0.03125, %v3329_v48 }
0x195a   :  { %v3332_v42 = vpop.xlane.xlu0 %3331 }
0x195b   :  { %v3347_v60 = vadd.f32 1e-05, %v3342_v53  ;;  %v3343_v19 = vmul.f32 0.03125, %v3332_v42 }
0x195d   :  { %4903 = vrsqrt.f32 %v3347_v60  ;;  %v3348_v18 = vadd.f32 1e-05, %v3343_v19 }
0x195f   :  { %4905 = vrsqrt.f32 %v3348_v18 }
0x1960   :  { %v3335_v24 = vpop.xlane.xlu1 %3334 }
0x1961   :  { %v3344_v49 = vmul.f32 0.03125, %v3335_v24 }
0x1962   :  { %v3338_v30 = vpop.xlane.xlu0 %3337 }
0x1963   :  { %v3349_v25 = vadd.f32 1e-05, %v3344_v49  ;;  %v3345_v45 = vmul.f32 0.03125, %v3338_v30 }
0x1965   :  { %4907 = vrsqrt.f32 %v3349_v25  ;;  %v3350_v28 = vadd.f32 1e-05, %v3345_v45 }
0x1967   :  { %v4904_v44 = vpop.eup %4903  ;;  %4909 = vrsqrt.f32 %v3350_v28 }
0x1968   :  { %v3357_v59 = vmul.f32 %v4904_v44, %v3317_v8  ;;  %v3341_v63 = vpop.xlane.xlu1 %3340 }
0x1969   :  { %v4906_v2 = vpop.eup %4905  ;;  %v3346_v40 = vmul.f32 0.03125, %v3341_v63 }
0x196a   :  { %v3368_v9 = vmul.f32 %v3878_v54, %v3357_v59  ;;  %v3358_v11 = vmul.f32 %v4906_v2, %v3318_v43  ;;  %v4695_v43 = vld [vmem:[%s6334_s14 + $0x40] sm:$0xff]  }
0x196b   :  { %v3351_v31 = vadd.f32 1e-05, %v3346_v40  ;;  %4611 = vmatpush3.bf16.msra.mxu1 %v4695_v43 }
0x196c   :  { %v3369_v6 = vmul.f32 %v3878_v54, %v3358_v11  ;;  %v3379_v37 = vadd.f32 %v3879_v26, %v3368_v9  ;;  %4612 = vmatprep.subr.bf16.mxu1 %v4952_v1 }
0x196d   :  { %4911 = vrsqrt.f32 %v3351_v31 }
0x196e   :  { %v3380_v14 = vadd.f32 %v3879_v26, %v3369_v6 }
0x196f   :  { %v4908_v58 = vpop.eup %4907  ;;  %4613 = vmatpush3.bf16.msra.mxu1 %v4696_v50 }
0x1970   :  { %v3359_v57 = vmul.f32 %v4908_v58, %v3319_v21  ;;  %v3384_v33 = vpack.c.bf16 %v3380_v14, %v3379_v37  ;;  %4614 = vmatprep.subr.bf16.mxu1 %v4952_v1  ;;  %v3885_v21 = vld [vmem:[%s6333_s13 + $0x1] ss:$0 sm:$0xff] }
0x1971   :  { %v4910_v12 = vpop.eup %4909 }
0x1972   :  { %v3360_v38 = vmul.f32 %v4910_v12, %v3320_v55  ;;  %4599 = vmatmul.mubr.msk.bf16.vlgmr.msra.gmra.mrb[172].mxu0 %vm171_vm2, %v3384_v33  ;;  %v3370_v0 = vmul.f32 %v3878_v54, %v3359_v57 }
0x1973   :  { %4602 = vmatprep.mubr.msk.bf16.mxu0 %vm4953_vm0, %v4952_v1  ;;  %4615 = vmatpush3.bf16.msra.mxu1 %v4697_v32 }
0x1974   :  { %v3371_v4 = vmul.f32 %v3878_v54, %v3360_v38  ;;  %v3381_v52 = vadd.f32 %v3879_v26, %v3370_v0  ;;  %4616 = vmatprep.subr.bf16.mxu1 %v4952_v1 }
0x1976   :  { %v3382_v39 = vadd.f32 %v3879_v26, %v3371_v4 }
0x1977   :  { %v4912_v56 = vpop.eup %4911  ;;  %4617 = vmatpush3.bf16.msra.mxu1 %v4698_v20 }
0x1978   :  { %v3361_v17 = vmul.f32 %v4912_v56, %v3321_v13  ;;  %v3385_v15 = vpack.c.bf16 %v3382_v39, %v3381_v52  ;;  %4618 = vmatprep.subr.bf16.mxu1 %v4952_v1 }
0x197a   :  { %4603 = vmatmul.mubr.msk.bf16.gmra.mrb[176].mxu0 %vm171_vm2, %v3385_v15  ;;  %v3372_v10 = vmul.f32 %v3878_v54, %v3361_v17 }
0x197b   :  { %4606 = vmatprep.mubr.msk.bf16.mxu0 %vm4953_vm0, %v4952_v1  ;;  %4619 = vmatpush3.bf16.msra.mxu1 %v4699_v51 }
0x197c   :  { %v3383_v8 = vadd.f32 %v3879_v26, %v3372_v10  ;;  %4620 = vmatprep.subr.bf16.mxu1 %v4952_v1 }
0x197e   :  { %v3386_v41 = vpack.c.bf16 %v3383_v8, %v3383_v8 }
0x197f   :  { %4621 = vmatpush3.bf16.msra.mxu1 %v4700_v61 }
0x1980   :  { %4622 = vmatprep.subr.bf16.mxu1 %v4952_v1 }
0x1982   :  { %4607 = vmatmul.mubr.msk.bf16.gmra.mrb[180].mxu0 %vm171_vm2, %v3386_v41 }
0x1983   :  { %4646 = vmatprep.mubr.msk.f32.mxu0 %vm4953_vm0, %v4952_v1  ;;  %4623 = vmatpush3.bf16.msra.mxu1 %v4701_v7 }
0x1984   :  { %4624 = vmatprep.subr.bf16.mxu1 %v4952_v1 }
0x1987   :  { %4625 = vmatpush3.bf16.msra.mxu1 %v4702_v16 }
0x1a45   :  { %v3455_v29 = vpop.f32.mrb[172].mxu0 }
0x1a46   :  { %v3456_v55 = vadd.f32 %v3885_v21, %v3455_v29  ;;  %v4600_v22 = vpop.f32.mrb[173].mxu0 }
0x1a47   :  { %v3458_v23 = vpop.f32.mrb[174].mxu0 }
0x1a48   :  { %v3477_v62 = vmul.f32 %v3456_v55, %v3456_v55  ;;  %v3459_v27 = vadd.f32 %v3885_v21, %v3458_v23  ;;  %v4601_v36 = vpop.f32.mrb[175].mxu0  ;;  %v3651_v23 = vld [vmem:[%s6336_s16] sm:$0xff] }
0x1a4a   :  { %v3482_v47 = vmul.f32 %v3477_v62, %v3456_v55  ;;  %v3478_v13 = vmul.f32 %v3459_v27, %v3459_v27  ;;  %v3652_v62 = vld [vmem:[%s6336_s16 + $0x8] sm:$0xff] }
0x1a4b   :  { %v4650_v36 = vpack.c.bf16 %v3652_v62, %v3651_v23 }
0x1a4c   :  { %v3487_v35 = vmul.f32 0.044715, %v3482_v47  ;;  %v3483_v3 = vmul.f32 %v3478_v13, %v3459_v27  ;;  %v3654_v47 = vld [vmem:[%s6336_s16 + $0x18] sm:$0xff] }
0x1a4d   :  { %v3463_v46 = vpop.f32.mrb[176].mxu0 }
0x1a4e   :  { %v3492_v34 = vadd.f32 %v3487_v35, %v3456_v55  ;;  %v3488_v48 = vmul.f32 0.044715, %v3483_v3  ;;  %v3464_v53 = vadd.f32 %v3885_v21, %v3463_v46  ;;  %v4604_v42 = vpop.f32.mrb[177].mxu0 }
0x1a4f   :  { %v3466_v60 = vpop.f32.mrb[178].mxu0 }
0x1a50   :  { %v3497_v19 = vmul.f32 0.7978846, %v3492_v34  ;;  %v3493_v18 = vadd.f32 %v3488_v48, %v3459_v27  ;;  %v3479_v24 = vmul.f32 %v3464_v53, %v3464_v53  ;;  %v3467_v49 = vadd.f32 %v3885_v21, %v3466_v60  ;;  %v4605_v30 = vpop.f32.mrb[179].mxu0 }
0x1a52   :  { %4913 = vtanh.f32 %v3497_v19  ;;  %v3498_v25 = vmul.f32 0.7978846, %v3493_v18  ;;  %v3484_v45 = vmul.f32 %v3479_v24, %v3464_v53  ;;  %v3480_v28 = vmul.f32 %v3467_v49, %v3467_v49  ;;  %v3908_v19 = vld [vmem:[%s6335_s15 + $0x1] ss:$0 sm:$0xff]  ;;  %s4928_s15 = scalar_lea.vmem %s3744_s28, 32 }
0x1a53   :  { %p4929_p0 = scmp.ne.s32.totalorder %s3744_s28, %s4928_s15  ;;  %p4934_p2 = scmp.lt.s32.totalorder %s4928_s15, %s4928_s15 }
0x1a54   :  { %4915 = vtanh.f32 %v3498_v25  ;;  %v3489_v44 = vmul.f32 0.044715, %v3484_v45  ;;  %v3485_v54 = vmul.f32 %v3480_v28, %v3467_v49  ;;  %v3917_v28 = vld [vmem:[%s6337_s17] ss:$0 sm:$0xff] }
0x1a55   :  { %v3471_v59 = vpop.f32.mrb[180].mxu0  ;;  %p4935_p3 = por %p4934_p2, %p4933_p1 }
0x1a56   :  { %v3494_v63 = vadd.f32 %v3489_v44, %v3464_v53  ;;  %v3490_v2 = vmul.f32 0.044715, %v3485_v54  ;;  %v3472_v40 = vadd.f32 %v3885_v21, %v3471_v59  ;;  %v4608_v9 = vpop.f32.mrb[181].mxu0 }
0x1a57   :  { %v3474_v11 = vpop.f32.mrb[182].mxu0  ;;  %p4936_p4 = pnand %p4935_p3, %p4929_p0 }
0x1a58   :  { %v3499_v26 = vmul.f32 0.7978846, %v3494_v63  ;;  %v3495_v31 = vadd.f32 %v3490_v2, %v3467_v49  ;;  %v3481_v6 = vmul.f32 %v3472_v40, %v3472_v40  ;;  %v4609_v37 = vpop.f32.mrb[183].mxu0 }
0x1a5a   :  { %4917 = vtanh.f32 %v3499_v26  ;;  %v3500_v14 = vmul.f32 0.7978846, %v3495_v31  ;;  %v3486_v58 = vmul.f32 %v3481_v6, %v3472_v40 }
0x1a5c   :  { %v4914_v57 = vpop.eup %4913  ;;  %4919 = vtanh.f32 %v3500_v14  ;;  %v3491_v33 = vmul.f32 0.044715, %v3486_v58 }
0x1a5d   :  { %v3507_v12 = vadd.f32 1.0, %v4914_v57 }
0x1a5e   :  { %v4916_v38 = vpop.eup %4915  ;;  %v3496_v0 = vadd.f32 %v3491_v33, %v3472_v40 }
0x1a5f   :  { %v3512_v4 = vmul.f32 0.5, %v3507_v12  ;;  %v3508_v52 = vadd.f32 1.0, %v4916_v38 }
0x1a60   :  { %v3501_v39 = vmul.f32 0.7978846, %v3496_v0 }
0x1a61   :  { %v3513_v56 = vmul.f32 0.5, %v3508_v52  ;;  %v3517_v17 = vmul.f32 %v3512_v4, %v3456_v55 }
0x1a62   :  { %4921 = vtanh.f32 %v3501_v39 }
0x1a63   :  { %v3518_v15 = vmul.f32 %v3513_v56, %v3459_v27  ;;  %v4965_v27 = vmov 0.0|0.0  }
0x1a64   :  { %v4918_v10 = vpop.eup %4917  ;;  %4649 = vmatprep.subr.bf16.mxu0 %v4965_v27 }
0x1a65   :  { %v3522_v8 = vpack.c.bf16 %v3518_v15, %v3517_v17  ;;  %v3509_v41 = vadd.f32 1.0, %v4918_v10  ;;  %4651 = vmatpush3.bf16.msra.mxu0 %v4650_v36 }
0x1a66   :  { %v4920_v43 = vpop.eup %4919  ;;  %4652 = vmatprep.subr.bf16.mxu0 %v4965_v27 }
0x1a67   :  { %4627 = vmatmul.mubr.bf16.vlgmr.msra.gmra.mrb[176].mxu1 %v3522_v8  ;;  %v3510_v50 = vadd.f32 1.0, %v4920_v43  ;;  %v3514_v32 = vmul.f32 0.5, %v3509_v41 }
0x1a68   :  { %4630 = vmatprep.mubr.msk.bf16.mxu1 %vm4953_vm0, %v4952_v1 }
0x1a69   :  { %v3515_v20 = vmul.f32 0.5, %v3510_v50  ;;  %v3519_v51 = vmul.f32 %v3514_v32, %v3464_v53 }
0x1a6b   :  { %v3520_v61 = vmul.f32 %v3515_v20, %v3467_v49 }
0x1a6c   :  { %v4922_v7 = vpop.eup %4921 }
0x1a6d   :  { %v3523_v16 = vpack.c.bf16 %v3520_v61, %v3519_v51  ;;  %v3511_v21 = vadd.f32 1.0, %v4922_v7 }
0x1a6f   :  { %4631 = vmatmul.mubr.bf16.gmra.mrb[180].mxu1 %v3523_v16  ;;  %v3516_v29 = vmul.f32 0.5, %v3511_v21 }
0x1a70   :  { %4634 = vmatprep.mubr.msk.bf16.mxu1 %vm4953_vm0, %v4952_v1  ;;  %v3653_v1 = vld [vmem:[%s6336_s16 + $0x10] sm:$0xff] }
0x1a71   :  { %v3521_v55 = vmul.f32 %v3516_v29, %v3472_v40  ;;  %v4653_v13 = vpack.c.bf16 %v3654_v47, %v3653_v1 }
0x1a73   :  { %v3524_v22 = vpack.c.bf16 %v3521_v55, %v3521_v55  ;;  %4654 = vmatpush3.bf16.msra.mxu0 %v4653_v13 }
0x1a77   :  { %4635 = vmatmul.mubr.bf16.gmra.mrb[184].mxu1 %v3524_v22 }
0x1b3a   :  { %v3632_v35 = vpop.f32.mrb[176].mxu1 }
0x1b3b   :  { %v4628_v3 = vpop.f32.mrb[177].mxu1 }
0x1b3c   :  { %v3634_v46 = vpop.f32.mrb[178].mxu1 }
0x1b3d   :  { %v4629_v34 = vpop.f32.mrb[179].mxu1 }
0x1b42   :  { %v3638_v48 = vpop.f32.mrb[180].mxu1 }
0x1b43   :  { %v4632_v53 = vpop.f32.mrb[181].mxu1 }
0x1b44   :  { %v3640_v42 = vpop.f32.mrb[182].mxu1 }
0x1b45   :  { %v4633_v60 = vpop.f32.mrb[183].mxu1 }
0x1b4a   :  { %v3644_v18 = vpop.f32.mrb[184].mxu1 }
0x1b4b   :  { %v3645_v24 = vadd.f32 %v3908_v19, %v3644_v18  ;;  %v4636_v49 = vpop.f32.mrb[185].mxu1 }
0x1b4c   :  { %v3647_v30 = vpop.f32.mrb[186].mxu1 }
0x1b4d   :  { %v3650_v25 = vadd.f32 %v3645_v24, %v6218_v5  ;;  %v4637_v45 = vpop.f32.mrb[187].mxu1 }
0x1b4f   :  { %4647 = vmatmul.mubr.msk.f32.vlgmr.msra.gmra.mrb[184].mxu0 %vm171_vm2, %v3650_v25 }
0x1c22   :  { %v3731_v44 = vpop.f32.mrb[184].mxu0 }
0x1c23   :  { %v3732_v54 = vadd.f32 %v3917_v28, %v3731_v44  ;;  %v4648_v59 = vpop.f32.mrb[185].mxu0 }
0x1c25   :  { %3736 = vst.msk [vmem:[#allocation2] sm:$0x3] %vm3735_vm9, %v3732_v54 }
0x1c26   :  { %4939 = shalt.err (!%p4936_p4)
}
0x1c27   :  { %s4940_s21 = scalar_lea.hbm %s6338_s18, 32 }
0x1c28   :  { %p4941_p5 = scmp.ne.s32.totalorder %s6338_s18, %s4940_s21  ;;  %p4944_p6 = scmp.lt.u32.totalorder %s4940_s21, %s6338_s18 }
0x1c2a   :  { %p4946_p7 = pnand %p4944_p6, %p4941_p5 }
0x1c2c   :  { %4949 = shalt.err (!%p4946_p7)
}
0x1c2d   :  { %3746 = dma.vmem_to_hbm [thread:$0]  %s3744_s28, 32, %s6338_s18, [#allocation3]  }
0x1c2e   :  { %4950 = dma.done.wait [#allocation3], 32  }
0x1c2f   :  { %4951 = vsyncadd [#allocation3], 4294967264 }
0x1c30   :  { %3750 = vsyncpa [#allocation3], 1 }

</bundles_post_ra>
